<compile_context>
chip_gen: v7x
topology: tpu7x:2x2x1
jax: 0.10.0
libtpu: 0.0.40
codegen_flags: <defaults>
</compile_context>

<pallas_src>
import jax
import jax.numpy as jnp
from jax import lax
from jax.experimental import pallas as pl
from jax.experimental.pallas import tpu as pltpu


# ----------------------------------------------------------------------------
# Bi-directional GRU + attention encoder kernel (word & sentence levels).
# Refs:  13 inputs, 2 outputs, 2 VMEM scratches (all 2-D, row-block = bn rows).
# ----------------------------------------------------------------------------
def _encoder_kernel(x_ref, len_ref,
                    wi_f_ref, wh_f_ref, bih_f_ref, bhh_f_ref,
                    wi_b_ref, wh_b_ref, bih_b_ref, bhh_b_ref,
                    aw_ref, ab_ref, ctx_ref,
                    vec_ref, alpha_ref,
                    xproj_ref, out_ref):
    T, Nb, D = x_ref.shape
    H = wh_f_ref.shape[0]

    lengths = len_ref[...]                                   # (Nb, 1) f32
    # Collapse leading dims (Nb is a multiple of 8 -> layout-trivial reshape).
    x2d = x_ref[...].reshape(T * Nb, D)                      # (T*Nb, D)

    def run_direction(wi_ref, wh_ref, bih_ref, bhh_ref, col0, reverse):
        # --- hoisted input projection: one big MXU matmul for all timesteps ---
        xproj_ref[...] = (
            jnp.dot(x2d, wi_ref[...], preferred_element_type=jnp.float32)
            + bih_ref[...])                                  # (T*Nb, 3H)
        wh = wh_ref[...]                                     # (H, 3H)
        bhh = jnp.broadcast_to(bhh_ref[...], (Nb, 3 * H))    # hoisted broadcast

        def step(it, h):
            t = (T - 1 - it) if reverse else it
            row = pl.multiple_of(t * Nb, Nb)
            xp = xproj_ref[pl.ds(row, Nb), :]                # (Nb, 3H)
            hp = jnp.dot(h, wh, preferred_element_type=jnp.float32) + bhh
            r = jax.nn.sigmoid(xp[:, :H] + hp[:, :H])
            z = jax.nn.sigmoid(xp[:, H:2 * H] + hp[:, H:2 * H])
            n = jnp.tanh(xp[:, 2 * H:] + r * hp[:, 2 * H:])  # b_hn stays inside r*()
            h_new = (1.0 - z) * n + z * h
            valid = (lengths > t).astype(jnp.float32)        # (Nb, 1)
            out_ref[pl.ds(row, Nb), pl.ds(col0, H)] = valid * h_new   # pad -> 0
            return valid * h_new + (1.0 - valid) * h         # freeze h when padded

        lax.fori_loop(0, T, step, jnp.zeros((Nb, H), jnp.float32), unroll=True)

    run_direction(wi_f_ref, wh_f_ref, bih_f_ref, bhh_f_ref, 0, reverse=False)
    run_direction(wi_b_ref, wh_b_ref, bih_b_ref, bhh_b_ref, H, reverse=True)

    # -------- attention: one fused (T*Nb, 2H) x (2H, A) matmul --------
    out2d = out_ref[...]                                     # (T*Nb, 2H)
    uit = jnp.tanh(
        jnp.dot(out2d, aw_ref[...], preferred_element_type=jnp.float32)
        + ab_ref[...])                                       # (T*Nb, A)
    ctx = ctx_ref[...]                                       # (1, A)

    # Build attention logits lane-dense as (Nb, T): column t = <uit_t, ctx>.
    for t in range(T):                                       # static, small T
        u_t = uit[t * Nb:(t + 1) * Nb, :]                    # (Nb, A)
        alpha_ref[:, t:t + 1] = jnp.sum(u_t * ctx, axis=1, keepdims=True)

    # -------- masked softmax over time (lane reduce, axis = -1) --------
    sim = alpha_ref[...]                                     # (Nb, T)
    t_idx = lax.broadcasted_iota(jnp.int32, (Nb, T), 1).astype(jnp.float32)
    mask = (t_idx < lengths).astype(jnp.float32)             # (Nb, T)
    sim = sim * mask + (1.0 - mask) * (-1e20)
    m = jnp.max(sim, axis=1, keepdims=True)
    e = jnp.exp(sim - m)
    alpha = e / jnp.sum(e, axis=1, keepdims=True)            # (Nb, T)
    alpha_ref[...] = alpha

    # -------- attention-weighted pooling (single fused (Nb, 2H) output) ------
    v = jnp.zeros((Nb, 2 * H), jnp.float32)
    for t in range(T):                                       # static, small T
        v = v + alpha[:, t:t + 1] * out2d[t * Nb:(t + 1) * Nb, :]
    vec_ref[...] = v


def _round_up(x, m):
    return ((x + m - 1) // m) * m


def _block_rows(n_pad, max_block=256):
    """Largest row-block <= max_block that is a multiple of 8 and divides n_pad."""
    if n_pad <= max_block:
        return n_pad
    for bn in range(max_block, 7, -8):
        if n_pad % bn == 0:
            return bn
    return n_pad


def bi_gru_attention(x_tm, lengths, p):
    """x_tm: (T, N, D) time-major input; lengths: (N,) valid-step counts.

    Returns (vec, alpha): vec (N, 2H) = concat(fwd, bwd) attention-pooled
    vectors, alpha (N, T) attention weights (lane-dense layout).
    """
    T, N, D = x_tm.shape
    H = p["wh_f"].shape[0]
    A = p["aw"].shape[1]

    # Pad the row axis to a multiple of 8 (sublane tiling); padded rows get
    # length 1 and are sliced off afterwards.
    n_pad = _round_up(max(N, 8), 8)
    if n_pad != N:
        x_tm = jnp.pad(x_tm, ((0, 0), (0, n_pad - N), (0, 0)))
        lengths = jnp.pad(lengths, (0, n_pad - N), constant_values=1)
    len_col = lengths.astype(jnp.float32).reshape(n_pad, 1)

    bn = _block_rows(n_pad)
    grid = (n_pad // bn,)

    full = lambda shape: pl.BlockSpec(shape, lambda i: (0,) * len(shape))
    rows = lambda shape: pl.BlockSpec(shape, lambda i: (i, 0))

    in_specs = [
        pl.BlockSpec((T, bn, D), lambda i: (0, i, 0)),       # x (time-major)
        rows((bn, 1)),                                       # lengths
        full((D, 3 * H)), full((H, 3 * H)), full((1, 3 * H)), full((1, 3 * H)),
        full((D, 3 * H)), full((H, 3 * H)), full((1, 3 * H)), full((1, 3 * H)),
        full((2 * H, A)), full((1, A)), full((1, A)),
    ]
    out_specs = (rows((bn, 2 * H)), rows((bn, T)))
    out_shape = (jax.ShapeDtypeStruct((n_pad, 2 * H), jnp.float32),
                 jax.ShapeDtypeStruct((n_pad, T), jnp.float32))
    scratch_shapes = [
        pltpu.VMEM((T * bn, 3 * H), jnp.float32),            # hoisted x-projection
        pltpu.VMEM((T * bn, 2 * H), jnp.float32),            # fwd|bwd GRU outputs
    ]

    vec, alpha = pl.pallas_call(
        _encoder_kernel,
        out_shape=out_shape,
        grid=grid,
        in_specs=in_specs,
        out_specs=out_specs,
        scratch_shapes=scratch_shapes,
        compiler_params=pltpu.CompilerParams(
            dimension_semantics=("parallel",),
            vmem_limit_bytes=64 * 1024 * 1024),
    )(x_tm, len_col,
      p["wi_f"], p["wh_f"], p["bih_f"], p["bhh_f"],
      p["wi_b"], p["wh_b"], p["bih_b"], p["bhh_b"],
      p["aw"], p["ab"], p["ctx"])
    return vec[:N], alpha[:N]


# ----------------------------------------------------------------------------
# HAN forward (glue in plain JAX, heavy lifting in the Pallas kernel above).
# ----------------------------------------------------------------------------
def han_forward(documents, params):
    B, S, W = documents.shape
    word_lengths = (documents != 0).sum(axis=2)                 # (B, S)
    doc_lengths = (word_lengths != 0).sum(axis=1)               # (B,)
    docs_flat = documents.reshape(B * S, W)
    word_len_flat = jnp.maximum(word_lengths.reshape(-1), 1)    # clamp(min=1)

    # TODO(synk): embedding lookup is a data-dependent gather; kept in XLA glue.
    embedded = jnp.take(params["embedding"], docs_flat, axis=0)  # (B*S, W, E)

    # ---- word-level encoder (Pallas) ----
    x_w = jnp.transpose(embedded, (1, 0, 2)).astype(jnp.float32)   # (W, B*S, E)
    sentence_vectors, alpha_w = bi_gru_attention(
        x_w, word_len_flat, params["word_enc"])                    # (B*S, 2Hw), (B*S, W)
    word_attn = alpha_w[:, :, None]                                # (B*S, W, 1)

    # ---- sentence-level encoder (Pallas) ----
    hw2 = sentence_vectors.shape[-1]
    x_s = jnp.transpose(sentence_vectors.reshape(B, S, hw2), (1, 0, 2))  # (S, B, 2Hw)
    doc_vector, alpha_s = bi_gru_attention(
        x_s, doc_lengths, params["sent_enc"])                      # (B, 2Hs), (B, S)
    sent_attn = alpha_s[:, :, None]                                # (B, S, 1)

    # Final classifier: a (B, 2Hs)x(2Hs, C) matmul — left to XLA on purpose
    # (a Pallas launch would cost more than the op itself).
    logits = jnp.dot(doc_vector, params["cls_w"]) + params["cls_b"]
    return logits, word_attn, sent_attn


# ----------------------------------------------------------------------------
# Deterministic parameter initialization (synthetic, matches module shapes;
# GRU gate weights stored fused as [r | z | n] column blocks, attention_fc
# stored as a single (2H, A) weight).
# ----------------------------------------------------------------------------
def _enc_params(key, D, H, A):
    ks = jax.random.split(key, 11)
    f = lambda k, s: (0.1 * jax.random.normal(k, s)).astype(jnp.float32)
    return {
        "wi_f": f(ks[0], (D, 3 * H)), "wh_f": f(ks[1], (H, 3 * H)),
        "bih_f": f(ks[2], (1, 3 * H)), "bhh_f": f(ks[3], (1, 3 * H)),
        "wi_b": f(ks[4], (D, 3 * H)), "wh_b": f(ks[5], (H, 3 * H)),
        "bih_b": f(ks[6], (1, 3 * H)), "bhh_b": f(ks[7], (1, 3 * H)),
        "aw": f(ks[8], (2 * H, A)), "ab": f(ks[9], (1, A)),
        "ctx": f(ks[10], (1, A)),
    }


def init_han_params(key, V, E, Hw, Hs, Aw, As, C):
    k_emb, k_w, k_s, k_cw, k_cb = jax.random.split(key, 5)
    f = lambda k, s: (0.1 * jax.random.normal(k, s)).astype(jnp.float32)
    return {
        "embedding": f(k_emb, (V, E)),
        "word_enc": _enc_params(k_w, E, Hw, Aw),
        "sent_enc": _enc_params(k_s, 2 * Hw, Hs, As),
        "cls_w": f(k_cw, (2 * Hs, C)),
        "cls_b": f(k_cb, (1, C)),
    }


if __name__ == "__main__":
    B, S, W = 2, 4, 8          # batch, max_sents, max_words
    V, E = 50, 32              # vocab_size, embedding_dim
    Hw = Hs = 16               # word / sentence hidden sizes
    Aw = As = 16               # word / sentence attention sizes
    C = 5                      # num_classes

    key = jax.random.PRNGKey(0)
    k_tok, k_par = jax.random.split(key)

    tokens = jax.random.randint(k_tok, (B, S, W), 1, V)
    # trailing padding (token 0) per sentence and per document
    word_lens = jnp.array([[8, 5, 3, 0], [6, 8, 0, 0]], dtype=jnp.int32)
    wmask = jnp.arange(W)[None, None, :] < word_lens[:, :, None]
    documents = jnp.where(wmask, tokens, 0).astype(jnp.int32)

    params = init_han_params(k_par, V, E, Hw, Hs, Aw, As, C)

    logits, word_attn, sent_attn = jax.jit(han_forward)(documents, params)
    jax.block_until_ready((logits, word_attn, sent_attn))

    assert logits.shape == (B, C)
    assert word_attn.shape == (B * S, W, 1)
    assert sent_attn.shape == (B, S, 1)
    assert bool(jnp.all(jnp.isfinite(logits)))
    assert bool(jnp.all(jnp.isfinite(word_attn)))
    assert bool(jnp.all(jnp.isfinite(sent_attn)))
    print("KERNEL_OK")
</pallas_src>

<mosaic_0001>
module attributes {stable_mosaic.version = 11 : i64} {
  func.func @_encoder_kernel(%arg0: i32, %arg1: memref<4x8x32xf32, #tpu.memory_space<vmem>>, %arg2: memref<8x1xf32, #tpu.memory_space<vmem>>, %arg3: memref<32x48xf32, #tpu.memory_space<vmem>>, %arg4: memref<16x48xf32, #tpu.memory_space<vmem>>, %arg5: memref<1x48xf32, #tpu.memory_space<vmem>>, %arg6: memref<1x48xf32, #tpu.memory_space<vmem>>, %arg7: memref<32x48xf32, #tpu.memory_space<vmem>>, %arg8: memref<16x48xf32, #tpu.memory_space<vmem>>, %arg9: memref<1x48xf32, #tpu.memory_space<vmem>>, %arg10: memref<1x48xf32, #tpu.memory_space<vmem>>, %arg11: memref<32x16xf32, #tpu.memory_space<vmem>>, %arg12: memref<1x16xf32, #tpu.memory_space<vmem>>, %arg13: memref<1x16xf32, #tpu.memory_space<vmem>>, %arg14: memref<8x32xf32, #tpu.memory_space<vmem>>, %arg15: memref<8x4xf32, #tpu.memory_space<vmem>>, %arg16: memref<32x48xf32, #tpu.memory_space<vmem>>, %arg17: memref<32x32xf32, #tpu.memory_space<vmem>>) attributes {dimension_semantics = [#tpu.dimension_semantics<parallel>], iteration_bounds = array<i64: 1>, scalar_prefetch = 0 : i64, scratch_operands = 2 : i64, tpu.core_type = #tpu.core_type<tc>, window_params = [{transform_indices = @transform_0, window_bounds = array<i64: 4, 8, 32>}, {transform_indices = @transform_1, window_bounds = array<i64: 8, 1>}, {pipeline_mode = #tpu.pipeline_mode<synchronous>, transform_indices = @transform_2, window_bounds = array<i64: 32, 48>}, {pipeline_mode = #tpu.pipeline_mode<synchronous>, transform_indices = @transform_3, window_bounds = array<i64: 16, 48>}, {pipeline_mode = #tpu.pipeline_mode<synchronous>, transform_indices = @transform_4, window_bounds = array<i64: 1, 48>}, {pipeline_mode = #tpu.pipeline_mode<synchronous>, transform_indices = @transform_5, window_bounds = array<i64: 1, 48>}, {pipeline_mode = #tpu.pipeline_mode<synchronous>, transform_indices = @transform_6, window_bounds = array<i64: 32, 48>}, {pipeline_mode = #tpu.pipeline_mode<synchronous>, transform_indices = @transform_7, window_bounds = array<i64: 16, 48>}, {pipeline_mode = #tpu.pipeline_mode<synchronous>, transform_indices = @transform_8, window_bounds = array<i64: 1, 48>}, {pipeline_mode = #tpu.pipeline_mode<synchronous>, transform_indices = @transform_9, window_bounds = array<i64: 1, 48>}, {pipeline_mode = #tpu.pipeline_mode<synchronous>, transform_indices = @transform_10, window_bounds = array<i64: 32, 16>}, {pipeline_mode = #tpu.pipeline_mode<synchronous>, transform_indices = @transform_11, window_bounds = array<i64: 1, 16>}, {pipeline_mode = #tpu.pipeline_mode<synchronous>, transform_indices = @transform_12, window_bounds = array<i64: 1, 16>}, {transform_indices = @transform_13, window_bounds = array<i64: 8, 32>}, {transform_indices = @transform_14, window_bounds = array<i64: 8, 4>}]} {
    %c0 = arith.constant 0 : index
    %c0_0 = arith.constant 0 : index
    %0 = vector.load %arg2[%c0, %c0_0] : memref<8x1xf32, #tpu.memory_space<vmem>>, vector<8x1xf32>
    %c0_1 = arith.constant 0 : index
    %c0_2 = arith.constant 0 : index
    %c0_3 = arith.constant 0 : index
    %1 = vector.load %arg1[%c0_1, %c0_2, %c0_3] : memref<4x8x32xf32, #tpu.memory_space<vmem>>, vector<4x8x32xf32>
    %2 = vector.shape_cast %1 : vector<4x8x32xf32> to vector<32x32xf32>
    %c0_4 = arith.constant 0 : index
    %c0_5 = arith.constant 0 : index
    %3 = vector.load %arg3[%c0_4, %c0_5] : memref<32x48xf32, #tpu.memory_space<vmem>>, vector<32x48xf32>
    %cst = arith.constant dense<0.000000e+00> : vector<32x48xf32>
    %4 = tpu.matmul %2, %3, %cst {dimension_numbers = #tpu.dot_dimension_numbers<[1], [0], [0], [1], [0, 0, 1, 1], [], []>} : vector<32x32xf32>, vector<32x48xf32>, vector<32x48xf32> -> vector<32x48xf32>
    %c0_6 = arith.constant 0 : index
    %c0_7 = arith.constant 0 : index
    %5 = vector.load %arg5[%c0_6, %c0_7] : memref<1x48xf32, #tpu.memory_space<vmem>>, vector<1x48xf32>
    %6 = vector.broadcast %5 : vector<1x48xf32> to vector<32x48xf32>
    %7 = arith.addf %4, %6 : vector<32x48xf32>
    %c0_8 = arith.constant 0 : index
    %c0_9 = arith.constant 0 : index
    %8 = vector.load %arg16[%c0_8, %c0_9] : memref<32x48xf32, #tpu.memory_space<vmem>>, vector<32x48xf32>
    tpu.vector_store %arg16[%c0_8, %c0_9], %7 {strides = array<i32>} : memref<32x48xf32, #tpu.memory_space<vmem>>, vector<32x48xf32>,
    %c0_10 = arith.constant 0 : index
    %c0_11 = arith.constant 0 : index
    %9 = vector.load %arg4[%c0_10, %c0_11] : memref<16x48xf32, #tpu.memory_space<vmem>>, vector<16x48xf32>
    %c0_12 = arith.constant 0 : index
    %c0_13 = arith.constant 0 : index
    %10 = vector.load %arg6[%c0_12, %c0_13] : memref<1x48xf32, #tpu.memory_space<vmem>>, vector<1x48xf32>
    %11 = vector.shape_cast %10 : vector<1x48xf32> to vector<1x48xf32>
    %12 = vector.broadcast %11 : vector<1x48xf32> to vector<8x48xf32>
    %cst_14 = arith.constant 0.000000e+00 : f32
    %13 = vector.broadcast %cst_14 : f32 to vector<8x16xf32>
    %c0_i32 = arith.constant 0 : i32
    %c8_i32 = arith.constant 8 : i32
    %14 = arith.muli %c0_i32, %c8_i32 : i32
    %15 = tpu.assume_multiple %14, 8 : i32
    %16 = arith.index_cast %15 : i32 to index
    %c0_15 = arith.constant 0 : index
    %17 = vector.load %arg16[%16, %c0_15] : memref<32x48xf32, #tpu.memory_space<vmem>>, vector<8x48xf32>
    %cst_16 = arith.constant dense<0.000000e+00> : vector<8x48xf32>
    %18 = tpu.matmul %13, %9, %cst_16 {dimension_numbers = #tpu.dot_dimension_numbers<[1], [0], [0], [1], [0, 0, 1, 1], [], []>} : vector<8x16xf32>, vector<16x48xf32>, vector<8x48xf32> -> vector<8x48xf32>
    %19 = arith.addf %18, %12 : vector<8x48xf32>
    %20 = vector.extract_strided_slice %17 {offsets = [0, 0], sizes = [8, 16], strides = [1, 1]} : vector<8x48xf32> to vector<8x16xf32>
    %21 = vector.extract_strided_slice %19 {offsets = [0, 0], sizes = [8, 16], strides = [1, 1]} : vector<8x48xf32> to vector<8x16xf32>
    %22 = arith.addf %20, %21 : vector<8x16xf32>
    %23 = arith.negf %22 : vector<8x16xf32>
    %24 = math.exp %23 : vector<8x16xf32>
    %cst_17 = arith.constant 1.000000e+00 : f32
    %25 = vector.broadcast %cst_17 : f32 to vector<8x16xf32>
    %26 = arith.addf %25, %24 : vector<8x16xf32>
    %27 = arith.divf %25, %26 : vector<8x16xf32>
    %28 = vector.extract_strided_slice %17 {offsets = [0, 16], sizes = [8, 16], strides = [1, 1]} : vector<8x48xf32> to vector<8x16xf32>
    %29 = vector.extract_strided_slice %19 {offsets = [0, 16], sizes = [8, 16], strides = [1, 1]} : vector<8x48xf32> to vector<8x16xf32>
    %30 = arith.addf %28, %29 : vector<8x16xf32>
    %31 = arith.negf %30 : vector<8x16xf32>
    %32 = math.exp %31 : vector<8x16xf32>
    %cst_18 = arith.constant 1.000000e+00 : f32
    %33 = vector.broadcast %cst_18 : f32 to vector<8x16xf32>
    %34 = arith.addf %33, %32 : vector<8x16xf32>
    %35 = arith.divf %33, %34 : vector<8x16xf32>
    %36 = vector.extract_strided_slice %17 {offsets = [0, 32], sizes = [8, 16], strides = [1, 1]} : vector<8x48xf32> to vector<8x16xf32>
    %37 = vector.extract_strided_slice %19 {offsets = [0, 32], sizes = [8, 16], strides = [1, 1]} : vector<8x48xf32> to vector<8x16xf32>
    %38 = arith.mulf %27, %37 : vector<8x16xf32>
    %39 = arith.addf %36, %38 : vector<8x16xf32>
    %40 = math.tanh %39 : vector<8x16xf32>
    %cst_19 = arith.constant 1.000000e+00 : f32
    %41 = vector.broadcast %cst_19 : f32 to vector<8x16xf32>
    %42 = arith.subf %41, %35 : vector<8x16xf32>
    %43 = arith.mulf %42, %40 : vector<8x16xf32>
    %44 = arith.mulf %35, %13 : vector<8x16xf32>
    %45 = arith.addf %43, %44 : vector<8x16xf32>
    %46 = arith.sitofp %c0_i32 : i32 to f32
    %47 = vector.broadcast %46 : f32 to vector<8x1xf32>
    %48 = arith.cmpf ogt, %0, %47 : vector<8x1xf32>
    %49 = arith.extui %48 : vector<8x1xi1> to vector<8x1xi32>
    %50 = arith.sitofp %49 : vector<8x1xi32> to vector<8x1xf32>
    %51 = vector.broadcast %50 : vector<8x1xf32> to vector<8x16xf32>
    %52 = arith.mulf %51, %45 : vector<8x16xf32>
    %53 = arith.index_cast %15 : i32 to index
    %c0_20 = arith.constant 0 : index
    %54 = vector.load %arg17[%53, %c0_20] : memref<32x32xf32, #tpu.memory_space<vmem>>, vector<8x16xf32>
    tpu.vector_store %arg17[%53, %c0_20], %52 {strides = array<i32>} : memref<32x32xf32, #tpu.memory_space<vmem>>, vector<8x16xf32>,
    %55 = vector.broadcast %50 : vector<8x1xf32> to vector<8x16xf32>
    %56 = arith.mulf %55, %45 : vector<8x16xf32>
    %cst_21 = arith.constant 1.000000e+00 : f32
    %57 = vector.broadcast %cst_21 : f32 to vector<8x1xf32>
    %58 = arith.subf %57, %50 : vector<8x1xf32>
    %59 = vector.broadcast %58 : vector<8x1xf32> to vector<8x16xf32>
    %60 = arith.mulf %59, %13 : vector<8x16xf32>
    %61 = arith.addf %56, %60 : vector<8x16xf32>
    %c1_i32 = arith.constant 1 : i32
    %c8_i32_22 = arith.constant 8 : i32
    %62 = arith.muli %c1_i32, %c8_i32_22 : i32
    %63 = tpu.assume_multiple %62, 8 : i32
    %64 = arith.index_cast %63 : i32 to index
    %c0_23 = arith.constant 0 : index
    %65 = vector.load %arg16[%64, %c0_23] : memref<32x48xf32, #tpu.memory_space<vmem>>, vector<8x48xf32>
    %cst_24 = arith.constant dense<0.000000e+00> : vector<8x48xf32>
    %66 = tpu.matmul %61, %9, %cst_24 {dimension_numbers = #tpu.dot_dimension_numbers<[1], [0], [0], [1], [0, 0, 1, 1], [], []>} : vector<8x16xf32>, vector<16x48xf32>, vector<8x48xf32> -> vector<8x48xf32>
    %67 = arith.addf %66, %12 : vector<8x48xf32>
    %68 = vector.extract_strided_slice %65 {offsets = [0, 0], sizes = [8, 16], strides = [1, 1]} : vector<8x48xf32> to vector<8x16xf32>
    %69 = vector.extract_strided_slice %67 {offsets = [0, 0], sizes = [8, 16], strides = [1, 1]} : vector<8x48xf32> to vector<8x16xf32>
    %70 = arith.addf %68, %69 : vector<8x16xf32>
    %71 = arith.negf %70 : vector<8x16xf32>
    %72 = math.exp %71 : vector<8x16xf32>
    %cst_25 = arith.constant 1.000000e+00 : f32
    %73 = vector.broadcast %cst_25 : f32 to vector<8x16xf32>
    %74 = arith.addf %73, %72 : vector<8x16xf32>
    %75 = arith.divf %73, %74 : vector<8x16xf32>
    %76 = vector.extract_strided_slice %65 {offsets = [0, 16], sizes = [8, 16], strides = [1, 1]} : vector<8x48xf32> to vector<8x16xf32>
    %77 = vector.extract_strided_slice %67 {offsets = [0, 16], sizes = [8, 16], strides = [1, 1]} : vector<8x48xf32> to vector<8x16xf32>
    %78 = arith.addf %76, %77 : vector<8x16xf32>
    %79 = arith.negf %78 : vector<8x16xf32>
    %80 = math.exp %79 : vector<8x16xf32>
    %cst_26 = arith.constant 1.000000e+00 : f32
    %81 = vector.broadcast %cst_26 : f32 to vector<8x16xf32>
    %82 = arith.addf %81, %80 : vector<8x16xf32>
    %83 = arith.divf %81, %82 : vector<8x16xf32>
    %84 = vector.extract_strided_slice %65 {offsets = [0, 32], sizes = [8, 16], strides = [1, 1]} : vector<8x48xf32> to vector<8x16xf32>
    %85 = vector.extract_strided_slice %67 {offsets = [0, 32], sizes = [8, 16], strides = [1, 1]} : vector<8x48xf32> to vector<8x16xf32>
    %86 = arith.mulf %75, %85 : vector<8x16xf32>
    %87 = arith.addf %84, %86 : vector<8x16xf32>
    %88 = math.tanh %87 : vector<8x16xf32>
    %cst_27 = arith.constant 1.000000e+00 : f32
    %89 = vector.broadcast %cst_27 : f32 to vector<8x16xf32>
    %90 = arith.subf %89, %83 : vector<8x16xf32>
    %91 = arith.mulf %90, %88 : vector<8x16xf32>
    %92 = arith.mulf %83, %61 : vector<8x16xf32>
    %93 = arith.addf %91, %92 : vector<8x16xf32>
    %94 = arith.sitofp %c1_i32 : i32 to f32
    %95 = vector.broadcast %94 : f32 to vector<8x1xf32>
    %96 = arith.cmpf ogt, %0, %95 : vector<8x1xf32>
    %97 = arith.extui %96 : vector<8x1xi1> to vector<8x1xi32>
    %98 = arith.sitofp %97 : vector<8x1xi32> to vector<8x1xf32>
    %99 = vector.broadcast %98 : vector<8x1xf32> to vector<8x16xf32>
    %100 = arith.mulf %99, %93 : vector<8x16xf32>
    %101 = arith.index_cast %63 : i32 to index
    %c0_28 = arith.constant 0 : index
    %102 = vector.load %arg17[%101, %c0_28] : memref<32x32xf32, #tpu.memory_space<vmem>>, vector<8x16xf32>
    tpu.vector_store %arg17[%101, %c0_28], %100 {strides = array<i32>} : memref<32x32xf32, #tpu.memory_space<vmem>>, vector<8x16xf32>,
    %103 = vector.broadcast %98 : vector<8x1xf32> to vector<8x16xf32>
    %104 = arith.mulf %103, %93 : vector<8x16xf32>
    %cst_29 = arith.constant 1.000000e+00 : f32
    %105 = vector.broadcast %cst_29 : f32 to vector<8x1xf32>
    %106 = arith.subf %105, %98 : vector<8x1xf32>
    %107 = vector.broadcast %106 : vector<8x1xf32> to vector<8x16xf32>
    %108 = arith.mulf %107, %61 : vector<8x16xf32>
    %109 = arith.addf %104, %108 : vector<8x16xf32>
    %c2_i32 = arith.constant 2 : i32
    %c8_i32_30 = arith.constant 8 : i32
    %110 = arith.muli %c2_i32, %c8_i32_30 : i32
    %111 = tpu.assume_multiple %110, 8 : i32
    %112 = arith.index_cast %111 : i32 to index
    %c0_31 = arith.constant 0 : index
    %113 = vector.load %arg16[%112, %c0_31] : memref<32x48xf32, #tpu.memory_space<vmem>>, vector<8x48xf32>
    %cst_32 = arith.constant dense<0.000000e+00> : vector<8x48xf32>
    %114 = tpu.matmul %109, %9, %cst_32 {dimension_numbers = #tpu.dot_dimension_numbers<[1], [0], [0], [1], [0, 0, 1, 1], [], []>} : vector<8x16xf32>, vector<16x48xf32>, vector<8x48xf32> -> vector<8x48xf32>
    %115 = arith.addf %114, %12 : vector<8x48xf32>
    %116 = vector.extract_strided_slice %113 {offsets = [0, 0], sizes = [8, 16], strides = [1, 1]} : vector<8x48xf32> to vector<8x16xf32>
    %117 = vector.extract_strided_slice %115 {offsets = [0, 0], sizes = [8, 16], strides = [1, 1]} : vector<8x48xf32> to vector<8x16xf32>
    %118 = arith.addf %116, %117 : vector<8x16xf32>
    %119 = arith.negf %118 : vector<8x16xf32>
    %120 = math.exp %119 : vector<8x16xf32>
    %cst_33 = arith.constant 1.000000e+00 : f32
    %121 = vector.broadcast %cst_33 : f32 to vector<8x16xf32>
    %122 = arith.addf %121, %120 : vector<8x16xf32>
    %123 = arith.divf %121, %122 : vector<8x16xf32>
    %124 = vector.extract_strided_slice %113 {offsets = [0, 16], sizes = [8, 16], strides = [1, 1]} : vector<8x48xf32> to vector<8x16xf32>
    %125 = vector.extract_strided_slice %115 {offsets = [0, 16], sizes = [8, 16], strides = [1, 1]} : vector<8x48xf32> to vector<8x16xf32>
    %126 = arith.addf %124, %125 : vector<8x16xf32>
    %127 = arith.negf %126 : vector<8x16xf32>
    %128 = math.exp %127 : vector<8x16xf32>
    %cst_34 = arith.constant 1.000000e+00 : f32
    %129 = vector.broadcast %cst_34 : f32 to vector<8x16xf32>
    %130 = arith.addf %129, %128 : vector<8x16xf32>
    %131 = arith.divf %129, %130 : vector<8x16xf32>
    %132 = vector.extract_strided_slice %113 {offsets = [0, 32], sizes = [8, 16], strides = [1, 1]} : vector<8x48xf32> to vector<8x16xf32>
    %133 = vector.extract_strided_slice %115 {offsets = [0, 32], sizes = [8, 16], strides = [1, 1]} : vector<8x48xf32> to vector<8x16xf32>
    %134 = arith.mulf %123, %133 : vector<8x16xf32>
    %135 = arith.addf %132, %134 : vector<8x16xf32>
    %136 = math.tanh %135 : vector<8x16xf32>
    %cst_35 = arith.constant 1.000000e+00 : f32
    %137 = vector.broadcast %cst_35 : f32 to vector<8x16xf32>
    %138 = arith.subf %137, %131 : vector<8x16xf32>
    %139 = arith.mulf %138, %136 : vector<8x16xf32>
    %140 = arith.mulf %131, %109 : vector<8x16xf32>
    %141 = arith.addf %139, %140 : vector<8x16xf32>
    %142 = arith.sitofp %c2_i32 : i32 to f32
    %143 = vector.broadcast %142 : f32 to vector<8x1xf32>
    %144 = arith.cmpf ogt, %0, %143 : vector<8x1xf32>
    %145 = arith.extui %144 : vector<8x1xi1> to vector<8x1xi32>
    %146 = arith.sitofp %145 : vector<8x1xi32> to vector<8x1xf32>
    %147 = vector.broadcast %146 : vector<8x1xf32> to vector<8x16xf32>
    %148 = arith.mulf %147, %141 : vector<8x16xf32>
    %149 = arith.index_cast %111 : i32 to index
    %c0_36 = arith.constant 0 : index
    %150 = vector.load %arg17[%149, %c0_36] : memref<32x32xf32, #tpu.memory_space<vmem>>, vector<8x16xf32>
    tpu.vector_store %arg17[%149, %c0_36], %148 {strides = array<i32>} : memref<32x32xf32, #tpu.memory_space<vmem>>, vector<8x16xf32>,
    %151 = vector.broadcast %146 : vector<8x1xf32> to vector<8x16xf32>
    %152 = arith.mulf %151, %141 : vector<8x16xf32>
    %cst_37 = arith.constant 1.000000e+00 : f32
    %153 = vector.broadcast %cst_37 : f32 to vector<8x1xf32>
    %154 = arith.subf %153, %146 : vector<8x1xf32>
    %155 = vector.broadcast %154 : vector<8x1xf32> to vector<8x16xf32>
    %156 = arith.mulf %155, %109 : vector<8x16xf32>
    %157 = arith.addf %152, %156 : vector<8x16xf32>
    %c3_i32 = arith.constant 3 : i32
    %c8_i32_38 = arith.constant 8 : i32
    %158 = arith.muli %c3_i32, %c8_i32_38 : i32
    %159 = tpu.assume_multiple %158, 8 : i32
    %160 = arith.index_cast %159 : i32 to index
    %c0_39 = arith.constant 0 : index
    %161 = vector.load %arg16[%160, %c0_39] : memref<32x48xf32, #tpu.memory_space<vmem>>, vector<8x48xf32>
    %cst_40 = arith.constant dense<0.000000e+00> : vector<8x48xf32>
    %162 = tpu.matmul %157, %9, %cst_40 {dimension_numbers = #tpu.dot_dimension_numbers<[1], [0], [0], [1], [0, 0, 1, 1], [], []>} : vector<8x16xf32>, vector<16x48xf32>, vector<8x48xf32> -> vector<8x48xf32>
    %163 = arith.addf %162, %12 : vector<8x48xf32>
    %164 = vector.extract_strided_slice %161 {offsets = [0, 0], sizes = [8, 16], strides = [1, 1]} : vector<8x48xf32> to vector<8x16xf32>
    %165 = vector.extract_strided_slice %163 {offsets = [0, 0], sizes = [8, 16], strides = [1, 1]} : vector<8x48xf32> to vector<8x16xf32>
    %166 = arith.addf %164, %165 : vector<8x16xf32>
    %167 = arith.negf %166 : vector<8x16xf32>
    %168 = math.exp %167 : vector<8x16xf32>
    %cst_41 = arith.constant 1.000000e+00 : f32
    %169 = vector.broadcast %cst_41 : f32 to vector<8x16xf32>
    %170 = arith.addf %169, %168 : vector<8x16xf32>
    %171 = arith.divf %169, %170 : vector<8x16xf32>
    %172 = vector.extract_strided_slice %161 {offsets = [0, 16], sizes = [8, 16], strides = [1, 1]} : vector<8x48xf32> to vector<8x16xf32>
    %173 = vector.extract_strided_slice %163 {offsets = [0, 16], sizes = [8, 16], strides = [1, 1]} : vector<8x48xf32> to vector<8x16xf32>
    %174 = arith.addf %172, %173 : vector<8x16xf32>
    %175 = arith.negf %174 : vector<8x16xf32>
    %176 = math.exp %175 : vector<8x16xf32>
    %cst_42 = arith.constant 1.000000e+00 : f32
    %177 = vector.broadcast %cst_42 : f32 to vector<8x16xf32>
    %178 = arith.addf %177, %176 : vector<8x16xf32>
    %179 = arith.divf %177, %178 : vector<8x16xf32>
    %180 = vector.extract_strided_slice %161 {offsets = [0, 32], sizes = [8, 16], strides = [1, 1]} : vector<8x48xf32> to vector<8x16xf32>
    %181 = vector.extract_strided_slice %163 {offsets = [0, 32], sizes = [8, 16], strides = [1, 1]} : vector<8x48xf32> to vector<8x16xf32>
    %182 = arith.mulf %171, %181 : vector<8x16xf32>
    %183 = arith.addf %180, %182 : vector<8x16xf32>
    %184 = math.tanh %183 : vector<8x16xf32>
    %cst_43 = arith.constant 1.000000e+00 : f32
    %185 = vector.broadcast %cst_43 : f32 to vector<8x16xf32>
    %186 = arith.subf %185, %179 : vector<8x16xf32>
    %187 = arith.mulf %186, %184 : vector<8x16xf32>
    %188 = arith.mulf %179, %157 : vector<8x16xf32>
    %189 = arith.addf %187, %188 : vector<8x16xf32>
    %190 = arith.sitofp %c3_i32 : i32 to f32
    %191 = vector.broadcast %190 : f32 to vector<8x1xf32>
    %192 = arith.cmpf ogt, %0, %191 : vector<8x1xf32>
    %193 = arith.extui %192 : vector<8x1xi1> to vector<8x1xi32>
    %194 = arith.sitofp %193 : vector<8x1xi32> to vector<8x1xf32>
    %195 = vector.broadcast %194 : vector<8x1xf32> to vector<8x16xf32>
    %196 = arith.mulf %195, %189 : vector<8x16xf32>
    %197 = arith.index_cast %159 : i32 to index
    %c0_44 = arith.constant 0 : index
    %198 = vector.load %arg17[%197, %c0_44] : memref<32x32xf32, #tpu.memory_space<vmem>>, vector<8x16xf32>
    tpu.vector_store %arg17[%197, %c0_44], %196 {strides = array<i32>} : memref<32x32xf32, #tpu.memory_space<vmem>>, vector<8x16xf32>,
    %199 = vector.broadcast %194 : vector<8x1xf32> to vector<8x16xf32>
    %200 = arith.mulf %199, %189 : vector<8x16xf32>
    %cst_45 = arith.constant 1.000000e+00 : f32
    %201 = vector.broadcast %cst_45 : f32 to vector<8x1xf32>
    %202 = arith.subf %201, %194 : vector<8x1xf32>
    %203 = vector.broadcast %202 : vector<8x1xf32> to vector<8x16xf32>
    %204 = arith.mulf %203, %157 : vector<8x16xf32>
    %205 = arith.addf %200, %204 : vector<8x16xf32>
    %c4_i32 = arith.constant 4 : i32
    %c0_46 = arith.constant 0 : index
    %c0_47 = arith.constant 0 : index
    %206 = vector.load %arg7[%c0_46, %c0_47] : memref<32x48xf32, #tpu.memory_space<vmem>>, vector<32x48xf32>
    %cst_48 = arith.constant dense<0.000000e+00> : vector<32x48xf32>
    %207 = tpu.matmul %2, %206, %cst_48 {dimension_numbers = #tpu.dot_dimension_numbers<[1], [0], [0], [1], [0, 0, 1, 1], [], []>} : vector<32x32xf32>, vector<32x48xf32>, vector<32x48xf32> -> vector<32x48xf32>
    %c0_49 = arith.constant 0 : index
    %c0_50 = arith.constant 0 : index
    %208 = vector.load %arg9[%c0_49, %c0_50] : memref<1x48xf32, #tpu.memory_space<vmem>>, vector<1x48xf32>
    %209 = vector.broadcast %208 : vector<1x48xf32> to vector<32x48xf32>
    %210 = arith.addf %207, %209 : vector<32x48xf32>
    %c0_51 = arith.constant 0 : index
    %c0_52 = arith.constant 0 : index
    %211 = vector.load %arg16[%c0_51, %c0_52] : memref<32x48xf32, #tpu.memory_space<vmem>>, vector<32x48xf32>
    tpu.vector_store %arg16[%c0_51, %c0_52], %210 {strides = array<i32>} : memref<32x48xf32, #tpu.memory_space<vmem>>, vector<32x48xf32>,
    %c0_53 = arith.constant 0 : index
    %c0_54 = arith.constant 0 : index
    %212 = vector.load %arg8[%c0_53, %c0_54] : memref<16x48xf32, #tpu.memory_space<vmem>>, vector<16x48xf32>
    %c0_55 = arith.constant 0 : index
    %c0_56 = arith.constant 0 : index
    %213 = vector.load %arg10[%c0_55, %c0_56] : memref<1x48xf32, #tpu.memory_space<vmem>>, vector<1x48xf32>
    %214 = vector.shape_cast %213 : vector<1x48xf32> to vector<1x48xf32>
    %215 = vector.broadcast %214 : vector<1x48xf32> to vector<8x48xf32>
    %cst_57 = arith.constant 0.000000e+00 : f32
    %216 = vector.broadcast %cst_57 : f32 to vector<8x16xf32>
    %c0_i32_58 = arith.constant 0 : i32
    %c3_i32_59 = arith.constant 3 : i32
    %217 = arith.subi %c3_i32_59, %c0_i32_58 : i32
    %c8_i32_60 = arith.constant 8 : i32
    %218 = arith.muli %217, %c8_i32_60 : i32
    %219 = tpu.assume_multiple %218, 8 : i32
    %220 = arith.index_cast %219 : i32 to index
    %c0_61 = arith.constant 0 : index
    %221 = vector.load %arg16[%220, %c0_61] : memref<32x48xf32, #tpu.memory_space<vmem>>, vector<8x48xf32>
    %cst_62 = arith.constant dense<0.000000e+00> : vector<8x48xf32>
    %222 = tpu.matmul %216, %212, %cst_62 {dimension_numbers = #tpu.dot_dimension_numbers<[1], [0], [0], [1], [0, 0, 1, 1], [], []>} : vector<8x16xf32>, vector<16x48xf32>, vector<8x48xf32> -> vector<8x48xf32>
    %223 = arith.addf %222, %215 : vector<8x48xf32>
    %224 = vector.extract_strided_slice %221 {offsets = [0, 0], sizes = [8, 16], strides = [1, 1]} : vector<8x48xf32> to vector<8x16xf32>
    %225 = vector.extract_strided_slice %223 {offsets = [0, 0], sizes = [8, 16], strides = [1, 1]} : vector<8x48xf32> to vector<8x16xf32>
    %226 = arith.addf %224, %225 : vector<8x16xf32>
    %227 = arith.negf %226 : vector<8x16xf32>
    %228 = math.exp %227 : vector<8x16xf32>
    %cst_63 = arith.constant 1.000000e+00 : f32
    %229 = vector.broadcast %cst_63 : f32 to vector<8x16xf32>
    %230 = arith.addf %229, %228 : vector<8x16xf32>
    %231 = arith.divf %229, %230 : vector<8x16xf32>
    %232 = vector.extract_strided_slice %221 {offsets = [0, 16], sizes = [8, 16], strides = [1, 1]} : vector<8x48xf32> to vector<8x16xf32>
    %233 = vector.extract_strided_slice %223 {offsets = [0, 16], sizes = [8, 16], strides = [1, 1]} : vector<8x48xf32> to vector<8x16xf32>
    %234 = arith.addf %232, %233 : vector<8x16xf32>
    %235 = arith.negf %234 : vector<8x16xf32>
    %236 = math.exp %235 : vector<8x16xf32>
    %cst_64 = arith.constant 1.000000e+00 : f32
    %237 = vector.broadcast %cst_64 : f32 to vector<8x16xf32>
    %238 = arith.addf %237, %236 : vector<8x16xf32>
    %239 = arith.divf %237, %238 : vector<8x16xf32>
    %240 = vector.extract_strided_slice %221 {offsets = [0, 32], sizes = [8, 16], strides = [1, 1]} : vector<8x48xf32> to vector<8x16xf32>
    %241 = vector.extract_strided_slice %223 {offsets = [0, 32], sizes = [8, 16], strides = [1, 1]} : vector<8x48xf32> to vector<8x16xf32>
    %242 = arith.mulf %231, %241 : vector<8x16xf32>
    %243 = arith.addf %240, %242 : vector<8x16xf32>
    %244 = math.tanh %243 : vector<8x16xf32>
    %cst_65 = arith.constant 1.000000e+00 : f32
    %245 = vector.broadcast %cst_65 : f32 to vector<8x16xf32>
    %246 = arith.subf %245, %239 : vector<8x16xf32>
    %247 = arith.mulf %246, %244 : vector<8x16xf32>
    %248 = arith.mulf %239, %216 : vector<8x16xf32>
    %249 = arith.addf %247, %248 : vector<8x16xf32>
    %250 = arith.sitofp %217 : i32 to f32
    %251 = vector.broadcast %250 : f32 to vector<8x1xf32>
    %252 = arith.cmpf ogt, %0, %251 : vector<8x1xf32>
    %253 = arith.extui %252 : vector<8x1xi1> to vector<8x1xi32>
    %254 = arith.sitofp %253 : vector<8x1xi32> to vector<8x1xf32>
    %255 = vector.broadcast %254 : vector<8x1xf32> to vector<8x16xf32>
    %256 = arith.mulf %255, %249 : vector<8x16xf32>
    %257 = arith.index_cast %219 : i32 to index
    %c16 = arith.constant 16 : index
    %258 = vector.load %arg17[%257, %c16] : memref<32x32xf32, #tpu.memory_space<vmem>>, vector<8x16xf32>
    tpu.vector_store %arg17[%257, %c16], %256 {strides = array<i32>} : memref<32x32xf32, #tpu.memory_space<vmem>>, vector<8x16xf32>,
    %259 = vector.broadcast %254 : vector<8x1xf32> to vector<8x16xf32>
    %260 = arith.mulf %259, %249 : vector<8x16xf32>
    %cst_66 = arith.constant 1.000000e+00 : f32
    %261 = vector.broadcast %cst_66 : f32 to vector<8x1xf32>
    %262 = arith.subf %261, %254 : vector<8x1xf32>
    %263 = vector.broadcast %262 : vector<8x1xf32> to vector<8x16xf32>
    %264 = arith.mulf %263, %216 : vector<8x16xf32>
    %265 = arith.addf %260, %264 : vector<8x16xf32>
    %c1_i32_67 = arith.constant 1 : i32
    %c3_i32_68 = arith.constant 3 : i32
    %266 = arith.subi %c3_i32_68, %c1_i32_67 : i32
    %c8_i32_69 = arith.constant 8 : i32
    %267 = arith.muli %266, %c8_i32_69 : i32
    %268 = tpu.assume_multiple %267, 8 : i32
    %269 = arith.index_cast %268 : i32 to index
    %c0_70 = arith.constant 0 : index
    %270 = vector.load %arg16[%269, %c0_70] : memref<32x48xf32, #tpu.memory_space<vmem>>, vector<8x48xf32>
    %cst_71 = arith.constant dense<0.000000e+00> : vector<8x48xf32>
    %271 = tpu.matmul %265, %212, %cst_71 {dimension_numbers = #tpu.dot_dimension_numbers<[1], [0], [0], [1], [0, 0, 1, 1], [], []>} : vector<8x16xf32>, vector<16x48xf32>, vector<8x48xf32> -> vector<8x48xf32>
    %272 = arith.addf %271, %215 : vector<8x48xf32>
    %273 = vector.extract_strided_slice %270 {offsets = [0, 0], sizes = [8, 16], strides = [1, 1]} : vector<8x48xf32> to vector<8x16xf32>
    %274 = vector.extract_strided_slice %272 {offsets = [0, 0], sizes = [8, 16], strides = [1, 1]} : vector<8x48xf32> to vector<8x16xf32>
    %275 = arith.addf %273, %274 : vector<8x16xf32>
    %276 = arith.negf %275 : vector<8x16xf32>
    %277 = math.exp %276 : vector<8x16xf32>
    %cst_72 = arith.constant 1.000000e+00 : f32
    %278 = vector.broadcast %cst_72 : f32 to vector<8x16xf32>
    %279 = arith.addf %278, %277 : vector<8x16xf32>
    %280 = arith.divf %278, %279 : vector<8x16xf32>
    %281 = vector.extract_strided_slice %270 {offsets = [0, 16], sizes = [8, 16], strides = [1, 1]} : vector<8x48xf32> to vector<8x16xf32>
    %282 = vector.extract_strided_slice %272 {offsets = [0, 16], sizes = [8, 16], strides = [1, 1]} : vector<8x48xf32> to vector<8x16xf32>
    %283 = arith.addf %281, %282 : vector<8x16xf32>
    %284 = arith.negf %283 : vector<8x16xf32>
    %285 = math.exp %284 : vector<8x16xf32>
    %cst_73 = arith.constant 1.000000e+00 : f32
    %286 = vector.broadcast %cst_73 : f32 to vector<8x16xf32>
    %287 = arith.addf %286, %285 : vector<8x16xf32>
    %288 = arith.divf %286, %287 : vector<8x16xf32>
    %289 = vector.extract_strided_slice %270 {offsets = [0, 32], sizes = [8, 16], strides = [1, 1]} : vector<8x48xf32> to vector<8x16xf32>
    %290 = vector.extract_strided_slice %272 {offsets = [0, 32], sizes = [8, 16], strides = [1, 1]} : vector<8x48xf32> to vector<8x16xf32>
    %291 = arith.mulf %280, %290 : vector<8x16xf32>
    %292 = arith.addf %289, %291 : vector<8x16xf32>
    %293 = math.tanh %292 : vector<8x16xf32>
    %cst_74 = arith.constant 1.000000e+00 : f32
    %294 = vector.broadcast %cst_74 : f32 to vector<8x16xf32>
    %295 = arith.subf %294, %288 : vector<8x16xf32>
    %296 = arith.mulf %295, %293 : vector<8x16xf32>
    %297 = arith.mulf %288, %265 : vector<8x16xf32>
    %298 = arith.addf %296, %297 : vector<8x16xf32>
    %299 = arith.sitofp %266 : i32 to f32
    %300 = vector.broadcast %299 : f32 to vector<8x1xf32>
    %301 = arith.cmpf ogt, %0, %300 : vector<8x1xf32>
    %302 = arith.extui %301 : vector<8x1xi1> to vector<8x1xi32>
    %303 = arith.sitofp %302 : vector<8x1xi32> to vector<8x1xf32>
    %304 = vector.broadcast %303 : vector<8x1xf32> to vector<8x16xf32>
    %305 = arith.mulf %304, %298 : vector<8x16xf32>
    %306 = arith.index_cast %268 : i32 to index
    %c16_75 = arith.constant 16 : index
    %307 = vector.load %arg17[%306, %c16_75] : memref<32x32xf32, #tpu.memory_space<vmem>>, vector<8x16xf32>
    tpu.vector_store %arg17[%306, %c16_75], %305 {strides = array<i32>} : memref<32x32xf32, #tpu.memory_space<vmem>>, vector<8x16xf32>,
    %308 = vector.broadcast %303 : vector<8x1xf32> to vector<8x16xf32>
    %309 = arith.mulf %308, %298 : vector<8x16xf32>
    %cst_76 = arith.constant 1.000000e+00 : f32
    %310 = vector.broadcast %cst_76 : f32 to vector<8x1xf32>
    %311 = arith.subf %310, %303 : vector<8x1xf32>
    %312 = vector.broadcast %311 : vector<8x1xf32> to vector<8x16xf32>
    %313 = arith.mulf %312, %265 : vector<8x16xf32>
    %314 = arith.addf %309, %313 : vector<8x16xf32>
    %c2_i32_77 = arith.constant 2 : i32
    %c3_i32_78 = arith.constant 3 : i32
    %315 = arith.subi %c3_i32_78, %c2_i32_77 : i32
    %c8_i32_79 = arith.constant 8 : i32
    %316 = arith.muli %315, %c8_i32_79 : i32
    %317 = tpu.assume_multiple %316, 8 : i32
    %318 = arith.index_cast %317 : i32 to index
    %c0_80 = arith.constant 0 : index
    %319 = vector.load %arg16[%318, %c0_80] : memref<32x48xf32, #tpu.memory_space<vmem>>, vector<8x48xf32>
    %cst_81 = arith.constant dense<0.000000e+00> : vector<8x48xf32>
    %320 = tpu.matmul %314, %212, %cst_81 {dimension_numbers = #tpu.dot_dimension_numbers<[1], [0], [0], [1], [0, 0, 1, 1], [], []>} : vector<8x16xf32>, vector<16x48xf32>, vector<8x48xf32> -> vector<8x48xf32>
    %321 = arith.addf %320, %215 : vector<8x48xf32>
    %322 = vector.extract_strided_slice %319 {offsets = [0, 0], sizes = [8, 16], strides = [1, 1]} : vector<8x48xf32> to vector<8x16xf32>
    %323 = vector.extract_strided_slice %321 {offsets = [0, 0], sizes = [8, 16], strides = [1, 1]} : vector<8x48xf32> to vector<8x16xf32>
    %324 = arith.addf %322, %323 : vector<8x16xf32>
    %325 = arith.negf %324 : vector<8x16xf32>
    %326 = math.exp %325 : vector<8x16xf32>
    %cst_82 = arith.constant 1.000000e+00 : f32
    %327 = vector.broadcast %cst_82 : f32 to vector<8x16xf32>
    %328 = arith.addf %327, %326 : vector<8x16xf32>
    %329 = arith.divf %327, %328 : vector<8x16xf32>
    %330 = vector.extract_strided_slice %319 {offsets = [0, 16], sizes = [8, 16], strides = [1, 1]} : vector<8x48xf32> to vector<8x16xf32>
    %331 = vector.extract_strided_slice %321 {offsets = [0, 16], sizes = [8, 16], strides = [1, 1]} : vector<8x48xf32> to vector<8x16xf32>
    %332 = arith.addf %330, %331 : vector<8x16xf32>
    %333 = arith.negf %332 : vector<8x16xf32>
    %334 = math.exp %333 : vector<8x16xf32>
    %cst_83 = arith.constant 1.000000e+00 : f32
    %335 = vector.broadcast %cst_83 : f32 to vector<8x16xf32>
    %336 = arith.addf %335, %334 : vector<8x16xf32>
    %337 = arith.divf %335, %336 : vector<8x16xf32>
    %338 = vector.extract_strided_slice %319 {offsets = [0, 32], sizes = [8, 16], strides = [1, 1]} : vector<8x48xf32> to vector<8x16xf32>
    %339 = vector.extract_strided_slice %321 {offsets = [0, 32], sizes = [8, 16], strides = [1, 1]} : vector<8x48xf32> to vector<8x16xf32>
    %340 = arith.mulf %329, %339 : vector<8x16xf32>
    %341 = arith.addf %338, %340 : vector<8x16xf32>
    %342 = math.tanh %341 : vector<8x16xf32>
    %cst_84 = arith.constant 1.000000e+00 : f32
    %343 = vector.broadcast %cst_84 : f32 to vector<8x16xf32>
    %344 = arith.subf %343, %337 : vector<8x16xf32>
    %345 = arith.mulf %344, %342 : vector<8x16xf32>
    %346 = arith.mulf %337, %314 : vector<8x16xf32>
    %347 = arith.addf %345, %346 : vector<8x16xf32>
    %348 = arith.sitofp %315 : i32 to f32
    %349 = vector.broadcast %348 : f32 to vector<8x1xf32>
    %350 = arith.cmpf ogt, %0, %349 : vector<8x1xf32>
    %351 = arith.extui %350 : vector<8x1xi1> to vector<8x1xi32>
    %352 = arith.sitofp %351 : vector<8x1xi32> to vector<8x1xf32>
    %353 = vector.broadcast %352 : vector<8x1xf32> to vector<8x16xf32>
    %354 = arith.mulf %353, %347 : vector<8x16xf32>
    %355 = arith.index_cast %317 : i32 to index
    %c16_85 = arith.constant 16 : index
    %356 = vector.load %arg17[%355, %c16_85] : memref<32x32xf32, #tpu.memory_space<vmem>>, vector<8x16xf32>
    tpu.vector_store %arg17[%355, %c16_85], %354 {strides = array<i32>} : memref<32x32xf32, #tpu.memory_space<vmem>>, vector<8x16xf32>,
    %357 = vector.broadcast %352 : vector<8x1xf32> to vector<8x16xf32>
    %358 = arith.mulf %357, %347 : vector<8x16xf32>
    %cst_86 = arith.constant 1.000000e+00 : f32
    %359 = vector.broadcast %cst_86 : f32 to vector<8x1xf32>
    %360 = arith.subf %359, %352 : vector<8x1xf32>
    %361 = vector.broadcast %360 : vector<8x1xf32> to vector<8x16xf32>
    %362 = arith.mulf %361, %314 : vector<8x16xf32>
    %363 = arith.addf %358, %362 : vector<8x16xf32>
    %c3_i32_87 = arith.constant 3 : i32
    %c3_i32_88 = arith.constant 3 : i32
    %364 = arith.subi %c3_i32_88, %c3_i32_87 : i32
    %c8_i32_89 = arith.constant 8 : i32
    %365 = arith.muli %364, %c8_i32_89 : i32
    %366 = tpu.assume_multiple %365, 8 : i32
    %367 = arith.index_cast %366 : i32 to index
    %c0_90 = arith.constant 0 : index
    %368 = vector.load %arg16[%367, %c0_90] : memref<32x48xf32, #tpu.memory_space<vmem>>, vector<8x48xf32>
    %cst_91 = arith.constant dense<0.000000e+00> : vector<8x48xf32>
    %369 = tpu.matmul %363, %212, %cst_91 {dimension_numbers = #tpu.dot_dimension_numbers<[1], [0], [0], [1], [0, 0, 1, 1], [], []>} : vector<8x16xf32>, vector<16x48xf32>, vector<8x48xf32> -> vector<8x48xf32>
    %370 = arith.addf %369, %215 : vector<8x48xf32>
    %371 = vector.extract_strided_slice %368 {offsets = [0, 0], sizes = [8, 16], strides = [1, 1]} : vector<8x48xf32> to vector<8x16xf32>
    %372 = vector.extract_strided_slice %370 {offsets = [0, 0], sizes = [8, 16], strides = [1, 1]} : vector<8x48xf32> to vector<8x16xf32>
    %373 = arith.addf %371, %372 : vector<8x16xf32>
    %374 = arith.negf %373 : vector<8x16xf32>
    %375 = math.exp %374 : vector<8x16xf32>
    %cst_92 = arith.constant 1.000000e+00 : f32
    %376 = vector.broadcast %cst_92 : f32 to vector<8x16xf32>
    %377 = arith.addf %376, %375 : vector<8x16xf32>
    %378 = arith.divf %376, %377 : vector<8x16xf32>
    %379 = vector.extract_strided_slice %368 {offsets = [0, 16], sizes = [8, 16], strides = [1, 1]} : vector<8x48xf32> to vector<8x16xf32>
    %380 = vector.extract_strided_slice %370 {offsets = [0, 16], sizes = [8, 16], strides = [1, 1]} : vector<8x48xf32> to vector<8x16xf32>
    %381 = arith.addf %379, %380 : vector<8x16xf32>
    %382 = arith.negf %381 : vector<8x16xf32>
    %383 = math.exp %382 : vector<8x16xf32>
    %cst_93 = arith.constant 1.000000e+00 : f32
    %384 = vector.broadcast %cst_93 : f32 to vector<8x16xf32>
    %385 = arith.addf %384, %383 : vector<8x16xf32>
    %386 = arith.divf %384, %385 : vector<8x16xf32>
    %387 = vector.extract_strided_slice %368 {offsets = [0, 32], sizes = [8, 16], strides = [1, 1]} : vector<8x48xf32> to vector<8x16xf32>
    %388 = vector.extract_strided_slice %370 {offsets = [0, 32], sizes = [8, 16], strides = [1, 1]} : vector<8x48xf32> to vector<8x16xf32>
    %389 = arith.mulf %378, %388 : vector<8x16xf32>
    %390 = arith.addf %387, %389 : vector<8x16xf32>
    %391 = math.tanh %390 : vector<8x16xf32>
    %cst_94 = arith.constant 1.000000e+00 : f32
    %392 = vector.broadcast %cst_94 : f32 to vector<8x16xf32>
    %393 = arith.subf %392, %386 : vector<8x16xf32>
    %394 = arith.mulf %393, %391 : vector<8x16xf32>
    %395 = arith.mulf %386, %363 : vector<8x16xf32>
    %396 = arith.addf %394, %395 : vector<8x16xf32>
    %397 = arith.sitofp %364 : i32 to f32
    %398 = vector.broadcast %397 : f32 to vector<8x1xf32>
    %399 = arith.cmpf ogt, %0, %398 : vector<8x1xf32>
    %400 = arith.extui %399 : vector<8x1xi1> to vector<8x1xi32>
    %401 = arith.sitofp %400 : vector<8x1xi32> to vector<8x1xf32>
    %402 = vector.broadcast %401 : vector<8x1xf32> to vector<8x16xf32>
    %403 = arith.mulf %402, %396 : vector<8x16xf32>
    %404 = arith.index_cast %366 : i32 to index
    %c16_95 = arith.constant 16 : index
    %405 = vector.load %arg17[%404, %c16_95] : memref<32x32xf32, #tpu.memory_space<vmem>>, vector<8x16xf32>
    tpu.vector_store %arg17[%404, %c16_95], %403 {strides = array<i32>} : memref<32x32xf32, #tpu.memory_space<vmem>>, vector<8x16xf32>,
    %406 = vector.broadcast %401 : vector<8x1xf32> to vector<8x16xf32>
    %407 = arith.mulf %406, %396 : vector<8x16xf32>
    %cst_96 = arith.constant 1.000000e+00 : f32
    %408 = vector.broadcast %cst_96 : f32 to vector<8x1xf32>
    %409 = arith.subf %408, %401 : vector<8x1xf32>
    %410 = vector.broadcast %409 : vector<8x1xf32> to vector<8x16xf32>
    %411 = arith.mulf %410, %363 : vector<8x16xf32>
    %412 = arith.addf %407, %411 : vector<8x16xf32>
    %c4_i32_97 = arith.constant 4 : i32
    %c0_98 = arith.constant 0 : index
    %c0_99 = arith.constant 0 : index
    %413 = vector.load %arg17[%c0_98, %c0_99] : memref<32x32xf32, #tpu.memory_space<vmem>>, vector<32x32xf32>
    %c0_100 = arith.constant 0 : index
    %c0_101 = arith.constant 0 : index
    %414 = vector.load %arg11[%c0_100, %c0_101] : memref<32x16xf32, #tpu.memory_space<vmem>>, vector<32x16xf32>
    %cst_102 = arith.constant dense<0.000000e+00> : vector<32x16xf32>
    %415 = tpu.matmul %413, %414, %cst_102 {dimension_numbers = #tpu.dot_dimension_numbers<[1], [0], [0], [1], [0, 0, 1, 1], [], []>} : vector<32x32xf32>, vector<32x16xf32>, vector<32x16xf32> -> vector<32x16xf32>
    %c0_103 = arith.constant 0 : index
    %c0_104 = arith.constant 0 : index
    %416 = vector.load %arg12[%c0_103, %c0_104] : memref<1x16xf32, #tpu.memory_space<vmem>>, vector<1x16xf32>
    %417 = vector.broadcast %416 : vector<1x16xf32> to vector<32x16xf32>
    %418 = arith.addf %415, %417 : vector<32x16xf32>
    %419 = math.tanh %418 : vector<32x16xf32>
    %c0_105 = arith.constant 0 : index
    %c0_106 = arith.constant 0 : index
    %420 = vector.load %arg13[%c0_105, %c0_106] : memref<1x16xf32, #tpu.memory_space<vmem>>, vector<1x16xf32>
    %421 = vector.extract_strided_slice %419 {offsets = [0, 0], sizes = [8, 16], strides = [1, 1]} : vector<32x16xf32> to vector<8x16xf32>
    %422 = vector.broadcast %420 : vector<1x16xf32> to vector<8x16xf32>
    %423 = arith.mulf %421, %422 : vector<8x16xf32>
    %cst_107 = arith.constant dense<0.000000e+00> : vector<8xf32>
    %424 = vector.multi_reduction <add>, %423, %cst_107 [1] : vector<8x16xf32> to vector<8xf32>
    %425 = vector.shape_cast %424 : vector<8xf32> to vector<8x1xf32>
    %c0_108 = arith.constant 0 : index
    %c0_109 = arith.constant 0 : index
    %426 = vector.load %arg15[%c0_108, %c0_109] : memref<8x4xf32, #tpu.memory_space<vmem>>, vector<8x1xf32>
    tpu.vector_store %arg15[%c0_108, %c0_109], %425 {strides = array<i32>} : memref<8x4xf32, #tpu.memory_space<vmem>>, vector<8x1xf32>,
    %427 = vector.extract_strided_slice %419 {offsets = [8, 0], sizes = [8, 16], strides = [1, 1]} : vector<32x16xf32> to vector<8x16xf32>
    %428 = vector.broadcast %420 : vector<1x16xf32> to vector<8x16xf32>
    %429 = arith.mulf %427, %428 : vector<8x16xf32>
    %cst_110 = arith.constant dense<0.000000e+00> : vector<8xf32>
    %430 = vector.multi_reduction <add>, %429, %cst_110 [1] : vector<8x16xf32> to vector<8xf32>
    %431 = vector.shape_cast %430 : vector<8xf32> to vector<8x1xf32>
    %c0_111 = arith.constant 0 : index
    %c1 = arith.constant 1 : index
    %432 = vector.load %arg15[%c0_111, %c1] : memref<8x4xf32, #tpu.memory_space<vmem>>, vector<8x1xf32>
    tpu.vector_store %arg15[%c0_111, %c1], %431 {strides = array<i32>} : memref<8x4xf32, #tpu.memory_space<vmem>>, vector<8x1xf32>,
    %433 = vector.extract_strided_slice %419 {offsets = [16, 0], sizes = [8, 16], strides = [1, 1]} : vector<32x16xf32> to vector<8x16xf32>
    %434 = vector.broadcast %420 : vector<1x16xf32> to vector<8x16xf32>
    %435 = arith.mulf %433, %434 : vector<8x16xf32>
    %cst_112 = arith.constant dense<0.000000e+00> : vector<8xf32>
    %436 = vector.multi_reduction <add>, %435, %cst_112 [1] : vector<8x16xf32> to vector<8xf32>
    %437 = vector.shape_cast %436 : vector<8xf32> to vector<8x1xf32>
    %c0_113 = arith.constant 0 : index
    %c2 = arith.constant 2 : index
    %438 = vector.load %arg15[%c0_113, %c2] : memref<8x4xf32, #tpu.memory_space<vmem>>, vector<8x1xf32>
    tpu.vector_store %arg15[%c0_113, %c2], %437 {strides = array<i32>} : memref<8x4xf32, #tpu.memory_space<vmem>>, vector<8x1xf32>,
    %439 = vector.extract_strided_slice %419 {offsets = [24, 0], sizes = [8, 16], strides = [1, 1]} : vector<32x16xf32> to vector<8x16xf32>
    %440 = vector.broadcast %420 : vector<1x16xf32> to vector<8x16xf32>
    %441 = arith.mulf %439, %440 : vector<8x16xf32>
    %cst_114 = arith.constant dense<0.000000e+00> : vector<8xf32>
    %442 = vector.multi_reduction <add>, %441, %cst_114 [1] : vector<8x16xf32> to vector<8xf32>
    %443 = vector.shape_cast %442 : vector<8xf32> to vector<8x1xf32>
    %c0_115 = arith.constant 0 : index
    %c3 = arith.constant 3 : index
    %444 = vector.load %arg15[%c0_115, %c3] : memref<8x4xf32, #tpu.memory_space<vmem>>, vector<8x1xf32>
    tpu.vector_store %arg15[%c0_115, %c3], %443 {strides = array<i32>} : memref<8x4xf32, #tpu.memory_space<vmem>>, vector<8x1xf32>,
    %c0_116 = arith.constant 0 : index
    %c0_117 = arith.constant 0 : index
    %445 = vector.load %arg15[%c0_116, %c0_117] : memref<8x4xf32, #tpu.memory_space<vmem>>, vector<8x4xf32>
    %446 = tpu.iota {dimensions = array<i32: 1>} : vector<8x4xi32>
    %447 = arith.sitofp %446 : vector<8x4xi32> to vector<8x4xf32>
    %448 = vector.broadcast %0 : vector<8x1xf32> to vector<8x4xf32>
    %449 = arith.cmpf olt, %447, %448 : vector<8x4xf32>
    %450 = arith.extui %449 : vector<8x4xi1> to vector<8x4xi32>
    %451 = arith.sitofp %450 : vector<8x4xi32> to vector<8x4xf32>
    %452 = arith.mulf %445, %451 : vector<8x4xf32>
    %cst_118 = arith.constant 1.000000e+00 : f32
    %453 = vector.broadcast %cst_118 : f32 to vector<8x4xf32>
    %454 = arith.subf %453, %451 : vector<8x4xf32>
    %cst_119 = arith.constant -1.000000e+20 : f32
    %455 = vector.broadcast %cst_119 : f32 to vector<8x4xf32>
    %456 = arith.mulf %454, %455 : vector<8x4xf32>
    %457 = arith.addf %452, %456 : vector<8x4xf32>
    %cst_120 = arith.constant dense<0xFF800000> : vector<8xf32>
    %458 = vector.multi_reduction <maximumf>, %457, %cst_120 [1] : vector<8x4xf32> to vector<8xf32>
    %459 = vector.shape_cast %458 : vector<8xf32> to vector<8x1xf32>
    %460 = vector.broadcast %459 : vector<8x1xf32> to vector<8x4xf32>
    %461 = arith.subf %457, %460 : vector<8x4xf32>
    %462 = math.exp %461 : vector<8x4xf32>
    %cst_121 = arith.constant dense<0.000000e+00> : vector<8xf32>
    %463 = vector.multi_reduction <add>, %462, %cst_121 [1] : vector<8x4xf32> to vector<8xf32>
    %464 = vector.shape_cast %463 : vector<8xf32> to vector<8x1xf32>
    %465 = vector.broadcast %464 : vector<8x1xf32> to vector<8x4xf32>
    %466 = arith.divf %462, %465 : vector<8x4xf32>
    %c0_122 = arith.constant 0 : index
    %c0_123 = arith.constant 0 : index
    %467 = vector.load %arg15[%c0_122, %c0_123] : memref<8x4xf32, #tpu.memory_space<vmem>>, vector<8x4xf32>
    tpu.vector_store %arg15[%c0_122, %c0_123], %466 {strides = array<i32>} : memref<8x4xf32, #tpu.memory_space<vmem>>, vector<8x4xf32>,
    %cst_124 = arith.constant 0.000000e+00 : f32
    %468 = vector.broadcast %cst_124 : f32 to vector<8x32xf32>
    %469 = vector.extract_strided_slice %466 {offsets = [0, 0], sizes = [8, 1], strides = [1, 1]} : vector<8x4xf32> to vector<8x1xf32>
    %470 = vector.extract_strided_slice %413 {offsets = [0, 0], sizes = [8, 32], strides = [1, 1]} : vector<32x32xf32> to vector<8x32xf32>
    %471 = vector.broadcast %469 : vector<8x1xf32> to vector<8x32xf32>
    %472 = arith.mulf %471, %470 : vector<8x32xf32>
    %473 = arith.addf %468, %472 : vector<8x32xf32>
    %474 = vector.extract_strided_slice %466 {offsets = [0, 1], sizes = [8, 1], strides = [1, 1]} : vector<8x4xf32> to vector<8x1xf32>
    %475 = vector.extract_strided_slice %413 {offsets = [8, 0], sizes = [8, 32], strides = [1, 1]} : vector<32x32xf32> to vector<8x32xf32>
    %476 = vector.broadcast %474 : vector<8x1xf32> to vector<8x32xf32>
    %477 = arith.mulf %476, %475 : vector<8x32xf32>
    %478 = arith.addf %473, %477 : vector<8x32xf32>
    %479 = vector.extract_strided_slice %466 {offsets = [0, 2], sizes = [8, 1], strides = [1, 1]} : vector<8x4xf32> to vector<8x1xf32>
    %480 = vector.extract_strided_slice %413 {offsets = [16, 0], sizes = [8, 32], strides = [1, 1]} : vector<32x32xf32> to vector<8x32xf32>
    %481 = vector.broadcast %479 : vector<8x1xf32> to vector<8x32xf32>
    %482 = arith.mulf %481, %480 : vector<8x32xf32>
    %483 = arith.addf %478, %482 : vector<8x32xf32>
    %484 = vector.extract_strided_slice %466 {offsets = [0, 3], sizes = [8, 1], strides = [1, 1]} : vector<8x4xf32> to vector<8x1xf32>
    %485 = vector.extract_strided_slice %413 {offsets = [24, 0], sizes = [8, 32], strides = [1, 1]} : vector<32x32xf32> to vector<8x32xf32>
    %486 = vector.broadcast %484 : vector<8x1xf32> to vector<8x32xf32>
    %487 = arith.mulf %486, %485 : vector<8x32xf32>
    %488 = arith.addf %483, %487 : vector<8x32xf32>
    %c0_125 = arith.constant 0 : index
    %c0_126 = arith.constant 0 : index
    %489 = vector.load %arg14[%c0_125, %c0_126] : memref<8x32xf32, #tpu.memory_space<vmem>>, vector<8x32xf32>
    tpu.vector_store %arg14[%c0_125, %c0_126], %488 {strides = array<i32>} : memref<8x32xf32, #tpu.memory_space<vmem>>, vector<8x32xf32>,
    return
  }
  func.func @transform_0(%arg0: i32) -> (i32, i32, i32) {
    %c0_i32 = arith.constant 0 : i32
    %c0_i32_0 = arith.constant 0 : i32
    %c0_i32_1 = arith.constant 0 : i32
    return %c0_i32, %arg0, %c0_i32_0 : i32, i32, i32
  }
  func.func @transform_1(%arg0: i32) -> (i32, i32) {
    %c0_i32 = arith.constant 0 : i32
    %c0_i32_0 = arith.constant 0 : i32
    return %arg0, %c0_i32 : i32, i32
  }
  func.func @transform_2(%arg0: i32) -> (i32, i32) {
    %c0_i32 = arith.constant 0 : i32
    %c0_i32_0 = arith.constant 0 : i32
    %c0_i32_1 = arith.constant 0 : i32
    return %c0_i32, %c0_i32_0 : i32, i32
  }
  func.func @transform_3(%arg0: i32) -> (i32, i32) {
    %c0_i32 = arith.constant 0 : i32
    %c0_i32_0 = arith.constant 0 : i32
    %c0_i32_1 = arith.constant 0 : i32
    return %c0_i32, %c0_i32_0 : i32, i32
  }
  func.func @transform_4(%arg0: i32) -> (i32, i32) {
    %c0_i32 = arith.constant 0 : i32
    %c0_i32_0 = arith.constant 0 : i32
    %c0_i32_1 = arith.constant 0 : i32
    return %c0_i32, %c0_i32_0 : i32, i32
  }
  func.func @transform_5(%arg0: i32) -> (i32, i32) {
    %c0_i32 = arith.constant 0 : i32
    %c0_i32_0 = arith.constant 0 : i32
    %c0_i32_1 = arith.constant 0 : i32
    return %c0_i32, %c0_i32_0 : i32, i32
  }
  func.func @transform_6(%arg0: i32) -> (i32, i32) {
    %c0_i32 = arith.constant 0 : i32
    %c0_i32_0 = arith.constant 0 : i32
    %c0_i32_1 = arith.constant 0 : i32
    return %c0_i32, %c0_i32_0 : i32, i32
  }
  func.func @transform_7(%arg0: i32) -> (i32, i32) {
    %c0_i32 = arith.constant 0 : i32
    %c0_i32_0 = arith.constant 0 : i32
    %c0_i32_1 = arith.constant 0 : i32
    return %c0_i32, %c0_i32_0 : i32, i32
  }
  func.func @transform_8(%arg0: i32) -> (i32, i32) {
    %c0_i32 = arith.constant 0 : i32
    %c0_i32_0 = arith.constant 0 : i32
    %c0_i32_1 = arith.constant 0 : i32
    return %c0_i32, %c0_i32_0 : i32, i32
  }
  func.func @transform_9(%arg0: i32) -> (i32, i32) {
    %c0_i32 = arith.constant 0 : i32
    %c0_i32_0 = arith.constant 0 : i32
    %c0_i32_1 = arith.constant 0 : i32
    return %c0_i32, %c0_i32_0 : i32, i32
  }
  func.func @transform_10(%arg0: i32) -> (i32, i32) {
    %c0_i32 = arith.constant 0 : i32
    %c0_i32_0 = arith.constant 0 : i32
    %c0_i32_1 = arith.constant 0 : i32
    return %c0_i32, %c0_i32_0 : i32, i32
  }
  func.func @transform_11(%arg0: i32) -> (i32, i32) {
    %c0_i32 = arith.constant 0 : i32
    %c0_i32_0 = arith.constant 0 : i32
    %c0_i32_1 = arith.constant 0 : i32
    return %c0_i32, %c0_i32_0 : i32, i32
  }
  func.func @transform_12(%arg0: i32) -> (i32, i32) {
    %c0_i32 = arith.constant 0 : i32
    %c0_i32_0 = arith.constant 0 : i32
    %c0_i32_1 = arith.constant 0 : i32
    return %c0_i32, %c0_i32_0 : i32, i32
  }
  func.func @transform_13(%arg0: i32) -> (i32, i32) {
    %c0_i32 = arith.constant 0 : i32
    %c0_i32_0 = arith.constant 0 : i32
    return %arg0, %c0_i32 : i32, i32
  }
  func.func @transform_14(%arg0: i32) -> (i32, i32) {
    %c0_i32 = arith.constant 0 : i32
    %c0_i32_0 = arith.constant 0 : i32
    return %arg0, %c0_i32 : i32, i32
  }
}

module attributes {stable_mosaic.version = 11 : i64} {
  func.func @_encoder_kernel(%arg0: i32, %arg1: memref<8x8x32xf32, #tpu.memory_space<vmem>>, %arg2: memref<8x1xf32, #tpu.memory_space<vmem>>, %arg3: memref<32x48xf32, #tpu.memory_space<vmem>>, %arg4: memref<16x48xf32, #tpu.memory_space<vmem>>, %arg5: memref<1x48xf32, #tpu.memory_space<vmem>>, %arg6: memref<1x48xf32, #tpu.memory_space<vmem>>, %arg7: memref<32x48xf32, #tpu.memory_space<vmem>>, %arg8: memref<16x48xf32, #tpu.memory_space<vmem>>, %arg9: memref<1x48xf32, #tpu.memory_space<vmem>>, %arg10: memref<1x48xf32, #tpu.memory_space<vmem>>, %arg11: memref<32x16xf32, #tpu.memory_space<vmem>>, %arg12: memref<1x16xf32, #tpu.memory_space<vmem>>, %arg13: memref<1x16xf32, #tpu.memory_space<vmem>>, %arg14: memref<8x32xf32, #tpu.memory_space<vmem>>, %arg15: memref<8x8xf32, #tpu.memory_space<vmem>>, %arg16: memref<64x48xf32, #tpu.memory_space<vmem>>, %arg17: memref<64x32xf32, #tpu.memory_space<vmem>>) attributes {dimension_semantics = [#tpu.dimension_semantics<parallel>], iteration_bounds = array<i64: 1>, scalar_prefetch = 0 : i64, scratch_operands = 2 : i64, tpu.core_type = #tpu.core_type<tc>, window_params = [{transform_indices = @transform_0, window_bounds = array<i64: 8, 8, 32>}, {transform_indices = @transform_1, window_bounds = array<i64: 8, 1>}, {pipeline_mode = #tpu.pipeline_mode<synchronous>, transform_indices = @transform_2, window_bounds = array<i64: 32, 48>}, {pipeline_mode = #tpu.pipeline_mode<synchronous>, transform_indices = @transform_3, window_bounds = array<i64: 16, 48>}, {pipeline_mode = #tpu.pipeline_mode<synchronous>, transform_indices = @transform_4, window_bounds = array<i64: 1, 48>}, {pipeline_mode = #tpu.pipeline_mode<synchronous>, transform_indices = @transform_5, window_bounds = array<i64: 1, 48>}, {pipeline_mode = #tpu.pipeline_mode<synchronous>, transform_indices = @transform_6, window_bounds = array<i64: 32, 48>}, {pipeline_mode = #tpu.pipeline_mode<synchronous>, transform_indices = @transform_7, window_bounds = array<i64: 16, 48>}, {pipeline_mode = #tpu.pipeline_mode<synchronous>, transform_indices = @transform_8, window_bounds = array<i64: 1, 48>}, {pipeline_mode = #tpu.pipeline_mode<synchronous>, transform_indices = @transform_9, window_bounds = array<i64: 1, 48>}, {pipeline_mode = #tpu.pipeline_mode<synchronous>, transform_indices = @transform_10, window_bounds = array<i64: 32, 16>}, {pipeline_mode = #tpu.pipeline_mode<synchronous>, transform_indices = @transform_11, window_bounds = array<i64: 1, 16>}, {pipeline_mode = #tpu.pipeline_mode<synchronous>, transform_indices = @transform_12, window_bounds = array<i64: 1, 16>}, {transform_indices = @transform_13, window_bounds = array<i64: 8, 32>}, {transform_indices = @transform_14, window_bounds = array<i64: 8, 8>}]} {
    %c0 = arith.constant 0 : index
    %c0_0 = arith.constant 0 : index
    %0 = vector.load %arg2[%c0, %c0_0] : memref<8x1xf32, #tpu.memory_space<vmem>>, vector<8x1xf32>
    %c0_1 = arith.constant 0 : index
    %c0_2 = arith.constant 0 : index
    %c0_3 = arith.constant 0 : index
    %1 = vector.load %arg1[%c0_1, %c0_2, %c0_3] : memref<8x8x32xf32, #tpu.memory_space<vmem>>, vector<8x8x32xf32>
    %2 = vector.shape_cast %1 : vector<8x8x32xf32> to vector<64x32xf32>
    %c0_4 = arith.constant 0 : index
    %c0_5 = arith.constant 0 : index
    %3 = vector.load %arg3[%c0_4, %c0_5] : memref<32x48xf32, #tpu.memory_space<vmem>>, vector<32x48xf32>
    %cst = arith.constant dense<0.000000e+00> : vector<64x48xf32>
    %4 = tpu.matmul %2, %3, %cst {dimension_numbers = #tpu.dot_dimension_numbers<[1], [0], [0], [1], [0, 0, 1, 1], [], []>} : vector<64x32xf32>, vector<32x48xf32>, vector<64x48xf32> -> vector<64x48xf32>
    %c0_6 = arith.constant 0 : index
    %c0_7 = arith.constant 0 : index
    %5 = vector.load %arg5[%c0_6, %c0_7] : memref<1x48xf32, #tpu.memory_space<vmem>>, vector<1x48xf32>
    %6 = vector.broadcast %5 : vector<1x48xf32> to vector<64x48xf32>
    %7 = arith.addf %4, %6 : vector<64x48xf32>
    %c0_8 = arith.constant 0 : index
    %c0_9 = arith.constant 0 : index
    %8 = vector.load %arg16[%c0_8, %c0_9] : memref<64x48xf32, #tpu.memory_space<vmem>>, vector<64x48xf32>
    tpu.vector_store %arg16[%c0_8, %c0_9], %7 {strides = array<i32>} : memref<64x48xf32, #tpu.memory_space<vmem>>, vector<64x48xf32>,
    %c0_10 = arith.constant 0 : index
    %c0_11 = arith.constant 0 : index
    %9 = vector.load %arg4[%c0_10, %c0_11] : memref<16x48xf32, #tpu.memory_space<vmem>>, vector<16x48xf32>
    %c0_12 = arith.constant 0 : index
    %c0_13 = arith.constant 0 : index
    %10 = vector.load %arg6[%c0_12, %c0_13] : memref<1x48xf32, #tpu.memory_space<vmem>>, vector<1x48xf32>
    %11 = vector.shape_cast %10 : vector<1x48xf32> to vector<1x48xf32>
    %12 = vector.broadcast %11 : vector<1x48xf32> to vector<8x48xf32>
    %cst_14 = arith.constant 0.000000e+00 : f32
    %13 = vector.broadcast %cst_14 : f32 to vector<8x16xf32>
    %c0_i32 = arith.constant 0 : i32
    %c8_i32 = arith.constant 8 : i32
    %14 = arith.muli %c0_i32, %c8_i32 : i32
    %15 = tpu.assume_multiple %14, 8 : i32
    %16 = arith.index_cast %15 : i32 to index
    %c0_15 = arith.constant 0 : index
    %17 = vector.load %arg16[%16, %c0_15] : memref<64x48xf32, #tpu.memory_space<vmem>>, vector<8x48xf32>
    %cst_16 = arith.constant dense<0.000000e+00> : vector<8x48xf32>
    %18 = tpu.matmul %13, %9, %cst_16 {dimension_numbers = #tpu.dot_dimension_numbers<[1], [0], [0], [1], [0, 0, 1, 1], [], []>} : vector<8x16xf32>, vector<16x48xf32>, vector<8x48xf32> -> vector<8x48xf32>
    %19 = arith.addf %18, %12 : vector<8x48xf32>
    %20 = vector.extract_strided_slice %17 {offsets = [0, 0], sizes = [8, 16], strides = [1, 1]} : vector<8x48xf32> to vector<8x16xf32>
    %21 = vector.extract_strided_slice %19 {offsets = [0, 0], sizes = [8, 16], strides = [1, 1]} : vector<8x48xf32> to vector<8x16xf32>
    %22 = arith.addf %20, %21 : vector<8x16xf32>
    %23 = arith.negf %22 : vector<8x16xf32>
    %24 = math.exp %23 : vector<8x16xf32>
    %cst_17 = arith.constant 1.000000e+00 : f32
    %25 = vector.broadcast %cst_17 : f32 to vector<8x16xf32>
    %26 = arith.addf %25, %24 : vector<8x16xf32>
    %27 = arith.divf %25, %26 : vector<8x16xf32>
    %28 = vector.extract_strided_slice %17 {offsets = [0, 16], sizes = [8, 16], strides = [1, 1]} : vector<8x48xf32> to vector<8x16xf32>
    %29 = vector.extract_strided_slice %19 {offsets = [0, 16], sizes = [8, 16], strides = [1, 1]} : vector<8x48xf32> to vector<8x16xf32>
    %30 = arith.addf %28, %29 : vector<8x16xf32>
    %31 = arith.negf %30 : vector<8x16xf32>
    %32 = math.exp %31 : vector<8x16xf32>
    %cst_18 = arith.constant 1.000000e+00 : f32
    %33 = vector.broadcast %cst_18 : f32 to vector<8x16xf32>
    %34 = arith.addf %33, %32 : vector<8x16xf32>
    %35 = arith.divf %33, %34 : vector<8x16xf32>
    %36 = vector.extract_strided_slice %17 {offsets = [0, 32], sizes = [8, 16], strides = [1, 1]} : vector<8x48xf32> to vector<8x16xf32>
    %37 = vector.extract_strided_slice %19 {offsets = [0, 32], sizes = [8, 16], strides = [1, 1]} : vector<8x48xf32> to vector<8x16xf32>
    %38 = arith.mulf %27, %37 : vector<8x16xf32>
    %39 = arith.addf %36, %38 : vector<8x16xf32>
    %40 = math.tanh %39 : vector<8x16xf32>
    %cst_19 = arith.constant 1.000000e+00 : f32
    %41 = vector.broadcast %cst_19 : f32 to vector<8x16xf32>
    %42 = arith.subf %41, %35 : vector<8x16xf32>
    %43 = arith.mulf %42, %40 : vector<8x16xf32>
    %44 = arith.mulf %35, %13 : vector<8x16xf32>
    %45 = arith.addf %43, %44 : vector<8x16xf32>
    %46 = arith.sitofp %c0_i32 : i32 to f32
    %47 = vector.broadcast %46 : f32 to vector<8x1xf32>
    %48 = arith.cmpf ogt, %0, %47 : vector<8x1xf32>
    %49 = arith.extui %48 : vector<8x1xi1> to vector<8x1xi32>
    %50 = arith.sitofp %49 : vector<8x1xi32> to vector<8x1xf32>
    %51 = vector.broadcast %50 : vector<8x1xf32> to vector<8x16xf32>
    %52 = arith.mulf %51, %45 : vector<8x16xf32>
    %53 = arith.index_cast %15 : i32 to index
    %c0_20 = arith.constant 0 : index
    %54 = vector.load %arg17[%53, %c0_20] : memref<64x32xf32, #tpu.memory_space<vmem>>, vector<8x16xf32>
    tpu.vector_store %arg17[%53, %c0_20], %52 {strides = array<i32>} : memref<64x32xf32, #tpu.memory_space<vmem>>, vector<8x16xf32>,
    %55 = vector.broadcast %50 : vector<8x1xf32> to vector<8x16xf32>
    %56 = arith.mulf %55, %45 : vector<8x16xf32>
    %cst_21 = arith.constant 1.000000e+00 : f32
    %57 = vector.broadcast %cst_21 : f32 to vector<8x1xf32>
    %58 = arith.subf %57, %50 : vector<8x1xf32>
    %59 = vector.broadcast %58 : vector<8x1xf32> to vector<8x16xf32>
    %60 = arith.mulf %59, %13 : vector<8x16xf32>
    %61 = arith.addf %56, %60 : vector<8x16xf32>
    %c1_i32 = arith.constant 1 : i32
    %c8_i32_22 = arith.constant 8 : i32
    %62 = arith.muli %c1_i32, %c8_i32_22 : i32
    %63 = tpu.assume_multiple %62, 8 : i32
    %64 = arith.index_cast %63 : i32 to index
    %c0_23 = arith.constant 0 : index
    %65 = vector.load %arg16[%64, %c0_23] : memref<64x48xf32, #tpu.memory_space<vmem>>, vector<8x48xf32>
    %cst_24 = arith.constant dense<0.000000e+00> : vector<8x48xf32>
    %66 = tpu.matmul %61, %9, %cst_24 {dimension_numbers = #tpu.dot_dimension_numbers<[1], [0], [0], [1], [0, 0, 1, 1], [], []>} : vector<8x16xf32>, vector<16x48xf32>, vector<8x48xf32> -> vector<8x48xf32>
    %67 = arith.addf %66, %12 : vector<8x48xf32>
    %68 = vector.extract_strided_slice %65 {offsets = [0, 0], sizes = [8, 16], strides = [1, 1]} : vector<8x48xf32> to vector<8x16xf32>
    %69 = vector.extract_strided_slice %67 {offsets = [0, 0], sizes = [8, 16], strides = [1, 1]} : vector<8x48xf32> to vector<8x16xf32>
    %70 = arith.addf %68, %69 : vector<8x16xf32>
    %71 = arith.negf %70 : vector<8x16xf32>
    %72 = math.exp %71 : vector<8x16xf32>
    %cst_25 = arith.constant 1.000000e+00 : f32
    %73 = vector.broadcast %cst_25 : f32 to vector<8x16xf32>
    %74 = arith.addf %73, %72 : vector<8x16xf32>
    %75 = arith.divf %73, %74 : vector<8x16xf32>
    %76 = vector.extract_strided_slice %65 {offsets = [0, 16], sizes = [8, 16], strides = [1, 1]} : vector<8x48xf32> to vector<8x16xf32>
    %77 = vector.extract_strided_slice %67 {offsets = [0, 16], sizes = [8, 16], strides = [1, 1]} : vector<8x48xf32> to vector<8x16xf32>
    %78 = arith.addf %76, %77 : vector<8x16xf32>
    %79 = arith.negf %78 : vector<8x16xf32>
    %80 = math.exp %79 : vector<8x16xf32>
    %cst_26 = arith.constant 1.000000e+00 : f32
    %81 = vector.broadcast %cst_26 : f32 to vector<8x16xf32>
    %82 = arith.addf %81, %80 : vector<8x16xf32>
    %83 = arith.divf %81, %82 : vector<8x16xf32>
    %84 = vector.extract_strided_slice %65 {offsets = [0, 32], sizes = [8, 16], strides = [1, 1]} : vector<8x48xf32> to vector<8x16xf32>
    %85 = vector.extract_strided_slice %67 {offsets = [0, 32], sizes = [8, 16], strides = [1, 1]} : vector<8x48xf32> to vector<8x16xf32>
    %86 = arith.mulf %75, %85 : vector<8x16xf32>
    %87 = arith.addf %84, %86 : vector<8x16xf32>
    %88 = math.tanh %87 : vector<8x16xf32>
    %cst_27 = arith.constant 1.000000e+00 : f32
    %89 = vector.broadcast %cst_27 : f32 to vector<8x16xf32>
    %90 = arith.subf %89, %83 : vector<8x16xf32>
    %91 = arith.mulf %90, %88 : vector<8x16xf32>
    %92 = arith.mulf %83, %61 : vector<8x16xf32>
    %93 = arith.addf %91, %92 : vector<8x16xf32>
    %94 = arith.sitofp %c1_i32 : i32 to f32
    %95 = vector.broadcast %94 : f32 to vector<8x1xf32>
    %96 = arith.cmpf ogt, %0, %95 : vector<8x1xf32>
    %97 = arith.extui %96 : vector<8x1xi1> to vector<8x1xi32>
    %98 = arith.sitofp %97 : vector<8x1xi32> to vector<8x1xf32>
    %99 = vector.broadcast %98 : vector<8x1xf32> to vector<8x16xf32>
    %100 = arith.mulf %99, %93 : vector<8x16xf32>
    %101 = arith.index_cast %63 : i32 to index
    %c0_28 = arith.constant 0 : index
    %102 = vector.load %arg17[%101, %c0_28] : memref<64x32xf32, #tpu.memory_space<vmem>>, vector<8x16xf32>
    tpu.vector_store %arg17[%101, %c0_28], %100 {strides = array<i32>} : memref<64x32xf32, #tpu.memory_space<vmem>>, vector<8x16xf32>,
    %103 = vector.broadcast %98 : vector<8x1xf32> to vector<8x16xf32>
    %104 = arith.mulf %103, %93 : vector<8x16xf32>
    %cst_29 = arith.constant 1.000000e+00 : f32
    %105 = vector.broadcast %cst_29 : f32 to vector<8x1xf32>
    %106 = arith.subf %105, %98 : vector<8x1xf32>
    %107 = vector.broadcast %106 : vector<8x1xf32> to vector<8x16xf32>
    %108 = arith.mulf %107, %61 : vector<8x16xf32>
    %109 = arith.addf %104, %108 : vector<8x16xf32>
    %c2_i32 = arith.constant 2 : i32
    %c8_i32_30 = arith.constant 8 : i32
    %110 = arith.muli %c2_i32, %c8_i32_30 : i32
    %111 = tpu.assume_multiple %110, 8 : i32
    %112 = arith.index_cast %111 : i32 to index
    %c0_31 = arith.constant 0 : index
    %113 = vector.load %arg16[%112, %c0_31] : memref<64x48xf32, #tpu.memory_space<vmem>>, vector<8x48xf32>
    %cst_32 = arith.constant dense<0.000000e+00> : vector<8x48xf32>
    %114 = tpu.matmul %109, %9, %cst_32 {dimension_numbers = #tpu.dot_dimension_numbers<[1], [0], [0], [1], [0, 0, 1, 1], [], []>} : vector<8x16xf32>, vector<16x48xf32>, vector<8x48xf32> -> vector<8x48xf32>
    %115 = arith.addf %114, %12 : vector<8x48xf32>
    %116 = vector.extract_strided_slice %113 {offsets = [0, 0], sizes = [8, 16], strides = [1, 1]} : vector<8x48xf32> to vector<8x16xf32>
    %117 = vector.extract_strided_slice %115 {offsets = [0, 0], sizes = [8, 16], strides = [1, 1]} : vector<8x48xf32> to vector<8x16xf32>
    %118 = arith.addf %116, %117 : vector<8x16xf32>
    %119 = arith.negf %118 : vector<8x16xf32>
    %120 = math.exp %119 : vector<8x16xf32>
    %cst_33 = arith.constant 1.000000e+00 : f32
    %121 = vector.broadcast %cst_33 : f32 to vector<8x16xf32>
    %122 = arith.addf %121, %120 : vector<8x16xf32>
    %123 = arith.divf %121, %122 : vector<8x16xf32>
    %124 = vector.extract_strided_slice %113 {offsets = [0, 16], sizes = [8, 16], strides = [1, 1]} : vector<8x48xf32> to vector<8x16xf32>
    %125 = vector.extract_strided_slice %115 {offsets = [0, 16], sizes = [8, 16], strides = [1, 1]} : vector<8x48xf32> to vector<8x16xf32>
    %126 = arith.addf %124, %125 : vector<8x16xf32>
    %127 = arith.negf %126 : vector<8x16xf32>
    %128 = math.exp %127 : vector<8x16xf32>
    %cst_34 = arith.constant 1.000000e+00 : f32
    %129 = vector.broadcast %cst_34 : f32 to vector<8x16xf32>
    %130 = arith.addf %129, %128 : vector<8x16xf32>
    %131 = arith.divf %129, %130 : vector<8x16xf32>
    %132 = vector.extract_strided_slice %113 {offsets = [0, 32], sizes = [8, 16], strides = [1, 1]} : vector<8x48xf32> to vector<8x16xf32>
    %133 = vector.extract_strided_slice %115 {offsets = [0, 32], sizes = [8, 16], strides = [1, 1]} : vector<8x48xf32> to vector<8x16xf32>
    %134 = arith.mulf %123, %133 : vector<8x16xf32>
    %135 = arith.addf %132, %134 : vector<8x16xf32>
    %136 = math.tanh %135 : vector<8x16xf32>
    %cst_35 = arith.constant 1.000000e+00 : f32
    %137 = vector.broadcast %cst_35 : f32 to vector<8x16xf32>
    %138 = arith.subf %137, %131 : vector<8x16xf32>
    %139 = arith.mulf %138, %136 : vector<8x16xf32>
    %140 = arith.mulf %131, %109 : vector<8x16xf32>
    %141 = arith.addf %139, %140 : vector<8x16xf32>
    %142 = arith.sitofp %c2_i32 : i32 to f32
    %143 = vector.broadcast %142 : f32 to vector<8x1xf32>
    %144 = arith.cmpf ogt, %0, %143 : vector<8x1xf32>
    %145 = arith.extui %144 : vector<8x1xi1> to vector<8x1xi32>
    %146 = arith.sitofp %145 : vector<8x1xi32> to vector<8x1xf32>
    %147 = vector.broadcast %146 : vector<8x1xf32> to vector<8x16xf32>
    %148 = arith.mulf %147, %141 : vector<8x16xf32>
    %149 = arith.index_cast %111 : i32 to index
    %c0_36 = arith.constant 0 : index
    %150 = vector.load %arg17[%149, %c0_36] : memref<64x32xf32, #tpu.memory_space<vmem>>, vector<8x16xf32>
    tpu.vector_store %arg17[%149, %c0_36], %148 {strides = array<i32>} : memref<64x32xf32, #tpu.memory_space<vmem>>, vector<8x16xf32>,
    %151 = vector.broadcast %146 : vector<8x1xf32> to vector<8x16xf32>
    %152 = arith.mulf %151, %141 : vector<8x16xf32>
    %cst_37 = arith.constant 1.000000e+00 : f32
    %153 = vector.broadcast %cst_37 : f32 to vector<8x1xf32>
    %154 = arith.subf %153, %146 : vector<8x1xf32>
    %155 = vector.broadcast %154 : vector<8x1xf32> to vector<8x16xf32>
    %156 = arith.mulf %155, %109 : vector<8x16xf32>
    %157 = arith.addf %152, %156 : vector<8x16xf32>
    %c3_i32 = arith.constant 3 : i32
    %c8_i32_38 = arith.constant 8 : i32
    %158 = arith.muli %c3_i32, %c8_i32_38 : i32
    %159 = tpu.assume_multiple %158, 8 : i32
    %160 = arith.index_cast %159 : i32 to index
    %c0_39 = arith.constant 0 : index
    %161 = vector.load %arg16[%160, %c0_39] : memref<64x48xf32, #tpu.memory_space<vmem>>, vector<8x48xf32>
    %cst_40 = arith.constant dense<0.000000e+00> : vector<8x48xf32>
    %162 = tpu.matmul %157, %9, %cst_40 {dimension_numbers = #tpu.dot_dimension_numbers<[1], [0], [0], [1], [0, 0, 1, 1], [], []>} : vector<8x16xf32>, vector<16x48xf32>, vector<8x48xf32> -> vector<8x48xf32>
    %163 = arith.addf %162, %12 : vector<8x48xf32>
    %164 = vector.extract_strided_slice %161 {offsets = [0, 0], sizes = [8, 16], strides = [1, 1]} : vector<8x48xf32> to vector<8x16xf32>
    %165 = vector.extract_strided_slice %163 {offsets = [0, 0], sizes = [8, 16], strides = [1, 1]} : vector<8x48xf32> to vector<8x16xf32>
    %166 = arith.addf %164, %165 : vector<8x16xf32>
    %167 = arith.negf %166 : vector<8x16xf32>
    %168 = math.exp %167 : vector<8x16xf32>
    %cst_41 = arith.constant 1.000000e+00 : f32
    %169 = vector.broadcast %cst_41 : f32 to vector<8x16xf32>
    %170 = arith.addf %169, %168 : vector<8x16xf32>
    %171 = arith.divf %169, %170 : vector<8x16xf32>
    %172 = vector.extract_strided_slice %161 {offsets = [0, 16], sizes = [8, 16], strides = [1, 1]} : vector<8x48xf32> to vector<8x16xf32>
    %173 = vector.extract_strided_slice %163 {offsets = [0, 16], sizes = [8, 16], strides = [1, 1]} : vector<8x48xf32> to vector<8x16xf32>
    %174 = arith.addf %172, %173 : vector<8x16xf32>
    %175 = arith.negf %174 : vector<8x16xf32>
    %176 = math.exp %175 : vector<8x16xf32>
    %cst_42 = arith.constant 1.000000e+00 : f32
    %177 = vector.broadcast %cst_42 : f32 to vector<8x16xf32>
    %178 = arith.addf %177, %176 : vector<8x16xf32>
    %179 = arith.divf %177, %178 : vector<8x16xf32>
    %180 = vector.extract_strided_slice %161 {offsets = [0, 32], sizes = [8, 16], strides = [1, 1]} : vector<8x48xf32> to vector<8x16xf32>
    %181 = vector.extract_strided_slice %163 {offsets = [0, 32], sizes = [8, 16], strides = [1, 1]} : vector<8x48xf32> to vector<8x16xf32>
    %182 = arith.mulf %171, %181 : vector<8x16xf32>
    %183 = arith.addf %180, %182 : vector<8x16xf32>
    %184 = math.tanh %183 : vector<8x16xf32>
    %cst_43 = arith.constant 1.000000e+00 : f32
    %185 = vector.broadcast %cst_43 : f32 to vector<8x16xf32>
    %186 = arith.subf %185, %179 : vector<8x16xf32>
    %187 = arith.mulf %186, %184 : vector<8x16xf32>
    %188 = arith.mulf %179, %157 : vector<8x16xf32>
    %189 = arith.addf %187, %188 : vector<8x16xf32>
    %190 = arith.sitofp %c3_i32 : i32 to f32
    %191 = vector.broadcast %190 : f32 to vector<8x1xf32>
    %192 = arith.cmpf ogt, %0, %191 : vector<8x1xf32>
    %193 = arith.extui %192 : vector<8x1xi1> to vector<8x1xi32>
    %194 = arith.sitofp %193 : vector<8x1xi32> to vector<8x1xf32>
    %195 = vector.broadcast %194 : vector<8x1xf32> to vector<8x16xf32>
    %196 = arith.mulf %195, %189 : vector<8x16xf32>
    %197 = arith.index_cast %159 : i32 to index
    %c0_44 = arith.constant 0 : index
    %198 = vector.load %arg17[%197, %c0_44] : memref<64x32xf32, #tpu.memory_space<vmem>>, vector<8x16xf32>
    tpu.vector_store %arg17[%197, %c0_44], %196 {strides = array<i32>} : memref<64x32xf32, #tpu.memory_space<vmem>>, vector<8x16xf32>,
    %199 = vector.broadcast %194 : vector<8x1xf32> to vector<8x16xf32>
    %200 = arith.mulf %199, %189 : vector<8x16xf32>
    %cst_45 = arith.constant 1.000000e+00 : f32
    %201 = vector.broadcast %cst_45 : f32 to vector<8x1xf32>
    %202 = arith.subf %201, %194 : vector<8x1xf32>
    %203 = vector.broadcast %202 : vector<8x1xf32> to vector<8x16xf32>
    %204 = arith.mulf %203, %157 : vector<8x16xf32>
    %205 = arith.addf %200, %204 : vector<8x16xf32>
    %c4_i32 = arith.constant 4 : i32
    %c8_i32_46 = arith.constant 8 : i32
    %206 = arith.muli %c4_i32, %c8_i32_46 : i32
    %207 = tpu.assume_multiple %206, 8 : i32
    %208 = arith.index_cast %207 : i32 to index
    %c0_47 = arith.constant 0 : index
    %209 = vector.load %arg16[%208, %c0_47] : memref<64x48xf32, #tpu.memory_space<vmem>>, vector<8x48xf32>
    %cst_48 = arith.constant dense<0.000000e+00> : vector<8x48xf32>
    %210 = tpu.matmul %205, %9, %cst_48 {dimension_numbers = #tpu.dot_dimension_numbers<[1], [0], [0], [1], [0, 0, 1, 1], [], []>} : vector<8x16xf32>, vector<16x48xf32>, vector<8x48xf32> -> vector<8x48xf32>
    %211 = arith.addf %210, %12 : vector<8x48xf32>
    %212 = vector.extract_strided_slice %209 {offsets = [0, 0], sizes = [8, 16], strides = [1, 1]} : vector<8x48xf32> to vector<8x16xf32>
    %213 = vector.extract_strided_slice %211 {offsets = [0, 0], sizes = [8, 16], strides = [1, 1]} : vector<8x48xf32> to vector<8x16xf32>
    %214 = arith.addf %212, %213 : vector<8x16xf32>
    %215 = arith.negf %214 : vector<8x16xf32>
    %216 = math.exp %215 : vector<8x16xf32>
    %cst_49 = arith.constant 1.000000e+00 : f32
    %217 = vector.broadcast %cst_49 : f32 to vector<8x16xf32>
    %218 = arith.addf %217, %216 : vector<8x16xf32>
    %219 = arith.divf %217, %218 : vector<8x16xf32>
    %220 = vector.extract_strided_slice %209 {offsets = [0, 16], sizes = [8, 16], strides = [1, 1]} : vector<8x48xf32> to vector<8x16xf32>
    %221 = vector.extract_strided_slice %211 {offsets = [0, 16], sizes = [8, 16], strides = [1, 1]} : vector<8x48xf32> to vector<8x16xf32>
    %222 = arith.addf %220, %221 : vector<8x16xf32>
    %223 = arith.negf %222 : vector<8x16xf32>
    %224 = math.exp %223 : vector<8x16xf32>
    %cst_50 = arith.constant 1.000000e+00 : f32
    %225 = vector.broadcast %cst_50 : f32 to vector<8x16xf32>
    %226 = arith.addf %225, %224 : vector<8x16xf32>
    %227 = arith.divf %225, %226 : vector<8x16xf32>
    %228 = vector.extract_strided_slice %209 {offsets = [0, 32], sizes = [8, 16], strides = [1, 1]} : vector<8x48xf32> to vector<8x16xf32>
    %229 = vector.extract_strided_slice %211 {offsets = [0, 32], sizes = [8, 16], strides = [1, 1]} : vector<8x48xf32> to vector<8x16xf32>
    %230 = arith.mulf %219, %229 : vector<8x16xf32>
    %231 = arith.addf %228, %230 : vector<8x16xf32>
    %232 = math.tanh %231 : vector<8x16xf32>
    %cst_51 = arith.constant 1.000000e+00 : f32
    %233 = vector.broadcast %cst_51 : f32 to vector<8x16xf32>
    %234 = arith.subf %233, %227 : vector<8x16xf32>
    %235 = arith.mulf %234, %232 : vector<8x16xf32>
    %236 = arith.mulf %227, %205 : vector<8x16xf32>
    %237 = arith.addf %235, %236 : vector<8x16xf32>
    %238 = arith.sitofp %c4_i32 : i32 to f32
    %239 = vector.broadcast %238 : f32 to vector<8x1xf32>
    %240 = arith.cmpf ogt, %0, %239 : vector<8x1xf32>
    %241 = arith.extui %240 : vector<8x1xi1> to vector<8x1xi32>
    %242 = arith.sitofp %241 : vector<8x1xi32> to vector<8x1xf32>
    %243 = vector.broadcast %242 : vector<8x1xf32> to vector<8x16xf32>
    %244 = arith.mulf %243, %237 : vector<8x16xf32>
    %245 = arith.index_cast %207 : i32 to index
    %c0_52 = arith.constant 0 : index
    %246 = vector.load %arg17[%245, %c0_52] : memref<64x32xf32, #tpu.memory_space<vmem>>, vector<8x16xf32>
    tpu.vector_store %arg17[%245, %c0_52], %244 {strides = array<i32>} : memref<64x32xf32, #tpu.memory_space<vmem>>, vector<8x16xf32>,
    %247 = vector.broadcast %242 : vector<8x1xf32> to vector<8x16xf32>
    %248 = arith.mulf %247, %237 : vector<8x16xf32>
    %cst_53 = arith.constant 1.000000e+00 : f32
    %249 = vector.broadcast %cst_53 : f32 to vector<8x1xf32>
    %250 = arith.subf %249, %242 : vector<8x1xf32>
    %251 = vector.broadcast %250 : vector<8x1xf32> to vector<8x16xf32>
    %252 = arith.mulf %251, %205 : vector<8x16xf32>
    %253 = arith.addf %248, %252 : vector<8x16xf32>
    %c5_i32 = arith.constant 5 : i32
    %c8_i32_54 = arith.constant 8 : i32
    %254 = arith.muli %c5_i32, %c8_i32_54 : i32
    %255 = tpu.assume_multiple %254, 8 : i32
    %256 = arith.index_cast %255 : i32 to index
    %c0_55 = arith.constant 0 : index
    %257 = vector.load %arg16[%256, %c0_55] : memref<64x48xf32, #tpu.memory_space<vmem>>, vector<8x48xf32>
    %cst_56 = arith.constant dense<0.000000e+00> : vector<8x48xf32>
    %258 = tpu.matmul %253, %9, %cst_56 {dimension_numbers = #tpu.dot_dimension_numbers<[1], [0], [0], [1], [0, 0, 1, 1], [], []>} : vector<8x16xf32>, vector<16x48xf32>, vector<8x48xf32> -> vector<8x48xf32>
    %259 = arith.addf %258, %12 : vector<8x48xf32>
    %260 = vector.extract_strided_slice %257 {offsets = [0, 0], sizes = [8, 16], strides = [1, 1]} : vector<8x48xf32> to vector<8x16xf32>
    %261 = vector.extract_strided_slice %259 {offsets = [0, 0], sizes = [8, 16], strides = [1, 1]} : vector<8x48xf32> to vector<8x16xf32>
    %262 = arith.addf %260, %261 : vector<8x16xf32>
    %263 = arith.negf %262 : vector<8x16xf32>
    %264 = math.exp %263 : vector<8x16xf32>
    %cst_57 = arith.constant 1.000000e+00 : f32
    %265 = vector.broadcast %cst_57 : f32 to vector<8x16xf32>
    %266 = arith.addf %265, %264 : vector<8x16xf32>
    %267 = arith.divf %265, %266 : vector<8x16xf32>
    %268 = vector.extract_strided_slice %257 {offsets = [0, 16], sizes = [8, 16], strides = [1, 1]} : vector<8x48xf32> to vector<8x16xf32>
    %269 = vector.extract_strided_slice %259 {offsets = [0, 16], sizes = [8, 16], strides = [1, 1]} : vector<8x48xf32> to vector<8x16xf32>
    %270 = arith.addf %268, %269 : vector<8x16xf32>
    %271 = arith.negf %270 : vector<8x16xf32>
    %272 = math.exp %271 : vector<8x16xf32>
    %cst_58 = arith.constant 1.000000e+00 : f32
    %273 = vector.broadcast %cst_58 : f32 to vector<8x16xf32>
    %274 = arith.addf %273, %272 : vector<8x16xf32>
    %275 = arith.divf %273, %274 : vector<8x16xf32>
    %276 = vector.extract_strided_slice %257 {offsets = [0, 32], sizes = [8, 16], strides = [1, 1]} : vector<8x48xf32> to vector<8x16xf32>
    %277 = vector.extract_strided_slice %259 {offsets = [0, 32], sizes = [8, 16], strides = [1, 1]} : vector<8x48xf32> to vector<8x16xf32>
    %278 = arith.mulf %267, %277 : vector<8x16xf32>
    %279 = arith.addf %276, %278 : vector<8x16xf32>
    %280 = math.tanh %279 : vector<8x16xf32>
    %cst_59 = arith.constant 1.000000e+00 : f32
    %281 = vector.broadcast %cst_59 : f32 to vector<8x16xf32>
    %282 = arith.subf %281, %275 : vector<8x16xf32>
    %283 = arith.mulf %282, %280 : vector<8x16xf32>
    %284 = arith.mulf %275, %253 : vector<8x16xf32>
    %285 = arith.addf %283, %284 : vector<8x16xf32>
    %286 = arith.sitofp %c5_i32 : i32 to f32
    %287 = vector.broadcast %286 : f32 to vector<8x1xf32>
    %288 = arith.cmpf ogt, %0, %287 : vector<8x1xf32>
    %289 = arith.extui %288 : vector<8x1xi1> to vector<8x1xi32>
    %290 = arith.sitofp %289 : vector<8x1xi32> to vector<8x1xf32>
    %291 = vector.broadcast %290 : vector<8x1xf32> to vector<8x16xf32>
    %292 = arith.mulf %291, %285 : vector<8x16xf32>
    %293 = arith.index_cast %255 : i32 to index
    %c0_60 = arith.constant 0 : index
    %294 = vector.load %arg17[%293, %c0_60] : memref<64x32xf32, #tpu.memory_space<vmem>>, vector<8x16xf32>
    tpu.vector_store %arg17[%293, %c0_60], %292 {strides = array<i32>} : memref<64x32xf32, #tpu.memory_space<vmem>>, vector<8x16xf32>,
    %295 = vector.broadcast %290 : vector<8x1xf32> to vector<8x16xf32>
    %296 = arith.mulf %295, %285 : vector<8x16xf32>
    %cst_61 = arith.constant 1.000000e+00 : f32
    %297 = vector.broadcast %cst_61 : f32 to vector<8x1xf32>
    %298 = arith.subf %297, %290 : vector<8x1xf32>
    %299 = vector.broadcast %298 : vector<8x1xf32> to vector<8x16xf32>
    %300 = arith.mulf %299, %253 : vector<8x16xf32>
    %301 = arith.addf %296, %300 : vector<8x16xf32>
    %c6_i32 = arith.constant 6 : i32
    %c8_i32_62 = arith.constant 8 : i32
    %302 = arith.muli %c6_i32, %c8_i32_62 : i32
    %303 = tpu.assume_multiple %302, 8 : i32
    %304 = arith.index_cast %303 : i32 to index
    %c0_63 = arith.constant 0 : index
    %305 = vector.load %arg16[%304, %c0_63] : memref<64x48xf32, #tpu.memory_space<vmem>>, vector<8x48xf32>
    %cst_64 = arith.constant dense<0.000000e+00> : vector<8x48xf32>
    %306 = tpu.matmul %301, %9, %cst_64 {dimension_numbers = #tpu.dot_dimension_numbers<[1], [0], [0], [1], [0, 0, 1, 1], [], []>} : vector<8x16xf32>, vector<16x48xf32>, vector<8x48xf32> -> vector<8x48xf32>
    %307 = arith.addf %306, %12 : vector<8x48xf32>
    %308 = vector.extract_strided_slice %305 {offsets = [0, 0], sizes = [8, 16], strides = [1, 1]} : vector<8x48xf32> to vector<8x16xf32>
    %309 = vector.extract_strided_slice %307 {offsets = [0, 0], sizes = [8, 16], strides = [1, 1]} : vector<8x48xf32> to vector<8x16xf32>
    %310 = arith.addf %308, %309 : vector<8x16xf32>
    %311 = arith.negf %310 : vector<8x16xf32>
    %312 = math.exp %311 : vector<8x16xf32>
    %cst_65 = arith.constant 1.000000e+00 : f32
    %313 = vector.broadcast %cst_65 : f32 to vector<8x16xf32>
    %314 = arith.addf %313, %312 : vector<8x16xf32>
    %315 = arith.divf %313, %314 : vector<8x16xf32>
    %316 = vector.extract_strided_slice %305 {offsets = [0, 16], sizes = [8, 16], strides = [1, 1]} : vector<8x48xf32> to vector<8x16xf32>
    %317 = vector.extract_strided_slice %307 {offsets = [0, 16], sizes = [8, 16], strides = [1, 1]} : vector<8x48xf32> to vector<8x16xf32>
    %318 = arith.addf %316, %317 : vector<8x16xf32>
    %319 = arith.negf %318 : vector<8x16xf32>
    %320 = math.exp %319 : vector<8x16xf32>
    %cst_66 = arith.constant 1.000000e+00 : f32
    %321 = vector.broadcast %cst_66 : f32 to vector<8x16xf32>
    %322 = arith.addf %321, %320 : vector<8x16xf32>
    %323 = arith.divf %321, %322 : vector<8x16xf32>
    %324 = vector.extract_strided_slice %305 {offsets = [0, 32], sizes = [8, 16], strides = [1, 1]} : vector<8x48xf32> to vector<8x16xf32>
    %325 = vector.extract_strided_slice %307 {offsets = [0, 32], sizes = [8, 16], strides = [1, 1]} : vector<8x48xf32> to vector<8x16xf32>
    %326 = arith.mulf %315, %325 : vector<8x16xf32>
    %327 = arith.addf %324, %326 : vector<8x16xf32>
    %328 = math.tanh %327 : vector<8x16xf32>
    %cst_67 = arith.constant 1.000000e+00 : f32
    %329 = vector.broadcast %cst_67 : f32 to vector<8x16xf32>
    %330 = arith.subf %329, %323 : vector<8x16xf32>
    %331 = arith.mulf %330, %328 : vector<8x16xf32>
    %332 = arith.mulf %323, %301 : vector<8x16xf32>
    %333 = arith.addf %331, %332 : vector<8x16xf32>
    %334 = arith.sitofp %c6_i32 : i32 to f32
    %335 = vector.broadcast %334 : f32 to vector<8x1xf32>
    %336 = arith.cmpf ogt, %0, %335 : vector<8x1xf32>
    %337 = arith.extui %336 : vector<8x1xi1> to vector<8x1xi32>
    %338 = arith.sitofp %337 : vector<8x1xi32> to vector<8x1xf32>
    %339 = vector.broadcast %338 : vector<8x1xf32> to vector<8x16xf32>
    %340 = arith.mulf %339, %333 : vector<8x16xf32>
    %341 = arith.index_cast %303 : i32 to index
    %c0_68 = arith.constant 0 : index
    %342 = vector.load %arg17[%341, %c0_68] : memref<64x32xf32, #tpu.memory_space<vmem>>, vector<8x16xf32>
    tpu.vector_store %arg17[%341, %c0_68], %340 {strides = array<i32>} : memref<64x32xf32, #tpu.memory_space<vmem>>, vector<8x16xf32>,
    %343 = vector.broadcast %338 : vector<8x1xf32> to vector<8x16xf32>
    %344 = arith.mulf %343, %333 : vector<8x16xf32>
    %cst_69 = arith.constant 1.000000e+00 : f32
    %345 = vector.broadcast %cst_69 : f32 to vector<8x1xf32>
    %346 = arith.subf %345, %338 : vector<8x1xf32>
    %347 = vector.broadcast %346 : vector<8x1xf32> to vector<8x16xf32>
    %348 = arith.mulf %347, %301 : vector<8x16xf32>
    %349 = arith.addf %344, %348 : vector<8x16xf32>
    %c7_i32 = arith.constant 7 : i32
    %c8_i32_70 = arith.constant 8 : i32
    %350 = arith.muli %c7_i32, %c8_i32_70 : i32
    %351 = tpu.assume_multiple %350, 8 : i32
    %352 = arith.index_cast %351 : i32 to index
    %c0_71 = arith.constant 0 : index
    %353 = vector.load %arg16[%352, %c0_71] : memref<64x48xf32, #tpu.memory_space<vmem>>, vector<8x48xf32>
    %cst_72 = arith.constant dense<0.000000e+00> : vector<8x48xf32>
    %354 = tpu.matmul %349, %9, %cst_72 {dimension_numbers = #tpu.dot_dimension_numbers<[1], [0], [0], [1], [0, 0, 1, 1], [], []>} : vector<8x16xf32>, vector<16x48xf32>, vector<8x48xf32> -> vector<8x48xf32>
    %355 = arith.addf %354, %12 : vector<8x48xf32>
    %356 = vector.extract_strided_slice %353 {offsets = [0, 0], sizes = [8, 16], strides = [1, 1]} : vector<8x48xf32> to vector<8x16xf32>
    %357 = vector.extract_strided_slice %355 {offsets = [0, 0], sizes = [8, 16], strides = [1, 1]} : vector<8x48xf32> to vector<8x16xf32>
    %358 = arith.addf %356, %357 : vector<8x16xf32>
    %359 = arith.negf %358 : vector<8x16xf32>
    %360 = math.exp %359 : vector<8x16xf32>
    %cst_73 = arith.constant 1.000000e+00 : f32
    %361 = vector.broadcast %cst_73 : f32 to vector<8x16xf32>
    %362 = arith.addf %361, %360 : vector<8x16xf32>
    %363 = arith.divf %361, %362 : vector<8x16xf32>
    %364 = vector.extract_strided_slice %353 {offsets = [0, 16], sizes = [8, 16], strides = [1, 1]} : vector<8x48xf32> to vector<8x16xf32>
    %365 = vector.extract_strided_slice %355 {offsets = [0, 16], sizes = [8, 16], strides = [1, 1]} : vector<8x48xf32> to vector<8x16xf32>
    %366 = arith.addf %364, %365 : vector<8x16xf32>
    %367 = arith.negf %366 : vector<8x16xf32>
    %368 = math.exp %367 : vector<8x16xf32>
    %cst_74 = arith.constant 1.000000e+00 : f32
    %369 = vector.broadcast %cst_74 : f32 to vector<8x16xf32>
    %370 = arith.addf %369, %368 : vector<8x16xf32>
    %371 = arith.divf %369, %370 : vector<8x16xf32>
    %372 = vector.extract_strided_slice %353 {offsets = [0, 32], sizes = [8, 16], strides = [1, 1]} : vector<8x48xf32> to vector<8x16xf32>
    %373 = vector.extract_strided_slice %355 {offsets = [0, 32], sizes = [8, 16], strides = [1, 1]} : vector<8x48xf32> to vector<8x16xf32>
    %374 = arith.mulf %363, %373 : vector<8x16xf32>
    %375 = arith.addf %372, %374 : vector<8x16xf32>
    %376 = math.tanh %375 : vector<8x16xf32>
    %cst_75 = arith.constant 1.000000e+00 : f32
    %377 = vector.broadcast %cst_75 : f32 to vector<8x16xf32>
    %378 = arith.subf %377, %371 : vector<8x16xf32>
    %379 = arith.mulf %378, %376 : vector<8x16xf32>
    %380 = arith.mulf %371, %349 : vector<8x16xf32>
    %381 = arith.addf %379, %380 : vector<8x16xf32>
    %382 = arith.sitofp %c7_i32 : i32 to f32
    %383 = vector.broadcast %382 : f32 to vector<8x1xf32>
    %384 = arith.cmpf ogt, %0, %383 : vector<8x1xf32>
    %385 = arith.extui %384 : vector<8x1xi1> to vector<8x1xi32>
    %386 = arith.sitofp %385 : vector<8x1xi32> to vector<8x1xf32>
    %387 = vector.broadcast %386 : vector<8x1xf32> to vector<8x16xf32>
    %388 = arith.mulf %387, %381 : vector<8x16xf32>
    %389 = arith.index_cast %351 : i32 to index
    %c0_76 = arith.constant 0 : index
    %390 = vector.load %arg17[%389, %c0_76] : memref<64x32xf32, #tpu.memory_space<vmem>>, vector<8x16xf32>
    tpu.vector_store %arg17[%389, %c0_76], %388 {strides = array<i32>} : memref<64x32xf32, #tpu.memory_space<vmem>>, vector<8x16xf32>,
    %391 = vector.broadcast %386 : vector<8x1xf32> to vector<8x16xf32>
    %392 = arith.mulf %391, %381 : vector<8x16xf32>
    %cst_77 = arith.constant 1.000000e+00 : f32
    %393 = vector.broadcast %cst_77 : f32 to vector<8x1xf32>
    %394 = arith.subf %393, %386 : vector<8x1xf32>
    %395 = vector.broadcast %394 : vector<8x1xf32> to vector<8x16xf32>
    %396 = arith.mulf %395, %349 : vector<8x16xf32>
    %397 = arith.addf %392, %396 : vector<8x16xf32>
    %c8_i32_78 = arith.constant 8 : i32
    %c0_79 = arith.constant 0 : index
    %c0_80 = arith.constant 0 : index
    %398 = vector.load %arg7[%c0_79, %c0_80] : memref<32x48xf32, #tpu.memory_space<vmem>>, vector<32x48xf32>
    %cst_81 = arith.constant dense<0.000000e+00> : vector<64x48xf32>
    %399 = tpu.matmul %2, %398, %cst_81 {dimension_numbers = #tpu.dot_dimension_numbers<[1], [0], [0], [1], [0, 0, 1, 1], [], []>} : vector<64x32xf32>, vector<32x48xf32>, vector<64x48xf32> -> vector<64x48xf32>
    %c0_82 = arith.constant 0 : index
    %c0_83 = arith.constant 0 : index
    %400 = vector.load %arg9[%c0_82, %c0_83] : memref<1x48xf32, #tpu.memory_space<vmem>>, vector<1x48xf32>
    %401 = vector.broadcast %400 : vector<1x48xf32> to vector<64x48xf32>
    %402 = arith.addf %399, %401 : vector<64x48xf32>
    %c0_84 = arith.constant 0 : index
    %c0_85 = arith.constant 0 : index
    %403 = vector.load %arg16[%c0_84, %c0_85] : memref<64x48xf32, #tpu.memory_space<vmem>>, vector<64x48xf32>
    tpu.vector_store %arg16[%c0_84, %c0_85], %402 {strides = array<i32>} : memref<64x48xf32, #tpu.memory_space<vmem>>, vector<64x48xf32>,
    %c0_86 = arith.constant 0 : index
    %c0_87 = arith.constant 0 : index
    %404 = vector.load %arg8[%c0_86, %c0_87] : memref<16x48xf32, #tpu.memory_space<vmem>>, vector<16x48xf32>
    %c0_88 = arith.constant 0 : index
    %c0_89 = arith.constant 0 : index
    %405 = vector.load %arg10[%c0_88, %c0_89] : memref<1x48xf32, #tpu.memory_space<vmem>>, vector<1x48xf32>
    %406 = vector.shape_cast %405 : vector<1x48xf32> to vector<1x48xf32>
    %407 = vector.broadcast %406 : vector<1x48xf32> to vector<8x48xf32>
    %cst_90 = arith.constant 0.000000e+00 : f32
    %408 = vector.broadcast %cst_90 : f32 to vector<8x16xf32>
    %c0_i32_91 = arith.constant 0 : i32
    %c7_i32_92 = arith.constant 7 : i32
    %409 = arith.subi %c7_i32_92, %c0_i32_91 : i32
    %c8_i32_93 = arith.constant 8 : i32
    %410 = arith.muli %409, %c8_i32_93 : i32
    %411 = tpu.assume_multiple %410, 8 : i32
    %412 = arith.index_cast %411 : i32 to index
    %c0_94 = arith.constant 0 : index
    %413 = vector.load %arg16[%412, %c0_94] : memref<64x48xf32, #tpu.memory_space<vmem>>, vector<8x48xf32>
    %cst_95 = arith.constant dense<0.000000e+00> : vector<8x48xf32>
    %414 = tpu.matmul %408, %404, %cst_95 {dimension_numbers = #tpu.dot_dimension_numbers<[1], [0], [0], [1], [0, 0, 1, 1], [], []>} : vector<8x16xf32>, vector<16x48xf32>, vector<8x48xf32> -> vector<8x48xf32>
    %415 = arith.addf %414, %407 : vector<8x48xf32>
    %416 = vector.extract_strided_slice %413 {offsets = [0, 0], sizes = [8, 16], strides = [1, 1]} : vector<8x48xf32> to vector<8x16xf32>
    %417 = vector.extract_strided_slice %415 {offsets = [0, 0], sizes = [8, 16], strides = [1, 1]} : vector<8x48xf32> to vector<8x16xf32>
    %418 = arith.addf %416, %417 : vector<8x16xf32>
    %419 = arith.negf %418 : vector<8x16xf32>
    %420 = math.exp %419 : vector<8x16xf32>
    %cst_96 = arith.constant 1.000000e+00 : f32
    %421 = vector.broadcast %cst_96 : f32 to vector<8x16xf32>
    %422 = arith.addf %421, %420 : vector<8x16xf32>
    %423 = arith.divf %421, %422 : vector<8x16xf32>
    %424 = vector.extract_strided_slice %413 {offsets = [0, 16], sizes = [8, 16], strides = [1, 1]} : vector<8x48xf32> to vector<8x16xf32>
    %425 = vector.extract_strided_slice %415 {offsets = [0, 16], sizes = [8, 16], strides = [1, 1]} : vector<8x48xf32> to vector<8x16xf32>
    %426 = arith.addf %424, %425 : vector<8x16xf32>
    %427 = arith.negf %426 : vector<8x16xf32>
    %428 = math.exp %427 : vector<8x16xf32>
    %cst_97 = arith.constant 1.000000e+00 : f32
    %429 = vector.broadcast %cst_97 : f32 to vector<8x16xf32>
    %430 = arith.addf %429, %428 : vector<8x16xf32>
    %431 = arith.divf %429, %430 : vector<8x16xf32>
    %432 = vector.extract_strided_slice %413 {offsets = [0, 32], sizes = [8, 16], strides = [1, 1]} : vector<8x48xf32> to vector<8x16xf32>
    %433 = vector.extract_strided_slice %415 {offsets = [0, 32], sizes = [8, 16], strides = [1, 1]} : vector<8x48xf32> to vector<8x16xf32>
    %434 = arith.mulf %423, %433 : vector<8x16xf32>
    %435 = arith.addf %432, %434 : vector<8x16xf32>
    %436 = math.tanh %435 : vector<8x16xf32>
    %cst_98 = arith.constant 1.000000e+00 : f32
    %437 = vector.broadcast %cst_98 : f32 to vector<8x16xf32>
    %438 = arith.subf %437, %431 : vector<8x16xf32>
    %439 = arith.mulf %438, %436 : vector<8x16xf32>
    %440 = arith.mulf %431, %408 : vector<8x16xf32>
    %441 = arith.addf %439, %440 : vector<8x16xf32>
    %442 = arith.sitofp %409 : i32 to f32
    %443 = vector.broadcast %442 : f32 to vector<8x1xf32>
    %444 = arith.cmpf ogt, %0, %443 : vector<8x1xf32>
    %445 = arith.extui %444 : vector<8x1xi1> to vector<8x1xi32>
    %446 = arith.sitofp %445 : vector<8x1xi32> to vector<8x1xf32>
    %447 = vector.broadcast %446 : vector<8x1xf32> to vector<8x16xf32>
    %448 = arith.mulf %447, %441 : vector<8x16xf32>
    %449 = arith.index_cast %411 : i32 to index
    %c16 = arith.constant 16 : index
    %450 = vector.load %arg17[%449, %c16] : memref<64x32xf32, #tpu.memory_space<vmem>>, vector<8x16xf32>
    tpu.vector_store %arg17[%449, %c16], %448 {strides = array<i32>} : memref<64x32xf32, #tpu.memory_space<vmem>>, vector<8x16xf32>,
    %451 = vector.broadcast %446 : vector<8x1xf32> to vector<8x16xf32>
    %452 = arith.mulf %451, %441 : vector<8x16xf32>
    %cst_99 = arith.constant 1.000000e+00 : f32
    %453 = vector.broadcast %cst_99 : f32 to vector<8x1xf32>
    %454 = arith.subf %453, %446 : vector<8x1xf32>
    %455 = vector.broadcast %454 : vector<8x1xf32> to vector<8x16xf32>
    %456 = arith.mulf %455, %408 : vector<8x16xf32>
    %457 = arith.addf %452, %456 : vector<8x16xf32>
    %c1_i32_100 = arith.constant 1 : i32
    %c7_i32_101 = arith.constant 7 : i32
    %458 = arith.subi %c7_i32_101, %c1_i32_100 : i32
    %c8_i32_102 = arith.constant 8 : i32
    %459 = arith.muli %458, %c8_i32_102 : i32
    %460 = tpu.assume_multiple %459, 8 : i32
    %461 = arith.index_cast %460 : i32 to index
    %c0_103 = arith.constant 0 : index
    %462 = vector.load %arg16[%461, %c0_103] : memref<64x48xf32, #tpu.memory_space<vmem>>, vector<8x48xf32>
    %cst_104 = arith.constant dense<0.000000e+00> : vector<8x48xf32>
    %463 = tpu.matmul %457, %404, %cst_104 {dimension_numbers = #tpu.dot_dimension_numbers<[1], [0], [0], [1], [0, 0, 1, 1], [], []>} : vector<8x16xf32>, vector<16x48xf32>, vector<8x48xf32> -> vector<8x48xf32>
    %464 = arith.addf %463, %407 : vector<8x48xf32>
    %465 = vector.extract_strided_slice %462 {offsets = [0, 0], sizes = [8, 16], strides = [1, 1]} : vector<8x48xf32> to vector<8x16xf32>
    %466 = vector.extract_strided_slice %464 {offsets = [0, 0], sizes = [8, 16], strides = [1, 1]} : vector<8x48xf32> to vector<8x16xf32>
    %467 = arith.addf %465, %466 : vector<8x16xf32>
    %468 = arith.negf %467 : vector<8x16xf32>
    %469 = math.exp %468 : vector<8x16xf32>
    %cst_105 = arith.constant 1.000000e+00 : f32
    %470 = vector.broadcast %cst_105 : f32 to vector<8x16xf32>
    %471 = arith.addf %470, %469 : vector<8x16xf32>
    %472 = arith.divf %470, %471 : vector<8x16xf32>
    %473 = vector.extract_strided_slice %462 {offsets = [0, 16], sizes = [8, 16], strides = [1, 1]} : vector<8x48xf32> to vector<8x16xf32>
    %474 = vector.extract_strided_slice %464 {offsets = [0, 16], sizes = [8, 16], strides = [1, 1]} : vector<8x48xf32> to vector<8x16xf32>
    %475 = arith.addf %473, %474 : vector<8x16xf32>
    %476 = arith.negf %475 : vector<8x16xf32>
    %477 = math.exp %476 : vector<8x16xf32>
    %cst_106 = arith.constant 1.000000e+00 : f32
    %478 = vector.broadcast %cst_106 : f32 to vector<8x16xf32>
    %479 = arith.addf %478, %477 : vector<8x16xf32>
    %480 = arith.divf %478, %479 : vector<8x16xf32>
    %481 = vector.extract_strided_slice %462 {offsets = [0, 32], sizes = [8, 16], strides = [1, 1]} : vector<8x48xf32> to vector<8x16xf32>
    %482 = vector.extract_strided_slice %464 {offsets = [0, 32], sizes = [8, 16], strides = [1, 1]} : vector<8x48xf32> to vector<8x16xf32>
    %483 = arith.mulf %472, %482 : vector<8x16xf32>
    %484 = arith.addf %481, %483 : vector<8x16xf32>
    %485 = math.tanh %484 : vector<8x16xf32>
    %cst_107 = arith.constant 1.000000e+00 : f32
    %486 = vector.broadcast %cst_107 : f32 to vector<8x16xf32>
    %487 = arith.subf %486, %480 : vector<8x16xf32>
    %488 = arith.mulf %487, %485 : vector<8x16xf32>
    %489 = arith.mulf %480, %457 : vector<8x16xf32>
    %490 = arith.addf %488, %489 : vector<8x16xf32>
    %491 = arith.sitofp %458 : i32 to f32
    %492 = vector.broadcast %491 : f32 to vector<8x1xf32>
    %493 = arith.cmpf ogt, %0, %492 : vector<8x1xf32>
    %494 = arith.extui %493 : vector<8x1xi1> to vector<8x1xi32>
    %495 = arith.sitofp %494 : vector<8x1xi32> to vector<8x1xf32>
    %496 = vector.broadcast %495 : vector<8x1xf32> to vector<8x16xf32>
    %497 = arith.mulf %496, %490 : vector<8x16xf32>
    %498 = arith.index_cast %460 : i32 to index
    %c16_108 = arith.constant 16 : index
    %499 = vector.load %arg17[%498, %c16_108] : memref<64x32xf32, #tpu.memory_space<vmem>>, vector<8x16xf32>
    tpu.vector_store %arg17[%498, %c16_108], %497 {strides = array<i32>} : memref<64x32xf32, #tpu.memory_space<vmem>>, vector<8x16xf32>,
    %500 = vector.broadcast %495 : vector<8x1xf32> to vector<8x16xf32>
    %501 = arith.mulf %500, %490 : vector<8x16xf32>
    %cst_109 = arith.constant 1.000000e+00 : f32
    %502 = vector.broadcast %cst_109 : f32 to vector<8x1xf32>
    %503 = arith.subf %502, %495 : vector<8x1xf32>
    %504 = vector.broadcast %503 : vector<8x1xf32> to vector<8x16xf32>
    %505 = arith.mulf %504, %457 : vector<8x16xf32>
    %506 = arith.addf %501, %505 : vector<8x16xf32>
    %c2_i32_110 = arith.constant 2 : i32
    %c7_i32_111 = arith.constant 7 : i32
    %507 = arith.subi %c7_i32_111, %c2_i32_110 : i32
    %c8_i32_112 = arith.constant 8 : i32
    %508 = arith.muli %507, %c8_i32_112 : i32
    %509 = tpu.assume_multiple %508, 8 : i32
    %510 = arith.index_cast %509 : i32 to index
    %c0_113 = arith.constant 0 : index
    %511 = vector.load %arg16[%510, %c0_113] : memref<64x48xf32, #tpu.memory_space<vmem>>, vector<8x48xf32>
    %cst_114 = arith.constant dense<0.000000e+00> : vector<8x48xf32>
    %512 = tpu.matmul %506, %404, %cst_114 {dimension_numbers = #tpu.dot_dimension_numbers<[1], [0], [0], [1], [0, 0, 1, 1], [], []>} : vector<8x16xf32>, vector<16x48xf32>, vector<8x48xf32> -> vector<8x48xf32>
    %513 = arith.addf %512, %407 : vector<8x48xf32>
    %514 = vector.extract_strided_slice %511 {offsets = [0, 0], sizes = [8, 16], strides = [1, 1]} : vector<8x48xf32> to vector<8x16xf32>
    %515 = vector.extract_strided_slice %513 {offsets = [0, 0], sizes = [8, 16], strides = [1, 1]} : vector<8x48xf32> to vector<8x16xf32>
    %516 = arith.addf %514, %515 : vector<8x16xf32>
    %517 = arith.negf %516 : vector<8x16xf32>
    %518 = math.exp %517 : vector<8x16xf32>
    %cst_115 = arith.constant 1.000000e+00 : f32
    %519 = vector.broadcast %cst_115 : f32 to vector<8x16xf32>
    %520 = arith.addf %519, %518 : vector<8x16xf32>
    %521 = arith.divf %519, %520 : vector<8x16xf32>
    %522 = vector.extract_strided_slice %511 {offsets = [0, 16], sizes = [8, 16], strides = [1, 1]} : vector<8x48xf32> to vector<8x16xf32>
    %523 = vector.extract_strided_slice %513 {offsets = [0, 16], sizes = [8, 16], strides = [1, 1]} : vector<8x48xf32> to vector<8x16xf32>
    %524 = arith.addf %522, %523 : vector<8x16xf32>
    %525 = arith.negf %524 : vector<8x16xf32>
    %526 = math.exp %525 : vector<8x16xf32>
    %cst_116 = arith.constant 1.000000e+00 : f32
    %527 = vector.broadcast %cst_116 : f32 to vector<8x16xf32>
    %528 = arith.addf %527, %526 : vector<8x16xf32>
    %529 = arith.divf %527, %528 : vector<8x16xf32>
    %530 = vector.extract_strided_slice %511 {offsets = [0, 32], sizes = [8, 16], strides = [1, 1]} : vector<8x48xf32> to vector<8x16xf32>
    %531 = vector.extract_strided_slice %513 {offsets = [0, 32], sizes = [8, 16], strides = [1, 1]} : vector<8x48xf32> to vector<8x16xf32>
    %532 = arith.mulf %521, %531 : vector<8x16xf32>
    %533 = arith.addf %530, %532 : vector<8x16xf32>
    %534 = math.tanh %533 : vector<8x16xf32>
    %cst_117 = arith.constant 1.000000e+00 : f32
    %535 = vector.broadcast %cst_117 : f32 to vector<8x16xf32>
    %536 = arith.subf %535, %529 : vector<8x16xf32>
    %537 = arith.mulf %536, %534 : vector<8x16xf32>
    %538 = arith.mulf %529, %506 : vector<8x16xf32>
    %539 = arith.addf %537, %538 : vector<8x16xf32>
    %540 = arith.sitofp %507 : i32 to f32
    %541 = vector.broadcast %540 : f32 to vector<8x1xf32>
    %542 = arith.cmpf ogt, %0, %541 : vector<8x1xf32>
    %543 = arith.extui %542 : vector<8x1xi1> to vector<8x1xi32>
    %544 = arith.sitofp %543 : vector<8x1xi32> to vector<8x1xf32>
    %545 = vector.broadcast %544 : vector<8x1xf32> to vector<8x16xf32>
    %546 = arith.mulf %545, %539 : vector<8x16xf32>
    %547 = arith.index_cast %509 : i32 to index
    %c16_118 = arith.constant 16 : index
    %548 = vector.load %arg17[%547, %c16_118] : memref<64x32xf32, #tpu.memory_space<vmem>>, vector<8x16xf32>
    tpu.vector_store %arg17[%547, %c16_118], %546 {strides = array<i32>} : memref<64x32xf32, #tpu.memory_space<vmem>>, vector<8x16xf32>,
    %549 = vector.broadcast %544 : vector<8x1xf32> to vector<8x16xf32>
    %550 = arith.mulf %549, %539 : vector<8x16xf32>
    %cst_119 = arith.constant 1.000000e+00 : f32
    %551 = vector.broadcast %cst_119 : f32 to vector<8x1xf32>
    %552 = arith.subf %551, %544 : vector<8x1xf32>
    %553 = vector.broadcast %552 : vector<8x1xf32> to vector<8x16xf32>
    %554 = arith.mulf %553, %506 : vector<8x16xf32>
    %555 = arith.addf %550, %554 : vector<8x16xf32>
    %c3_i32_120 = arith.constant 3 : i32
    %c7_i32_121 = arith.constant 7 : i32
    %556 = arith.subi %c7_i32_121, %c3_i32_120 : i32
    %c8_i32_122 = arith.constant 8 : i32
    %557 = arith.muli %556, %c8_i32_122 : i32
    %558 = tpu.assume_multiple %557, 8 : i32
    %559 = arith.index_cast %558 : i32 to index
    %c0_123 = arith.constant 0 : index
    %560 = vector.load %arg16[%559, %c0_123] : memref<64x48xf32, #tpu.memory_space<vmem>>, vector<8x48xf32>
    %cst_124 = arith.constant dense<0.000000e+00> : vector<8x48xf32>
    %561 = tpu.matmul %555, %404, %cst_124 {dimension_numbers = #tpu.dot_dimension_numbers<[1], [0], [0], [1], [0, 0, 1, 1], [], []>} : vector<8x16xf32>, vector<16x48xf32>, vector<8x48xf32> -> vector<8x48xf32>
    %562 = arith.addf %561, %407 : vector<8x48xf32>
    %563 = vector.extract_strided_slice %560 {offsets = [0, 0], sizes = [8, 16], strides = [1, 1]} : vector<8x48xf32> to vector<8x16xf32>
    %564 = vector.extract_strided_slice %562 {offsets = [0, 0], sizes = [8, 16], strides = [1, 1]} : vector<8x48xf32> to vector<8x16xf32>
    %565 = arith.addf %563, %564 : vector<8x16xf32>
    %566 = arith.negf %565 : vector<8x16xf32>
    %567 = math.exp %566 : vector<8x16xf32>
    %cst_125 = arith.constant 1.000000e+00 : f32
    %568 = vector.broadcast %cst_125 : f32 to vector<8x16xf32>
    %569 = arith.addf %568, %567 : vector<8x16xf32>
    %570 = arith.divf %568, %569 : vector<8x16xf32>
    %571 = vector.extract_strided_slice %560 {offsets = [0, 16], sizes = [8, 16], strides = [1, 1]} : vector<8x48xf32> to vector<8x16xf32>
    %572 = vector.extract_strided_slice %562 {offsets = [0, 16], sizes = [8, 16], strides = [1, 1]} : vector<8x48xf32> to vector<8x16xf32>
    %573 = arith.addf %571, %572 : vector<8x16xf32>
    %574 = arith.negf %573 : vector<8x16xf32>
    %575 = math.exp %574 : vector<8x16xf32>
    %cst_126 = arith.constant 1.000000e+00 : f32
    %576 = vector.broadcast %cst_126 : f32 to vector<8x16xf32>
    %577 = arith.addf %576, %575 : vector<8x16xf32>
    %578 = arith.divf %576, %577 : vector<8x16xf32>
    %579 = vector.extract_strided_slice %560 {offsets = [0, 32], sizes = [8, 16], strides = [1, 1]} : vector<8x48xf32> to vector<8x16xf32>
    %580 = vector.extract_strided_slice %562 {offsets = [0, 32], sizes = [8, 16], strides = [1, 1]} : vector<8x48xf32> to vector<8x16xf32>
    %581 = arith.mulf %570, %580 : vector<8x16xf32>
    %582 = arith.addf %579, %581 : vector<8x16xf32>
    %583 = math.tanh %582 : vector<8x16xf32>
    %cst_127 = arith.constant 1.000000e+00 : f32
    %584 = vector.broadcast %cst_127 : f32 to vector<8x16xf32>
    %585 = arith.subf %584, %578 : vector<8x16xf32>
    %586 = arith.mulf %585, %583 : vector<8x16xf32>
    %587 = arith.mulf %578, %555 : vector<8x16xf32>
    %588 = arith.addf %586, %587 : vector<8x16xf32>
    %589 = arith.sitofp %556 : i32 to f32
    %590 = vector.broadcast %589 : f32 to vector<8x1xf32>
    %591 = arith.cmpf ogt, %0, %590 : vector<8x1xf32>
    %592 = arith.extui %591 : vector<8x1xi1> to vector<8x1xi32>
    %593 = arith.sitofp %592 : vector<8x1xi32> to vector<8x1xf32>
    %594 = vector.broadcast %593 : vector<8x1xf32> to vector<8x16xf32>
    %595 = arith.mulf %594, %588 : vector<8x16xf32>
    %596 = arith.index_cast %558 : i32 to index
    %c16_128 = arith.constant 16 : index
    %597 = vector.load %arg17[%596, %c16_128] : memref<64x32xf32, #tpu.memory_space<vmem>>, vector<8x16xf32>
    tpu.vector_store %arg17[%596, %c16_128], %595 {strides = array<i32>} : memref<64x32xf32, #tpu.memory_space<vmem>>, vector<8x16xf32>,
    %598 = vector.broadcast %593 : vector<8x1xf32> to vector<8x16xf32>
    %599 = arith.mulf %598, %588 : vector<8x16xf32>
    %cst_129 = arith.constant 1.000000e+00 : f32
    %600 = vector.broadcast %cst_129 : f32 to vector<8x1xf32>
    %601 = arith.subf %600, %593 : vector<8x1xf32>
    %602 = vector.broadcast %601 : vector<8x1xf32> to vector<8x16xf32>
    %603 = arith.mulf %602, %555 : vector<8x16xf32>
    %604 = arith.addf %599, %603 : vector<8x16xf32>
    %c4_i32_130 = arith.constant 4 : i32
    %c7_i32_131 = arith.constant 7 : i32
    %605 = arith.subi %c7_i32_131, %c4_i32_130 : i32
    %c8_i32_132 = arith.constant 8 : i32
    %606 = arith.muli %605, %c8_i32_132 : i32
    %607 = tpu.assume_multiple %606, 8 : i32
    %608 = arith.index_cast %607 : i32 to index
    %c0_133 = arith.constant 0 : index
    %609 = vector.load %arg16[%608, %c0_133] : memref<64x48xf32, #tpu.memory_space<vmem>>, vector<8x48xf32>
    %cst_134 = arith.constant dense<0.000000e+00> : vector<8x48xf32>
    %610 = tpu.matmul %604, %404, %cst_134 {dimension_numbers = #tpu.dot_dimension_numbers<[1], [0], [0], [1], [0, 0, 1, 1], [], []>} : vector<8x16xf32>, vector<16x48xf32>, vector<8x48xf32> -> vector<8x48xf32>
    %611 = arith.addf %610, %407 : vector<8x48xf32>
    %612 = vector.extract_strided_slice %609 {offsets = [0, 0], sizes = [8, 16], strides = [1, 1]} : vector<8x48xf32> to vector<8x16xf32>
    %613 = vector.extract_strided_slice %611 {offsets = [0, 0], sizes = [8, 16], strides = [1, 1]} : vector<8x48xf32> to vector<8x16xf32>
    %614 = arith.addf %612, %613 : vector<8x16xf32>
    %615 = arith.negf %614 : vector<8x16xf32>
    %616 = math.exp %615 : vector<8x16xf32>
    %cst_135 = arith.constant 1.000000e+00 : f32
    %617 = vector.broadcast %cst_135 : f32 to vector<8x16xf32>
    %618 = arith.addf %617, %616 : vector<8x16xf32>
    %619 = arith.divf %617, %618 : vector<8x16xf32>
    %620 = vector.extract_strided_slice %609 {offsets = [0, 16], sizes = [8, 16], strides = [1, 1]} : vector<8x48xf32> to vector<8x16xf32>
    %621 = vector.extract_strided_slice %611 {offsets = [0, 16], sizes = [8, 16], strides = [1, 1]} : vector<8x48xf32> to vector<8x16xf32>
    %622 = arith.addf %620, %621 : vector<8x16xf32>
    %623 = arith.negf %622 : vector<8x16xf32>
    %624 = math.exp %623 : vector<8x16xf32>
    %cst_136 = arith.constant 1.000000e+00 : f32
    %625 = vector.broadcast %cst_136 : f32 to vector<8x16xf32>
    %626 = arith.addf %625, %624 : vector<8x16xf32>
    %627 = arith.divf %625, %626 : vector<8x16xf32>
    %628 = vector.extract_strided_slice %609 {offsets = [0, 32], sizes = [8, 16], strides = [1, 1]} : vector<8x48xf32> to vector<8x16xf32>
    %629 = vector.extract_strided_slice %611 {offsets = [0, 32], sizes = [8, 16], strides = [1, 1]} : vector<8x48xf32> to vector<8x16xf32>
    %630 = arith.mulf %619, %629 : vector<8x16xf32>
    %631 = arith.addf %628, %630 : vector<8x16xf32>
    %632 = math.tanh %631 : vector<8x16xf32>
    %cst_137 = arith.constant 1.000000e+00 : f32
    %633 = vector.broadcast %cst_137 : f32 to vector<8x16xf32>
    %634 = arith.subf %633, %627 : vector<8x16xf32>
    %635 = arith.mulf %634, %632 : vector<8x16xf32>
    %636 = arith.mulf %627, %604 : vector<8x16xf32>
    %637 = arith.addf %635, %636 : vector<8x16xf32>
    %638 = arith.sitofp %605 : i32 to f32
    %639 = vector.broadcast %638 : f32 to vector<8x1xf32>
    %640 = arith.cmpf ogt, %0, %639 : vector<8x1xf32>
    %641 = arith.extui %640 : vector<8x1xi1> to vector<8x1xi32>
    %642 = arith.sitofp %641 : vector<8x1xi32> to vector<8x1xf32>
    %643 = vector.broadcast %642 : vector<8x1xf32> to vector<8x16xf32>
    %644 = arith.mulf %643, %637 : vector<8x16xf32>
    %645 = arith.index_cast %607 : i32 to index
    %c16_138 = arith.constant 16 : index
    %646 = vector.load %arg17[%645, %c16_138] : memref<64x32xf32, #tpu.memory_space<vmem>>, vector<8x16xf32>
    tpu.vector_store %arg17[%645, %c16_138], %644 {strides = array<i32>} : memref<64x32xf32, #tpu.memory_space<vmem>>, vector<8x16xf32>,
    %647 = vector.broadcast %642 : vector<8x1xf32> to vector<8x16xf32>
    %648 = arith.mulf %647, %637 : vector<8x16xf32>
    %cst_139 = arith.constant 1.000000e+00 : f32
    %649 = vector.broadcast %cst_139 : f32 to vector<8x1xf32>
    %650 = arith.subf %649, %642 : vector<8x1xf32>
    %651 = vector.broadcast %650 : vector<8x1xf32> to vector<8x16xf32>
    %652 = arith.mulf %651, %604 : vector<8x16xf32>
    %653 = arith.addf %648, %652 : vector<8x16xf32>
    %c5_i32_140 = arith.constant 5 : i32
    %c7_i32_141 = arith.constant 7 : i32
    %654 = arith.subi %c7_i32_141, %c5_i32_140 : i32
    %c8_i32_142 = arith.constant 8 : i32
    %655 = arith.muli %654, %c8_i32_142 : i32
    %656 = tpu.assume_multiple %655, 8 : i32
    %657 = arith.index_cast %656 : i32 to index
    %c0_143 = arith.constant 0 : index
    %658 = vector.load %arg16[%657, %c0_143] : memref<64x48xf32, #tpu.memory_space<vmem>>, vector<8x48xf32>
    %cst_144 = arith.constant dense<0.000000e+00> : vector<8x48xf32>
    %659 = tpu.matmul %653, %404, %cst_144 {dimension_numbers = #tpu.dot_dimension_numbers<[1], [0], [0], [1], [0, 0, 1, 1], [], []>} : vector<8x16xf32>, vector<16x48xf32>, vector<8x48xf32> -> vector<8x48xf32>
    %660 = arith.addf %659, %407 : vector<8x48xf32>
    %661 = vector.extract_strided_slice %658 {offsets = [0, 0], sizes = [8, 16], strides = [1, 1]} : vector<8x48xf32> to vector<8x16xf32>
    %662 = vector.extract_strided_slice %660 {offsets = [0, 0], sizes = [8, 16], strides = [1, 1]} : vector<8x48xf32> to vector<8x16xf32>
    %663 = arith.addf %661, %662 : vector<8x16xf32>
    %664 = arith.negf %663 : vector<8x16xf32>
    %665 = math.exp %664 : vector<8x16xf32>
    %cst_145 = arith.constant 1.000000e+00 : f32
    %666 = vector.broadcast %cst_145 : f32 to vector<8x16xf32>
    %667 = arith.addf %666, %665 : vector<8x16xf32>
    %668 = arith.divf %666, %667 : vector<8x16xf32>
    %669 = vector.extract_strided_slice %658 {offsets = [0, 16], sizes = [8, 16], strides = [1, 1]} : vector<8x48xf32> to vector<8x16xf32>
    %670 = vector.extract_strided_slice %660 {offsets = [0, 16], sizes = [8, 16], strides = [1, 1]} : vector<8x48xf32> to vector<8x16xf32>
    %671 = arith.addf %669, %670 : vector<8x16xf32>
    %672 = arith.negf %671 : vector<8x16xf32>
    %673 = math.exp %672 : vector<8x16xf32>
    %cst_146 = arith.constant 1.000000e+00 : f32
    %674 = vector.broadcast %cst_146 : f32 to vector<8x16xf32>
    %675 = arith.addf %674, %673 : vector<8x16xf32>
    %676 = arith.divf %674, %675 : vector<8x16xf32>
    %677 = vector.extract_strided_slice %658 {offsets = [0, 32], sizes = [8, 16], strides = [1, 1]} : vector<8x48xf32> to vector<8x16xf32>
    %678 = vector.extract_strided_slice %660 {offsets = [0, 32], sizes = [8, 16], strides = [1, 1]} : vector<8x48xf32> to vector<8x16xf32>
    %679 = arith.mulf %668, %678 : vector<8x16xf32>
    %680 = arith.addf %677, %679 : vector<8x16xf32>
    %681 = math.tanh %680 : vector<8x16xf32>
    %cst_147 = arith.constant 1.000000e+00 : f32
    %682 = vector.broadcast %cst_147 : f32 to vector<8x16xf32>
    %683 = arith.subf %682, %676 : vector<8x16xf32>
    %684 = arith.mulf %683, %681 : vector<8x16xf32>
    %685 = arith.mulf %676, %653 : vector<8x16xf32>
    %686 = arith.addf %684, %685 : vector<8x16xf32>
    %687 = arith.sitofp %654 : i32 to f32
    %688 = vector.broadcast %687 : f32 to vector<8x1xf32>
    %689 = arith.cmpf ogt, %0, %688 : vector<8x1xf32>
    %690 = arith.extui %689 : vector<8x1xi1> to vector<8x1xi32>
    %691 = arith.sitofp %690 : vector<8x1xi32> to vector<8x1xf32>
    %692 = vector.broadcast %691 : vector<8x1xf32> to vector<8x16xf32>
    %693 = arith.mulf %692, %686 : vector<8x16xf32>
    %694 = arith.index_cast %656 : i32 to index
    %c16_148 = arith.constant 16 : index
    %695 = vector.load %arg17[%694, %c16_148] : memref<64x32xf32, #tpu.memory_space<vmem>>, vector<8x16xf32>
    tpu.vector_store %arg17[%694, %c16_148], %693 {strides = array<i32>} : memref<64x32xf32, #tpu.memory_space<vmem>>, vector<8x16xf32>,
    %696 = vector.broadcast %691 : vector<8x1xf32> to vector<8x16xf32>
    %697 = arith.mulf %696, %686 : vector<8x16xf32>
    %cst_149 = arith.constant 1.000000e+00 : f32
    %698 = vector.broadcast %cst_149 : f32 to vector<8x1xf32>
    %699 = arith.subf %698, %691 : vector<8x1xf32>
    %700 = vector.broadcast %699 : vector<8x1xf32> to vector<8x16xf32>
    %701 = arith.mulf %700, %653 : vector<8x16xf32>
    %702 = arith.addf %697, %701 : vector<8x16xf32>
    %c6_i32_150 = arith.constant 6 : i32
    %c7_i32_151 = arith.constant 7 : i32
    %703 = arith.subi %c7_i32_151, %c6_i32_150 : i32
    %c8_i32_152 = arith.constant 8 : i32
    %704 = arith.muli %703, %c8_i32_152 : i32
    %705 = tpu.assume_multiple %704, 8 : i32
    %706 = arith.index_cast %705 : i32 to index
    %c0_153 = arith.constant 0 : index
    %707 = vector.load %arg16[%706, %c0_153] : memref<64x48xf32, #tpu.memory_space<vmem>>, vector<8x48xf32>
    %cst_154 = arith.constant dense<0.000000e+00> : vector<8x48xf32>
    %708 = tpu.matmul %702, %404, %cst_154 {dimension_numbers = #tpu.dot_dimension_numbers<[1], [0], [0], [1], [0, 0, 1, 1], [], []>} : vector<8x16xf32>, vector<16x48xf32>, vector<8x48xf32> -> vector<8x48xf32>
    %709 = arith.addf %708, %407 : vector<8x48xf32>
    %710 = vector.extract_strided_slice %707 {offsets = [0, 0], sizes = [8, 16], strides = [1, 1]} : vector<8x48xf32> to vector<8x16xf32>
    %711 = vector.extract_strided_slice %709 {offsets = [0, 0], sizes = [8, 16], strides = [1, 1]} : vector<8x48xf32> to vector<8x16xf32>
    %712 = arith.addf %710, %711 : vector<8x16xf32>
    %713 = arith.negf %712 : vector<8x16xf32>
    %714 = math.exp %713 : vector<8x16xf32>
    %cst_155 = arith.constant 1.000000e+00 : f32
    %715 = vector.broadcast %cst_155 : f32 to vector<8x16xf32>
    %716 = arith.addf %715, %714 : vector<8x16xf32>
    %717 = arith.divf %715, %716 : vector<8x16xf32>
    %718 = vector.extract_strided_slice %707 {offsets = [0, 16], sizes = [8, 16], strides = [1, 1]} : vector<8x48xf32> to vector<8x16xf32>
    %719 = vector.extract_strided_slice %709 {offsets = [0, 16], sizes = [8, 16], strides = [1, 1]} : vector<8x48xf32> to vector<8x16xf32>
    %720 = arith.addf %718, %719 : vector<8x16xf32>
    %721 = arith.negf %720 : vector<8x16xf32>
    %722 = math.exp %721 : vector<8x16xf32>
    %cst_156 = arith.constant 1.000000e+00 : f32
    %723 = vector.broadcast %cst_156 : f32 to vector<8x16xf32>
    %724 = arith.addf %723, %722 : vector<8x16xf32>
    %725 = arith.divf %723, %724 : vector<8x16xf32>
    %726 = vector.extract_strided_slice %707 {offsets = [0, 32], sizes = [8, 16], strides = [1, 1]} : vector<8x48xf32> to vector<8x16xf32>
    %727 = vector.extract_strided_slice %709 {offsets = [0, 32], sizes = [8, 16], strides = [1, 1]} : vector<8x48xf32> to vector<8x16xf32>
    %728 = arith.mulf %717, %727 : vector<8x16xf32>
    %729 = arith.addf %726, %728 : vector<8x16xf32>
    %730 = math.tanh %729 : vector<8x16xf32>
    %cst_157 = arith.constant 1.000000e+00 : f32
    %731 = vector.broadcast %cst_157 : f32 to vector<8x16xf32>
    %732 = arith.subf %731, %725 : vector<8x16xf32>
    %733 = arith.mulf %732, %730 : vector<8x16xf32>
    %734 = arith.mulf %725, %702 : vector<8x16xf32>
    %735 = arith.addf %733, %734 : vector<8x16xf32>
    %736 = arith.sitofp %703 : i32 to f32
    %737 = vector.broadcast %736 : f32 to vector<8x1xf32>
    %738 = arith.cmpf ogt, %0, %737 : vector<8x1xf32>
    %739 = arith.extui %738 : vector<8x1xi1> to vector<8x1xi32>
    %740 = arith.sitofp %739 : vector<8x1xi32> to vector<8x1xf32>
    %741 = vector.broadcast %740 : vector<8x1xf32> to vector<8x16xf32>
    %742 = arith.mulf %741, %735 : vector<8x16xf32>
    %743 = arith.index_cast %705 : i32 to index
    %c16_158 = arith.constant 16 : index
    %744 = vector.load %arg17[%743, %c16_158] : memref<64x32xf32, #tpu.memory_space<vmem>>, vector<8x16xf32>
    tpu.vector_store %arg17[%743, %c16_158], %742 {strides = array<i32>} : memref<64x32xf32, #tpu.memory_space<vmem>>, vector<8x16xf32>,
    %745 = vector.broadcast %740 : vector<8x1xf32> to vector<8x16xf32>
    %746 = arith.mulf %745, %735 : vector<8x16xf32>
    %cst_159 = arith.constant 1.000000e+00 : f32
    %747 = vector.broadcast %cst_159 : f32 to vector<8x1xf32>
    %748 = arith.subf %747, %740 : vector<8x1xf32>
    %749 = vector.broadcast %748 : vector<8x1xf32> to vector<8x16xf32>
    %750 = arith.mulf %749, %702 : vector<8x16xf32>
    %751 = arith.addf %746, %750 : vector<8x16xf32>
    %c7_i32_160 = arith.constant 7 : i32
    %c7_i32_161 = arith.constant 7 : i32
    %752 = arith.subi %c7_i32_161, %c7_i32_160 : i32
    %c8_i32_162 = arith.constant 8 : i32
    %753 = arith.muli %752, %c8_i32_162 : i32
    %754 = tpu.assume_multiple %753, 8 : i32
    %755 = arith.index_cast %754 : i32 to index
    %c0_163 = arith.constant 0 : index
    %756 = vector.load %arg16[%755, %c0_163] : memref<64x48xf32, #tpu.memory_space<vmem>>, vector<8x48xf32>
    %cst_164 = arith.constant dense<0.000000e+00> : vector<8x48xf32>
    %757 = tpu.matmul %751, %404, %cst_164 {dimension_numbers = #tpu.dot_dimension_numbers<[1], [0], [0], [1], [0, 0, 1, 1], [], []>} : vector<8x16xf32>, vector<16x48xf32>, vector<8x48xf32> -> vector<8x48xf32>
    %758 = arith.addf %757, %407 : vector<8x48xf32>
    %759 = vector.extract_strided_slice %756 {offsets = [0, 0], sizes = [8, 16], strides = [1, 1]} : vector<8x48xf32> to vector<8x16xf32>
    %760 = vector.extract_strided_slice %758 {offsets = [0, 0], sizes = [8, 16], strides = [1, 1]} : vector<8x48xf32> to vector<8x16xf32>
    %761 = arith.addf %759, %760 : vector<8x16xf32>
    %762 = arith.negf %761 : vector<8x16xf32>
    %763 = math.exp %762 : vector<8x16xf32>
    %cst_165 = arith.constant 1.000000e+00 : f32
    %764 = vector.broadcast %cst_165 : f32 to vector<8x16xf32>
    %765 = arith.addf %764, %763 : vector<8x16xf32>
    %766 = arith.divf %764, %765 : vector<8x16xf32>
    %767 = vector.extract_strided_slice %756 {offsets = [0, 16], sizes = [8, 16], strides = [1, 1]} : vector<8x48xf32> to vector<8x16xf32>
    %768 = vector.extract_strided_slice %758 {offsets = [0, 16], sizes = [8, 16], strides = [1, 1]} : vector<8x48xf32> to vector<8x16xf32>
    %769 = arith.addf %767, %768 : vector<8x16xf32>
    %770 = arith.negf %769 : vector<8x16xf32>
    %771 = math.exp %770 : vector<8x16xf32>
    %cst_166 = arith.constant 1.000000e+00 : f32
    %772 = vector.broadcast %cst_166 : f32 to vector<8x16xf32>
    %773 = arith.addf %772, %771 : vector<8x16xf32>
    %774 = arith.divf %772, %773 : vector<8x16xf32>
    %775 = vector.extract_strided_slice %756 {offsets = [0, 32], sizes = [8, 16], strides = [1, 1]} : vector<8x48xf32> to vector<8x16xf32>
    %776 = vector.extract_strided_slice %758 {offsets = [0, 32], sizes = [8, 16], strides = [1, 1]} : vector<8x48xf32> to vector<8x16xf32>
    %777 = arith.mulf %766, %776 : vector<8x16xf32>
    %778 = arith.addf %775, %777 : vector<8x16xf32>
    %779 = math.tanh %778 : vector<8x16xf32>
    %cst_167 = arith.constant 1.000000e+00 : f32
    %780 = vector.broadcast %cst_167 : f32 to vector<8x16xf32>
    %781 = arith.subf %780, %774 : vector<8x16xf32>
    %782 = arith.mulf %781, %779 : vector<8x16xf32>
    %783 = arith.mulf %774, %751 : vector<8x16xf32>
    %784 = arith.addf %782, %783 : vector<8x16xf32>
    %785 = arith.sitofp %752 : i32 to f32
    %786 = vector.broadcast %785 : f32 to vector<8x1xf32>
    %787 = arith.cmpf ogt, %0, %786 : vector<8x1xf32>
    %788 = arith.extui %787 : vector<8x1xi1> to vector<8x1xi32>
    %789 = arith.sitofp %788 : vector<8x1xi32> to vector<8x1xf32>
    %790 = vector.broadcast %789 : vector<8x1xf32> to vector<8x16xf32>
    %791 = arith.mulf %790, %784 : vector<8x16xf32>
    %792 = arith.index_cast %754 : i32 to index
    %c16_168 = arith.constant 16 : index
    %793 = vector.load %arg17[%792, %c16_168] : memref<64x32xf32, #tpu.memory_space<vmem>>, vector<8x16xf32>
    tpu.vector_store %arg17[%792, %c16_168], %791 {strides = array<i32>} : memref<64x32xf32, #tpu.memory_space<vmem>>, vector<8x16xf32>,
    %794 = vector.broadcast %789 : vector<8x1xf32> to vector<8x16xf32>
    %795 = arith.mulf %794, %784 : vector<8x16xf32>
    %cst_169 = arith.constant 1.000000e+00 : f32
    %796 = vector.broadcast %cst_169 : f32 to vector<8x1xf32>
    %797 = arith.subf %796, %789 : vector<8x1xf32>
    %798 = vector.broadcast %797 : vector<8x1xf32> to vector<8x16xf32>
    %799 = arith.mulf %798, %751 : vector<8x16xf32>
    %800 = arith.addf %795, %799 : vector<8x16xf32>
    %c8_i32_170 = arith.constant 8 : i32
    %c0_171 = arith.constant 0 : index
    %c0_172 = arith.constant 0 : index
    %801 = vector.load %arg17[%c0_171, %c0_172] : memref<64x32xf32, #tpu.memory_space<vmem>>, vector<64x32xf32>
    %c0_173 = arith.constant 0 : index
    %c0_174 = arith.constant 0 : index
    %802 = vector.load %arg11[%c0_173, %c0_174] : memref<32x16xf32, #tpu.memory_space<vmem>>, vector<32x16xf32>
    %cst_175 = arith.constant dense<0.000000e+00> : vector<64x16xf32>
    %803 = tpu.matmul %801, %802, %cst_175 {dimension_numbers = #tpu.dot_dimension_numbers<[1], [0], [0], [1], [0, 0, 1, 1], [], []>} : vector<64x32xf32>, vector<32x16xf32>, vector<64x16xf32> -> vector<64x16xf32>
    %c0_176 = arith.constant 0 : index
    %c0_177 = arith.constant 0 : index
    %804 = vector.load %arg12[%c0_176, %c0_177] : memref<1x16xf32, #tpu.memory_space<vmem>>, vector<1x16xf32>
    %805 = vector.broadcast %804 : vector<1x16xf32> to vector<64x16xf32>
    %806 = arith.addf %803, %805 : vector<64x16xf32>
    %807 = math.tanh %806 : vector<64x16xf32>
    %c0_178 = arith.constant 0 : index
    %c0_179 = arith.constant 0 : index
    %808 = vector.load %arg13[%c0_178, %c0_179] : memref<1x16xf32, #tpu.memory_space<vmem>>, vector<1x16xf32>
    %809 = vector.extract_strided_slice %807 {offsets = [0, 0], sizes = [8, 16], strides = [1, 1]} : vector<64x16xf32> to vector<8x16xf32>
    %810 = vector.broadcast %808 : vector<1x16xf32> to vector<8x16xf32>
    %811 = arith.mulf %809, %810 : vector<8x16xf32>
    %cst_180 = arith.constant dense<0.000000e+00> : vector<8xf32>
    %812 = vector.multi_reduction <add>, %811, %cst_180 [1] : vector<8x16xf32> to vector<8xf32>
    %813 = vector.shape_cast %812 : vector<8xf32> to vector<8x1xf32>
    %c0_181 = arith.constant 0 : index
    %c0_182 = arith.constant 0 : index
    %814 = vector.load %arg15[%c0_181, %c0_182] : memref<8x8xf32, #tpu.memory_space<vmem>>, vector<8x1xf32>
    tpu.vector_store %arg15[%c0_181, %c0_182], %813 {strides = array<i32>} : memref<8x8xf32, #tpu.memory_space<vmem>>, vector<8x1xf32>,
    %815 = vector.extract_strided_slice %807 {offsets = [8, 0], sizes = [8, 16], strides = [1, 1]} : vector<64x16xf32> to vector<8x16xf32>
    %816 = vector.broadcast %808 : vector<1x16xf32> to vector<8x16xf32>
    %817 = arith.mulf %815, %816 : vector<8x16xf32>
    %cst_183 = arith.constant dense<0.000000e+00> : vector<8xf32>
    %818 = vector.multi_reduction <add>, %817, %cst_183 [1] : vector<8x16xf32> to vector<8xf32>
    %819 = vector.shape_cast %818 : vector<8xf32> to vector<8x1xf32>
    %c0_184 = arith.constant 0 : index
    %c1 = arith.constant 1 : index
    %820 = vector.load %arg15[%c0_184, %c1] : memref<8x8xf32, #tpu.memory_space<vmem>>, vector<8x1xf32>
    tpu.vector_store %arg15[%c0_184, %c1], %819 {strides = array<i32>} : memref<8x8xf32, #tpu.memory_space<vmem>>, vector<8x1xf32>,
    %821 = vector.extract_strided_slice %807 {offsets = [16, 0], sizes = [8, 16], strides = [1, 1]} : vector<64x16xf32> to vector<8x16xf32>
    %822 = vector.broadcast %808 : vector<1x16xf32> to vector<8x16xf32>
    %823 = arith.mulf %821, %822 : vector<8x16xf32>
    %cst_185 = arith.constant dense<0.000000e+00> : vector<8xf32>
    %824 = vector.multi_reduction <add>, %823, %cst_185 [1] : vector<8x16xf32> to vector<8xf32>
    %825 = vector.shape_cast %824 : vector<8xf32> to vector<8x1xf32>
    %c0_186 = arith.constant 0 : index
    %c2 = arith.constant 2 : index
    %826 = vector.load %arg15[%c0_186, %c2] : memref<8x8xf32, #tpu.memory_space<vmem>>, vector<8x1xf32>
    tpu.vector_store %arg15[%c0_186, %c2], %825 {strides = array<i32>} : memref<8x8xf32, #tpu.memory_space<vmem>>, vector<8x1xf32>,
    %827 = vector.extract_strided_slice %807 {offsets = [24, 0], sizes = [8, 16], strides = [1, 1]} : vector<64x16xf32> to vector<8x16xf32>
    %828 = vector.broadcast %808 : vector<1x16xf32> to vector<8x16xf32>
    %829 = arith.mulf %827, %828 : vector<8x16xf32>
    %cst_187 = arith.constant dense<0.000000e+00> : vector<8xf32>
    %830 = vector.multi_reduction <add>, %829, %cst_187 [1] : vector<8x16xf32> to vector<8xf32>
    %831 = vector.shape_cast %830 : vector<8xf32> to vector<8x1xf32>
    %c0_188 = arith.constant 0 : index
    %c3 = arith.constant 3 : index
    %832 = vector.load %arg15[%c0_188, %c3] : memref<8x8xf32, #tpu.memory_space<vmem>>, vector<8x1xf32>
    tpu.vector_store %arg15[%c0_188, %c3], %831 {strides = array<i32>} : memref<8x8xf32, #tpu.memory_space<vmem>>, vector<8x1xf32>,
    %833 = vector.extract_strided_slice %807 {offsets = [32, 0], sizes = [8, 16], strides = [1, 1]} : vector<64x16xf32> to vector<8x16xf32>
    %834 = vector.broadcast %808 : vector<1x16xf32> to vector<8x16xf32>
    %835 = arith.mulf %833, %834 : vector<8x16xf32>
    %cst_189 = arith.constant dense<0.000000e+00> : vector<8xf32>
    %836 = vector.multi_reduction <add>, %835, %cst_189 [1] : vector<8x16xf32> to vector<8xf32>
    %837 = vector.shape_cast %836 : vector<8xf32> to vector<8x1xf32>
    %c0_190 = arith.constant 0 : index
    %c4 = arith.constant 4 : index
    %838 = vector.load %arg15[%c0_190, %c4] : memref<8x8xf32, #tpu.memory_space<vmem>>, vector<8x1xf32>
    tpu.vector_store %arg15[%c0_190, %c4], %837 {strides = array<i32>} : memref<8x8xf32, #tpu.memory_space<vmem>>, vector<8x1xf32>,
    %839 = vector.extract_strided_slice %807 {offsets = [40, 0], sizes = [8, 16], strides = [1, 1]} : vector<64x16xf32> to vector<8x16xf32>
    %840 = vector.broadcast %808 : vector<1x16xf32> to vector<8x16xf32>
    %841 = arith.mulf %839, %840 : vector<8x16xf32>
    %cst_191 = arith.constant dense<0.000000e+00> : vector<8xf32>
    %842 = vector.multi_reduction <add>, %841, %cst_191 [1] : vector<8x16xf32> to vector<8xf32>
    %843 = vector.shape_cast %842 : vector<8xf32> to vector<8x1xf32>
    %c0_192 = arith.constant 0 : index
    %c5 = arith.constant 5 : index
    %844 = vector.load %arg15[%c0_192, %c5] : memref<8x8xf32, #tpu.memory_space<vmem>>, vector<8x1xf32>
    tpu.vector_store %arg15[%c0_192, %c5], %843 {strides = array<i32>} : memref<8x8xf32, #tpu.memory_space<vmem>>, vector<8x1xf32>,
    %845 = vector.extract_strided_slice %807 {offsets = [48, 0], sizes = [8, 16], strides = [1, 1]} : vector<64x16xf32> to vector<8x16xf32>
    %846 = vector.broadcast %808 : vector<1x16xf32> to vector<8x16xf32>
    %847 = arith.mulf %845, %846 : vector<8x16xf32>
    %cst_193 = arith.constant dense<0.000000e+00> : vector<8xf32>
    %848 = vector.multi_reduction <add>, %847, %cst_193 [1] : vector<8x16xf32> to vector<8xf32>
    %849 = vector.shape_cast %848 : vector<8xf32> to vector<8x1xf32>
    %c0_194 = arith.constant 0 : index
    %c6 = arith.constant 6 : index
    %850 = vector.load %arg15[%c0_194, %c6] : memref<8x8xf32, #tpu.memory_space<vmem>>, vector<8x1xf32>
    tpu.vector_store %arg15[%c0_194, %c6], %849 {strides = array<i32>} : memref<8x8xf32, #tpu.memory_space<vmem>>, vector<8x1xf32>,
    %851 = vector.extract_strided_slice %807 {offsets = [56, 0], sizes = [8, 16], strides = [1, 1]} : vector<64x16xf32> to vector<8x16xf32>
    %852 = vector.broadcast %808 : vector<1x16xf32> to vector<8x16xf32>
    %853 = arith.mulf %851, %852 : vector<8x16xf32>
    %cst_195 = arith.constant dense<0.000000e+00> : vector<8xf32>
    %854 = vector.multi_reduction <add>, %853, %cst_195 [1] : vector<8x16xf32> to vector<8xf32>
    %855 = vector.shape_cast %854 : vector<8xf32> to vector<8x1xf32>
    %c0_196 = arith.constant 0 : index
    %c7 = arith.constant 7 : index
    %856 = vector.load %arg15[%c0_196, %c7] : memref<8x8xf32, #tpu.memory_space<vmem>>, vector<8x1xf32>
    tpu.vector_store %arg15[%c0_196, %c7], %855 {strides = array<i32>} : memref<8x8xf32, #tpu.memory_space<vmem>>, vector<8x1xf32>,
    %c0_197 = arith.constant 0 : index
    %c0_198 = arith.constant 0 : index
    %857 = vector.load %arg15[%c0_197, %c0_198] : memref<8x8xf32, #tpu.memory_space<vmem>>, vector<8x8xf32>
    %858 = tpu.iota {dimensions = array<i32: 1>} : vector<8x8xi32>
    %859 = arith.sitofp %858 : vector<8x8xi32> to vector<8x8xf32>
    %860 = vector.broadcast %0 : vector<8x1xf32> to vector<8x8xf32>
    %861 = arith.cmpf olt, %859, %860 : vector<8x8xf32>
    %862 = arith.extui %861 : vector<8x8xi1> to vector<8x8xi32>
    %863 = arith.sitofp %862 : vector<8x8xi32> to vector<8x8xf32>
    %864 = arith.mulf %857, %863 : vector<8x8xf32>
    %cst_199 = arith.constant 1.000000e+00 : f32
    %865 = vector.broadcast %cst_199 : f32 to vector<8x8xf32>
    %866 = arith.subf %865, %863 : vector<8x8xf32>
    %cst_200 = arith.constant -1.000000e+20 : f32
    %867 = vector.broadcast %cst_200 : f32 to vector<8x8xf32>
    %868 = arith.mulf %866, %867 : vector<8x8xf32>
    %869 = arith.addf %864, %868 : vector<8x8xf32>
    %cst_201 = arith.constant dense<0xFF800000> : vector<8xf32>
    %870 = vector.multi_reduction <maximumf>, %869, %cst_201 [1] : vector<8x8xf32> to vector<8xf32>
    %871 = vector.shape_cast %870 : vector<8xf32> to vector<8x1xf32>
    %872 = vector.broadcast %871 : vector<8x1xf32> to vector<8x8xf32>
    %873 = arith.subf %869, %872 : vector<8x8xf32>
    %874 = math.exp %873 : vector<8x8xf32>
    %cst_202 = arith.constant dense<0.000000e+00> : vector<8xf32>
    %875 = vector.multi_reduction <add>, %874, %cst_202 [1] : vector<8x8xf32> to vector<8xf32>
    %876 = vector.shape_cast %875 : vector<8xf32> to vector<8x1xf32>
    %877 = vector.broadcast %876 : vector<8x1xf32> to vector<8x8xf32>
    %878 = arith.divf %874, %877 : vector<8x8xf32>
    %c0_203 = arith.constant 0 : index
    %c0_204 = arith.constant 0 : index
    %879 = vector.load %arg15[%c0_203, %c0_204] : memref<8x8xf32, #tpu.memory_space<vmem>>, vector<8x8xf32>
    tpu.vector_store %arg15[%c0_203, %c0_204], %878 {strides = array<i32>} : memref<8x8xf32, #tpu.memory_space<vmem>>, vector<8x8xf32>,
    %cst_205 = arith.constant 0.000000e+00 : f32
    %880 = vector.broadcast %cst_205 : f32 to vector<8x32xf32>
    %881 = vector.extract_strided_slice %878 {offsets = [0, 0], sizes = [8, 1], strides = [1, 1]} : vector<8x8xf32> to vector<8x1xf32>
    %882 = vector.extract_strided_slice %801 {offsets = [0, 0], sizes = [8, 32], strides = [1, 1]} : vector<64x32xf32> to vector<8x32xf32>
    %883 = vector.broadcast %881 : vector<8x1xf32> to vector<8x32xf32>
    %884 = arith.mulf %883, %882 : vector<8x32xf32>
    %885 = arith.addf %880, %884 : vector<8x32xf32>
    %886 = vector.extract_strided_slice %878 {offsets = [0, 1], sizes = [8, 1], strides = [1, 1]} : vector<8x8xf32> to vector<8x1xf32>
    %887 = vector.extract_strided_slice %801 {offsets = [8, 0], sizes = [8, 32], strides = [1, 1]} : vector<64x32xf32> to vector<8x32xf32>
    %888 = vector.broadcast %886 : vector<8x1xf32> to vector<8x32xf32>
    %889 = arith.mulf %888, %887 : vector<8x32xf32>
    %890 = arith.addf %885, %889 : vector<8x32xf32>
    %891 = vector.extract_strided_slice %878 {offsets = [0, 2], sizes = [8, 1], strides = [1, 1]} : vector<8x8xf32> to vector<8x1xf32>
    %892 = vector.extract_strided_slice %801 {offsets = [16, 0], sizes = [8, 32], strides = [1, 1]} : vector<64x32xf32> to vector<8x32xf32>
    %893 = vector.broadcast %891 : vector<8x1xf32> to vector<8x32xf32>
    %894 = arith.mulf %893, %892 : vector<8x32xf32>
    %895 = arith.addf %890, %894 : vector<8x32xf32>
    %896 = vector.extract_strided_slice %878 {offsets = [0, 3], sizes = [8, 1], strides = [1, 1]} : vector<8x8xf32> to vector<8x1xf32>
    %897 = vector.extract_strided_slice %801 {offsets = [24, 0], sizes = [8, 32], strides = [1, 1]} : vector<64x32xf32> to vector<8x32xf32>
    %898 = vector.broadcast %896 : vector<8x1xf32> to vector<8x32xf32>
    %899 = arith.mulf %898, %897 : vector<8x32xf32>
    %900 = arith.addf %895, %899 : vector<8x32xf32>
    %901 = vector.extract_strided_slice %878 {offsets = [0, 4], sizes = [8, 1], strides = [1, 1]} : vector<8x8xf32> to vector<8x1xf32>
    %902 = vector.extract_strided_slice %801 {offsets = [32, 0], sizes = [8, 32], strides = [1, 1]} : vector<64x32xf32> to vector<8x32xf32>
    %903 = vector.broadcast %901 : vector<8x1xf32> to vector<8x32xf32>
    %904 = arith.mulf %903, %902 : vector<8x32xf32>
    %905 = arith.addf %900, %904 : vector<8x32xf32>
    %906 = vector.extract_strided_slice %878 {offsets = [0, 5], sizes = [8, 1], strides = [1, 1]} : vector<8x8xf32> to vector<8x1xf32>
    %907 = vector.extract_strided_slice %801 {offsets = [40, 0], sizes = [8, 32], strides = [1, 1]} : vector<64x32xf32> to vector<8x32xf32>
    %908 = vector.broadcast %906 : vector<8x1xf32> to vector<8x32xf32>
    %909 = arith.mulf %908, %907 : vector<8x32xf32>
    %910 = arith.addf %905, %909 : vector<8x32xf32>
    %911 = vector.extract_strided_slice %878 {offsets = [0, 6], sizes = [8, 1], strides = [1, 1]} : vector<8x8xf32> to vector<8x1xf32>
    %912 = vector.extract_strided_slice %801 {offsets = [48, 0], sizes = [8, 32], strides = [1, 1]} : vector<64x32xf32> to vector<8x32xf32>
    %913 = vector.broadcast %911 : vector<8x1xf32> to vector<8x32xf32>
    %914 = arith.mulf %913, %912 : vector<8x32xf32>
    %915 = arith.addf %910, %914 : vector<8x32xf32>
    %916 = vector.extract_strided_slice %878 {offsets = [0, 7], sizes = [8, 1], strides = [1, 1]} : vector<8x8xf32> to vector<8x1xf32>
    %917 = vector.extract_strided_slice %801 {offsets = [56, 0], sizes = [8, 32], strides = [1, 1]} : vector<64x32xf32> to vector<8x32xf32>
    %918 = vector.broadcast %916 : vector<8x1xf32> to vector<8x32xf32>
    %919 = arith.mulf %918, %917 : vector<8x32xf32>
    %920 = arith.addf %915, %919 : vector<8x32xf32>
    %c0_206 = arith.constant 0 : index
    %c0_207 = arith.constant 0 : index
    %921 = vector.load %arg14[%c0_206, %c0_207] : memref<8x32xf32, #tpu.memory_space<vmem>>, vector<8x32xf32>
    tpu.vector_store %arg14[%c0_206, %c0_207], %920 {strides = array<i32>} : memref<8x32xf32, #tpu.memory_space<vmem>>, vector<8x32xf32>,
    return
  }
  func.func @transform_0(%arg0: i32) -> (i32, i32, i32) {
    %c0_i32 = arith.constant 0 : i32
    %c0_i32_0 = arith.constant 0 : i32
    %c0_i32_1 = arith.constant 0 : i32
    return %c0_i32, %arg0, %c0_i32_0 : i32, i32, i32
  }
  func.func @transform_1(%arg0: i32) -> (i32, i32) {
    %c0_i32 = arith.constant 0 : i32
    %c0_i32_0 = arith.constant 0 : i32
    return %arg0, %c0_i32 : i32, i32
  }
  func.func @transform_2(%arg0: i32) -> (i32, i32) {
    %c0_i32 = arith.constant 0 : i32
    %c0_i32_0 = arith.constant 0 : i32
    %c0_i32_1 = arith.constant 0 : i32
    return %c0_i32, %c0_i32_0 : i32, i32
  }
  func.func @transform_3(%arg0: i32) -> (i32, i32) {
    %c0_i32 = arith.constant 0 : i32
    %c0_i32_0 = arith.constant 0 : i32
    %c0_i32_1 = arith.constant 0 : i32
    return %c0_i32, %c0_i32_0 : i32, i32
  }
  func.func @transform_4(%arg0: i32) -> (i32, i32) {
    %c0_i32 = arith.constant 0 : i32
    %c0_i32_0 = arith.constant 0 : i32
    %c0_i32_1 = arith.constant 0 : i32
    return %c0_i32, %c0_i32_0 : i32, i32
  }
  func.func @transform_5(%arg0: i32) -> (i32, i32) {
    %c0_i32 = arith.constant 0 : i32
    %c0_i32_0 = arith.constant 0 : i32
    %c0_i32_1 = arith.constant 0 : i32
    return %c0_i32, %c0_i32_0 : i32, i32
  }
  func.func @transform_6(%arg0: i32) -> (i32, i32) {
    %c0_i32 = arith.constant 0 : i32
    %c0_i32_0 = arith.constant 0 : i32
    %c0_i32_1 = arith.constant 0 : i32
    return %c0_i32, %c0_i32_0 : i32, i32
  }
  func.func @transform_7(%arg0: i32) -> (i32, i32) {
    %c0_i32 = arith.constant 0 : i32
    %c0_i32_0 = arith.constant 0 : i32
    %c0_i32_1 = arith.constant 0 : i32
    return %c0_i32, %c0_i32_0 : i32, i32
  }
  func.func @transform_8(%arg0: i32) -> (i32, i32) {
    %c0_i32 = arith.constant 0 : i32
    %c0_i32_0 = arith.constant 0 : i32
    %c0_i32_1 = arith.constant 0 : i32
    return %c0_i32, %c0_i32_0 : i32, i32
  }
  func.func @transform_9(%arg0: i32) -> (i32, i32) {
    %c0_i32 = arith.constant 0 : i32
    %c0_i32_0 = arith.constant 0 : i32
    %c0_i32_1 = arith.constant 0 : i32
    return %c0_i32, %c0_i32_0 : i32, i32
  }
  func.func @transform_10(%arg0: i32) -> (i32, i32) {
    %c0_i32 = arith.constant 0 : i32
    %c0_i32_0 = arith.constant 0 : i32
    %c0_i32_1 = arith.constant 0 : i32
    return %c0_i32, %c0_i32_0 : i32, i32
  }
  func.func @transform_11(%arg0: i32) -> (i32, i32) {
    %c0_i32 = arith.constant 0 : i32
    %c0_i32_0 = arith.constant 0 : i32
    %c0_i32_1 = arith.constant 0 : i32
    return %c0_i32, %c0_i32_0 : i32, i32
  }
  func.func @transform_12(%arg0: i32) -> (i32, i32) {
    %c0_i32 = arith.constant 0 : i32
    %c0_i32_0 = arith.constant 0 : i32
    %c0_i32_1 = arith.constant 0 : i32
    return %c0_i32, %c0_i32_0 : i32, i32
  }
  func.func @transform_13(%arg0: i32) -> (i32, i32) {
    %c0_i32 = arith.constant 0 : i32
    %c0_i32_0 = arith.constant 0 : i32
    return %arg0, %c0_i32 : i32, i32
  }
  func.func @transform_14(%arg0: i32) -> (i32, i32) {
    %c0_i32 = arith.constant 0 : i32
    %c0_i32_0 = arith.constant 0 : i32
    return %arg0, %c0_i32 : i32, i32
  }
}

</mosaic_0001>

<bundles_post_ra>
// kernel: han_forward.3
= control target key start
LH: loop header
LB: loop body
LE: loop exit
PB: predicated region body
PF: predicated region fallthrough
CT: control target
= control target key end

     0   :  { %20 = vsyncpa [#allocation5], 0  ;;  %s2801_s0 = inlined_call_operand.hbm [shape: f32[4,8,32], index: 0, kind: input, shape index: {}]   ;;  %s2802_s1 = inlined_call_operand.hbm [shape: f32[8,1], index: 1, kind: input, shape index: {}]   ;;  %s2803_s2 = inlined_call_operand.hbm [shape: f32[32,48], index: 2, kind: input, shape index: {}]   ;;  %s2804_s3 = inlined_call_operand.hbm [shape: f32[16,48], index: 3, kind: input, shape index: {}]   ;;  %s2805_s4 = inlined_call_operand.hbm [shape: f32[1,48], index: 4, kind: input, shape index: {}]   ;;  %s2806_s5 = inlined_call_operand.hbm [shape: f32[1,48], index: 5, kind: input, shape index: {}]   ;;  %s2807_s6 = inlined_call_operand.hbm [shape: f32[32,48], index: 6, kind: input, shape index: {}]   ;;  %s2808_s7 = inlined_call_operand.hbm [shape: f32[16,48], index: 7, kind: input, shape index: {}]   ;;  %s2809_s8 = inlined_call_operand.hbm [shape: f32[1,48], index: 8, kind: input, shape index: {}]   ;;  %s2810_s9 = inlined_call_operand.hbm [shape: f32[1,48], index: 9, kind: input, shape index: {}]   ;;  %s2811_s10 = inlined_call_operand.hbm [shape: f32[32,16], index: 10, kind: input, shape index: {}]   ;;  %s2812_s11 = inlined_call_operand.hbm [shape: f32[1,16], index: 11, kind: input, shape index: {}]   ;;  %s2813_s12 = inlined_call_operand.hbm [shape: f32[1,16], index: 12, kind: input, shape index: {}]   ;;  %s2814_s13 = inlined_call_operand.hbm [shape: f32[8,32], index: 13, kind: output, shape index: {0}]   ;;  %s2815_s14 = inlined_call_operand.hbm [shape: f32[8,4], index: 14, kind: output, shape index: {1}]  }
   0x1   :  { %21 = vsyncpa [#allocation8], 0 }
   0x2   :  { %22 = vsyncpa [#allocation11], 0 }
   0x3   :  { %23 = vsyncpa [#allocation14], 0 }
   0x4   :  { %24 = vsyncpa [#allocation17], 0 }
   0x5   :  { %25 = vsyncpa [#allocation20], 0 }
   0x6   :  { %26 = vsyncpa [#allocation23], 0 }
   0x7   :  { %27 = vsyncpa [#allocation6], 0 }
   0x8   :  { %28 = vsyncpa [#allocation27], 0  ;;  %s2276_s29 = smov [#allocation7]   ;;  %s1928_s17 = scalar_lea.hbm %s2802_s1, 128 }
   0x9   :  { %s47_s30 = sshll.u32 %s2276_s29, 4  ;;  %p1929_p0 = scmp.ne.s32.totalorder %s2802_s1, %s1928_s17  ;;  %s48_s30 = int_to_ptr.vmem [resolvable:$true] %s47_s30 }
   0xa   :  { %p1932_p1 = scmp.lt.u32.totalorder %s1928_s17, %s2802_s1 }
   0xc   :  { %p1934_p2 = pnand %p1932_p1, %p1929_p0 }
   0xe   :  { %1937 = shalt.err (!%p1934_p2)
}
   0xf   :  { %s1938_s22 = scalar_lea.vmem %s48_s30, 128  ;;  %p1943_p4 = scmp.lt.s32.totalorder %s48_s30, %s48_s30 }
  0x10   :  { %p1939_p3 = scmp.ne.s32.totalorder %s48_s30, %s1938_s22  ;;  %p1944_p5 = scmp.lt.s32.totalorder %s1938_s22, %s1938_s22 }
  0x12   :  { %p1945_p6 = por %p1944_p5, %p1943_p4 }
  0x14   :  { %p1946_p7 = pnand %p1945_p6, %p1939_p3 }
  0x16   :  { %1949 = shalt.err (!%p1946_p7)
}
  0x17   :  { %50 = dma.hbm_to_vmem [thread:$0]  %s2802_s1, 128, %s48_s30, [#allocation8]  }
  0x18   :  { %s2277_s25 = smov [#allocation10]   ;;  %s2278_s27 = smov [#allocation13]  }
  0x19   :  { %s68_s26 = sshll.u32 %s2277_s25, 4  ;;  %s91_s28 = sshll.u32 %s2278_s27, 4  ;;  %s69_s26 = int_to_ptr.vmem [resolvable:$true] %s68_s26  ;;  %s92_s28 = int_to_ptr.vmem [resolvable:$true] %s91_s28 }
  0x1a   :  { %s1950_s16 = scalar_lea.hbm %s2804_s3, 256 }
  0x1b   :  { %p1951_p8 = scmp.ne.s32.totalorder %s2804_s3, %s1950_s16  ;;  %p1954_p9 = scmp.lt.u32.totalorder %s1950_s16, %s2804_s3 }
  0x1d   :  { %p1956_p10 = pnand %p1954_p9, %p1951_p8 }
  0x1f   :  { %1959 = shalt.err (!%p1956_p10)
}
  0x20   :  { %s1960_s1 = scalar_lea.vmem %s69_s26, 256  ;;  %p1965_p12 = scmp.lt.s32.totalorder %s69_s26, %s69_s26 }
  0x21   :  { %p1961_p11 = scmp.ne.s32.totalorder %s69_s26, %s1960_s1  ;;  %p1966_p13 = scmp.lt.s32.totalorder %s1960_s1, %s1960_s1 }
  0x23   :  { %p1967_p0 = por %p1966_p13, %p1965_p12 }
  0x25   :  { %p1968_p1 = pnand %p1967_p0, %p1961_p11 }
  0x27   :  { %1971 = shalt.err (!%p1968_p1)
}
  0x28   :  { %s2279_s30 = smov 128   ;;  %s2280_s21 = smov 8  }
  0x29   :  { %74 = dma.hbm_to_vmem [thread:$0]  %s2804_s3, 256, %s69_s26, [#allocation11], %s2279_s30, %s2279_s30, %s2280_s21  }
  0x2a   :  { %s1972_s27 = scalar_lea.hbm %s2806_s5, 16 }
  0x2b   :  { %p1973_p2 = scmp.ne.s32.totalorder %s2806_s5, %s1972_s27  ;;  %p1976_p3 = scmp.lt.u32.totalorder %s1972_s27, %s2806_s5 }
  0x2d   :  { %p1978_p4 = pnand %p1976_p3, %p1973_p2 }
  0x2f   :  { %1981 = shalt.err (!%p1978_p4)
}
  0x30   :  { %s1982_s18 = scalar_lea.vmem %s92_s28, 16  ;;  %s1986_s19 = scalar_lea.vmem %s92_s28, 32 }
  0x31   :  { %p1983_p5 = scmp.ne.s32.totalorder %s92_s28, %s1982_s18  ;;  %p1987_p6 = scmp.lt.s32.totalorder %s92_s28, %s92_s28 }
  0x32   :  { %p1988_p7 = scmp.lt.s32.totalorder %s1986_s19, %s1982_s18 }
  0x34   :  { %p1989_p8 = por %p1988_p7, %p1987_p6 }
  0x36   :  { %p1990_p9 = pnand %p1989_p8, %p1983_p5 }
  0x38   :  { %1993 = shalt.err (!%p1990_p9)
}
  0x39   :  { %94 = dma.hbm_to_vmem [thread:$0]  %s2806_s5, 16, %s92_s28, [#allocation14]  }
  0x3a   :  { %s2281_s20 = smov [#allocation16]   ;;  %s2282_s22 = smov [#allocation19]  }
  0x3b   :  { %s112_s1 = sshll.u32 %s2281_s20, 4  ;;  %s135_s23 = sshll.u32 %s2282_s22, 4  ;;  %s113_s1 = int_to_ptr.vmem [resolvable:$true] %s112_s1  ;;  %s136_s23 = int_to_ptr.vmem [resolvable:$true] %s135_s23 }
  0x3c   :  { %s1994_s27 = scalar_lea.hbm %s2808_s7, 256 }
  0x3d   :  { %p1995_p10 = scmp.ne.s32.totalorder %s2808_s7, %s1994_s27  ;;  %p1998_p11 = scmp.lt.u32.totalorder %s1994_s27, %s2808_s7 }
  0x3f   :  { %p2000_p12 = pnand %p1998_p11, %p1995_p10 }
  0x41   :  { %2003 = shalt.err (!%p2000_p12)
}
  0x42   :  { %s2004_s5 = scalar_lea.vmem %s113_s1, 256  ;;  %p2009_p0 = scmp.lt.s32.totalorder %s113_s1, %s113_s1 }
  0x43   :  { %p2005_p13 = scmp.ne.s32.totalorder %s113_s1, %s2004_s5  ;;  %p2010_p1 = scmp.lt.s32.totalorder %s2004_s5, %s2004_s5 }
  0x45   :  { %p2011_p2 = por %p2010_p1, %p2009_p0 }
  0x47   :  { %p2012_p3 = pnand %p2011_p2, %p2005_p13 }
  0x49   :  { %2015 = shalt.err (!%p2012_p3)
}
  0x4a   :  { %118 = dma.hbm_to_vmem [thread:$0]  %s2808_s7, 256, %s113_s1, [#allocation17], %s2279_s30, %s2279_s30, %s2280_s21  }
  0x4b   :  { %s2016_s26 = scalar_lea.hbm %s2810_s9, 16 }
  0x4c   :  { %p2017_p4 = scmp.ne.s32.totalorder %s2810_s9, %s2016_s26  ;;  %p2020_p5 = scmp.lt.u32.totalorder %s2016_s26, %s2810_s9 }
  0x4e   :  { %p2022_p6 = pnand %p2020_p5, %p2017_p4 }
  0x50   :  { %2025 = shalt.err (!%p2022_p6)
}
  0x51   :  { %s2026_s27 = scalar_lea.vmem %s136_s23, 16  ;;  %s2030_s29 = scalar_lea.vmem %s136_s23, 32 }
  0x52   :  { %p2027_p7 = scmp.ne.s32.totalorder %s136_s23, %s2026_s27  ;;  %p2031_p8 = scmp.lt.s32.totalorder %s136_s23, %s136_s23 }
  0x53   :  { %p2032_p9 = scmp.lt.s32.totalorder %s2030_s29, %s2026_s27 }
  0x55   :  { %p2033_p10 = por %p2032_p9, %p2031_p8 }
  0x57   :  { %p2034_p11 = pnand %p2033_p10, %p2027_p7 }
  0x59   :  { %2037 = shalt.err (!%p2034_p11)
}
  0x5a   :  { %138 = dma.hbm_to_vmem [thread:$0]  %s2810_s9, 16, %s136_s23, [#allocation20]  }
  0x5b   :  { %s2283_s15 = smov [#allocation22]   ;;  %s2284_s17 = smov [#allocation4]  }
  0x5c   :  { %s157_s16 = sshll.u32 %s2283_s15, 4  ;;  %s34_s5 = sshll.u32 %s2284_s17, 4  ;;  %s158_s16 = int_to_ptr.vmem [resolvable:$true] %s157_s16  ;;  %s35_s5 = int_to_ptr.vmem [resolvable:$true] %s34_s5 }
  0x5d   :  { %s2038_s19 = scalar_lea.hbm %s2812_s11, 16 }
  0x5e   :  { %p2039_p12 = scmp.ne.s32.totalorder %s2812_s11, %s2038_s19  ;;  %p2042_p13 = scmp.lt.u32.totalorder %s2038_s19, %s2812_s11 }
  0x60   :  { %p2044_p0 = pnand %p2042_p13, %p2039_p12 }
  0x62   :  { %2047 = shalt.err (!%p2044_p0)
}
  0x63   :  { %s2048_s9 = scalar_lea.vmem %s158_s16, 16  ;;  %s2052_s23 = scalar_lea.vmem %s158_s16, 32 }
  0x64   :  { %p2049_p1 = scmp.ne.s32.totalorder %s158_s16, %s2048_s9  ;;  %p2053_p2 = scmp.lt.s32.totalorder %s158_s16, %s158_s16 }
  0x65   :  { %p2054_p3 = scmp.lt.s32.totalorder %s2052_s23, %s2048_s9 }
  0x67   :  { %p2055_p4 = por %p2054_p3, %p2053_p2 }
  0x69   :  { %p2056_p5 = pnand %p2055_p4, %p2049_p1 }
  0x6b   :  { %2059 = shalt.err (!%p2056_p5)
}
  0x6c   :  { %160 = dma.hbm_to_vmem [thread:$0]  %s2812_s11, 16, %s158_s16, [#allocation23]  }
  0x6d   :  { %s2060_s7 = scalar_lea.hbm %s2801_s0, 512 }
  0x6e   :  { %p2061_p6 = scmp.ne.s32.totalorder %s2801_s0, %s2060_s7  ;;  %p2064_p7 = scmp.lt.u32.totalorder %s2060_s7, %s2801_s0 }
  0x70   :  { %p2066_p8 = pnand %p2064_p7, %p2061_p6 }
  0x72   :  { %2069 = shalt.err (!%p2066_p8)
}
  0x73   :  { %s2070_s18 = scalar_lea.vmem %s35_s5, 512  ;;  %p2075_p10 = scmp.lt.s32.totalorder %s35_s5, %s35_s5 }
  0x74   :  { %p2071_p9 = scmp.ne.s32.totalorder %s35_s5, %s2070_s18  ;;  %p2076_p11 = scmp.lt.s32.totalorder %s2070_s18, %s2070_s18 }
  0x76   :  { %p2077_p12 = por %p2076_p11, %p2075_p10 }
  0x78   :  { %p2078_p13 = pnand %p2077_p12, %p2071_p9 }
  0x7a   :  { %2081 = shalt.err (!%p2078_p13)
}
  0x7b   :  { %40 = dma.hbm_to_vmem [thread:$0]  %s2801_s0, 512, %s35_s5, [#allocation5], %s2279_s30, %s2279_s30, %s2280_s21  }
  0x7c   :  { %s2285_s19 = smov [#allocation9]   ;;  %s2286_s26 = smov [#allocation12]  }
  0x7d   :  { %s56_s3 = sshll.u32 %s2285_s19, 4  ;;  %s81_s20 = sshll.u32 %s2286_s26, 4  ;;  %s57_s3 = int_to_ptr.vmem [resolvable:$true] %s56_s3  ;;  %s82_s20 = int_to_ptr.vmem [resolvable:$true] %s81_s20 }
  0x7e   :  { %s2082_s23 = scalar_lea.hbm %s2803_s2, 512 }
  0x7f   :  { %p2083_p0 = scmp.ne.s32.totalorder %s2803_s2, %s2082_s23  ;;  %p2086_p1 = scmp.lt.u32.totalorder %s2082_s23, %s2803_s2 }
  0x81   :  { %p2088_p2 = pnand %p2086_p1, %p2083_p0 }
  0x83   :  { %2091 = shalt.err (!%p2088_p2)
}
  0x84   :  { %s2092_s0 = scalar_lea.vmem %s57_s3, 512  ;;  %p2097_p4 = scmp.lt.s32.totalorder %s57_s3, %s57_s3 }
  0x85   :  { %p2093_p3 = scmp.ne.s32.totalorder %s57_s3, %s2092_s0  ;;  %p2098_p5 = scmp.lt.s32.totalorder %s2092_s0, %s2092_s0 }
  0x87   :  { %p2099_p6 = por %p2098_p5, %p2097_p4 }
  0x89   :  { %p2100_p7 = pnand %p2099_p6, %p2093_p3 }
  0x8b   :  { %2103 = shalt.err (!%p2100_p7)
}
  0x8c   :  { %62 = dma.hbm_to_vmem [thread:$0]  %s2803_s2, 512, %s57_s3, [#allocation8], %s2279_s30, %s2279_s30, %s2280_s21  }
  0x8d   :  { %s2104_s17 = scalar_lea.hbm %s2805_s4, 16 }
  0x8e   :  { %p2105_p8 = scmp.ne.s32.totalorder %s2805_s4, %s2104_s17  ;;  %p2108_p9 = scmp.lt.u32.totalorder %s2104_s17, %s2805_s4 }
  0x90   :  { %p2110_p10 = pnand %p2108_p9, %p2105_p8 }
  0x92   :  { %2113 = shalt.err (!%p2110_p10)
}
  0x93   :  { %s2114_s19 = scalar_lea.vmem %s82_s20, 16  ;;  %s2118_s26 = scalar_lea.vmem %s82_s20, 32 }
  0x94   :  { %p2115_p11 = scmp.ne.s32.totalorder %s82_s20, %s2114_s19  ;;  %p2119_p12 = scmp.lt.s32.totalorder %s82_s20, %s82_s20 }
  0x95   :  { %p2120_p13 = scmp.lt.s32.totalorder %s2118_s26, %s2114_s19 }
  0x97   :  { %p2121_p0 = por %p2120_p13, %p2119_p12 }
  0x99   :  { %p2122_p1 = pnand %p2121_p0, %p2115_p11 }
  0x9b   :  { %2125 = shalt.err (!%p2122_p1)
}
  0x9c   :  { %84 = dma.hbm_to_vmem [thread:$0]  %s2805_s4, 16, %s82_s20, [#allocation11]  }
  0x9d   :  { %s2287_s22 = smov [#allocation15]   ;;  %s2288_s23 = smov [#allocation18]  }
  0x9e   :  { %s100_s9 = sshll.u32 %s2287_s22, 4  ;;  %s125_s24 = sshll.u32 %s2288_s23, 4  ;;  %s101_s9 = int_to_ptr.vmem [resolvable:$true] %s100_s9  ;;  %s126_s24 = int_to_ptr.vmem [resolvable:$true] %s125_s24 }
  0x9f   :  { %s2126_s29 = scalar_lea.hbm %s2807_s6, 512 }
  0xa0   :  { %p2127_p2 = scmp.ne.s32.totalorder %s2807_s6, %s2126_s29  ;;  %p2130_p3 = scmp.lt.u32.totalorder %s2126_s29, %s2807_s6 }
  0xa2   :  { %p2132_p4 = pnand %p2130_p3, %p2127_p2 }
  0xa4   :  { %2135 = shalt.err (!%p2132_p4)
}
  0xa5   :  { %s2136_s4 = scalar_lea.vmem %s101_s9, 512  ;;  %p2141_p6 = scmp.lt.s32.totalorder %s101_s9, %s101_s9 }
  0xa6   :  { %p2137_p5 = scmp.ne.s32.totalorder %s101_s9, %s2136_s4  ;;  %p2142_p7 = scmp.lt.s32.totalorder %s2136_s4, %s2136_s4 }
  0xa8   :  { %p2143_p8 = por %p2142_p7, %p2141_p6 }
  0xaa   :  { %p2144_p9 = pnand %p2143_p8, %p2137_p5 }
  0xac   :  { %2147 = shalt.err (!%p2144_p9)
}
  0xad   :  { %106 = dma.hbm_to_vmem [thread:$0]  %s2807_s6, 512, %s101_s9, [#allocation14], %s2279_s30, %s2279_s30, %s2280_s21  }
  0xae   :  { %s2148_s18 = scalar_lea.hbm %s2809_s8, 16 }
  0xaf   :  { %p2149_p10 = scmp.ne.s32.totalorder %s2809_s8, %s2148_s18  ;;  %p2152_p11 = scmp.lt.u32.totalorder %s2148_s18, %s2809_s8 }
  0xb1   :  { %p2154_p12 = pnand %p2152_p11, %p2149_p10 }
  0xb3   :  { %2157 = shalt.err (!%p2154_p12)
}
  0xb4   :  { %s2158_s2 = scalar_lea.vmem %s126_s24, 16  ;;  %s2162_s3 = scalar_lea.vmem %s126_s24, 32 }
  0xb5   :  { %p2159_p13 = scmp.ne.s32.totalorder %s126_s24, %s2158_s2  ;;  %p2163_p0 = scmp.lt.s32.totalorder %s126_s24, %s126_s24 }
  0xb6   :  { %p2164_p1 = scmp.lt.s32.totalorder %s2162_s3, %s2158_s2 }
  0xb8   :  { %p2165_p2 = por %p2164_p1, %p2163_p0 }
  0xba   :  { %p2166_p3 = pnand %p2165_p2, %p2159_p13 }
  0xbc   :  { %2169 = shalt.err (!%p2166_p3)
}
  0xbd   :  { %128 = dma.hbm_to_vmem [thread:$0]  %s2809_s8, 16, %s126_s24, [#allocation17]  }
  0xbe   :  { %s2289_s9 = smov [#allocation21]   ;;  %s2290_s25 = smov [#allocation24]  }
  0xbf   :  { %s144_s23 = sshll.u32 %s2289_s9, 4  ;;  %s167_s27 = sshll.u32 %s2290_s25, 4  ;;  %s145_s23 = int_to_ptr.vmem [resolvable:$true] %s144_s23  ;;  %s168_s27 = int_to_ptr.vmem [resolvable:$true] %s167_s27 }
  0xc0   :  { %s2170_s5 = scalar_lea.hbm %s2811_s10, 512 }
  0xc1   :  { %p2171_p4 = scmp.ne.s32.totalorder %s2811_s10, %s2170_s5  ;;  %p2174_p5 = scmp.lt.u32.totalorder %s2170_s5, %s2811_s10 }
  0xc3   :  { %p2176_p6 = pnand %p2174_p5, %p2171_p4 }
  0xc5   :  { %2179 = shalt.err (!%p2176_p6)
}
  0xc6   :  { %s2180_s8 = scalar_lea.vmem %s145_s23, 512  ;;  %p2185_p8 = scmp.lt.s32.totalorder %s145_s23, %s145_s23 }
  0xc7   :  { %p2181_p7 = scmp.ne.s32.totalorder %s145_s23, %s2180_s8  ;;  %p2186_p9 = scmp.lt.s32.totalorder %s2180_s8, %s2180_s8 }
  0xc9   :  { %p2187_p10 = por %p2186_p9, %p2185_p8 }
  0xcb   :  { %p2188_p11 = pnand %p2187_p10, %p2181_p7 }
  0xcd   :  { %2191 = shalt.err (!%p2188_p11)
}
  0xce   :  { %150 = dma.hbm_to_vmem [thread:$0]  %s2811_s10, 512, %s145_s23, [#allocation20], %s2279_s30, %s2279_s30, %s2280_s21  }
  0xcf   :  { %s2192_s18 = scalar_lea.hbm %s2813_s12, 16 }
  0xd0   :  { %p2193_p12 = scmp.ne.s32.totalorder %s2813_s12, %s2192_s18  ;;  %p2196_p13 = scmp.lt.u32.totalorder %s2192_s18, %s2813_s12 }
  0xd2   :  { %p2198_p0 = pnand %p2196_p13, %p2193_p12 }
  0xd4   :  { %2201 = shalt.err (!%p2198_p0)
}
  0xd5   :  { %s2202_s2 = scalar_lea.vmem %s168_s27, 16  ;;  %s2206_s3 = scalar_lea.vmem %s168_s27, 32 }
  0xd6   :  { %p2203_p1 = scmp.ne.s32.totalorder %s168_s27, %s2202_s2  ;;  %p2207_p2 = scmp.lt.s32.totalorder %s168_s27, %s168_s27 }
  0xd7   :  { %p2208_p3 = scmp.lt.s32.totalorder %s2206_s3, %s2202_s2 }
  0xd9   :  { %p2209_p4 = por %p2208_p3, %p2207_p2 }
  0xdb   :  { %p2210_p5 = pnand %p2209_p4, %p2203_p1 }
  0xdd   :  { %2213 = shalt.err (!%p2210_p5)
}
  0xde   :  { %170 = dma.hbm_to_vmem [thread:$0]  %s2813_s12, 16, %s168_s27, [#allocation23]  }
  0xdf   :  { %2258 = dma.done.wait [#allocation5], 512  }
  0xe0   :  { %2259 = vsyncadd [#allocation5], 4294966784 }
  0xe1   :  { %2260 = dma.done.wait [#allocation8], 640  }
  0xe2   :  { %2261 = vsyncadd [#allocation8], 4294966656 }
  0xe3   :  { %2262 = dma.done.wait [#allocation11], 272  }
  0xe4   :  { %2263 = vsyncadd [#allocation11], 4294967024 }
  0xe5   :  { %2264 = dma.done.wait [#allocation14], 528  }
  0xe6   :  { %2265 = vsyncadd [#allocation14], 4294966768 }
  0xe7   :  { %2266 = dma.done.wait [#allocation17], 272  }
  0xe8   :  { %2267 = vsyncadd [#allocation17], 4294967024 }
  0xe9   :  { %2268 = dma.done.wait [#allocation20], 528  }
  0xea   :  { %2269 = vsyncadd [#allocation20], 4294966768 }
  0xeb   :  { %2270 = dma.done.wait [#allocation23], 32  }
  0xec   :  { %2271 = vsyncadd [#allocation23], 4294967264  ;;  %vm226_vm0 = vcmask 261120   ;;  %v215_v0 = vld [vmem:[#allocation9] sm:$0xff]  ;;  %v216_v1 = vld [vmem:[#allocation9 + $0x8] sm:$0xff]  ;;  %v2291_v13 = vmov 0.0|0.0  }
  0xed   :  { %v217_v2 = vld [vmem:[#allocation9 + $0x10] sm:$0xff]  ;;  %v1784_v3 = vpack.c.bf16 %v216_v1, %v215_v0  ;;  %v218_v4 = vld [vmem:[#allocation9 + $0x18] sm:$0xff]  ;;  %v2554_v6 = vld [vmem:[#allocation4 + $0x10] sm:$0xff]  ;;  %vm2292_vm1 = vmmov 0   ;;  %v2293_v14 = vmov 0.0   ;;  %v2294_v16 = vmov 0  }
  0xee   :  { %v2552_v5 = vld [vmem:[#allocation4] sm:$0xff]  ;;  %v1788_v7 = vpack.c.bf16 %v218_v4, %v217_v2  ;;  %1697 = vmatprep.mubr.msk.f32.mxu1 %vm226_vm0, %v2554_v6  ;;  %v329_v8 = vld [vmem:[#allocation10] sm:$0xff]  ;;  %v330_v9 = vld [vmem:[#allocation10 + $0x8] sm:$0xff]  ;;  %1863 = vset.pattern.permute.xlu1 %v2294_v16  ;;  %vm324_vm3 = vcmask 392192   ;;  %s2295_s12 = smov 96   ;;  %s2296_s21 = smov 32  }
  0xef   :  { %1694 = vmatprep.mubr.msk.f32.mxu0 %vm226_vm0, %v2552_v5  ;;  %1785 = vmatprep.subr.bf16.mxu0 %v1784_v3  ;;  %v2560_v10 = vld [vmem:[#allocation4 + $0x8] sm:$0xff]  ;;  %v2562_v11 = vld [vmem:[#allocation4 + $0x18] sm:$0xff]  ;;  %v2564_v12 = vpack.c.bf16 %v330_v9, %v329_v8  ;;  %v2585_v15 = vld [vmem:[#allocation7] sm:$0xff]  ;;  %s2297_s6 = smov 112   ;;  %vm339_vm4 = vcmask 130048   ;;  %vm1038_vm8 = vcmask 261248  }
  0xf0   :  { %1832 = vmatprep.subr.bf16.mxu1 %v1784_v3  ;;  %1787 = vmatpush3.bf16.msra.mxu0 %v1784_v3  ;;  %vm439_vm2 = vcmp.gt.f32.partialorder %v2585_v15, 0.0  ;;  %v1601_v17 = vld [vmem:[#allocation12] ss:$0 sm:$0xff]  ;;  %v2589_v28 = vld [vmem:[#allocation13] ss:$0 sm:$0xff]  ;;  %vm564_vm5 = vcmp.gt.f32.partialorder %v2585_v15, 1.0 }
  0xf1   :  { %1834 = vmatpush3.bf16.msra.mxu1 %v1784_v3  ;;  %1789 = vmatprep.subr.bf16.mxu0 %v1788_v7  ;;  %v1608_v18 = vsel %vm439_vm2, 1.0, %v2293_v14  ;;  %v1611_v57 = vsel %vm564_vm5, 1.0, %v2293_v14  ;;  %vm690_vm6 = vcmp.gt.f32.partialorder %v2585_v15, 2.0  ;;  %vm816_vm7 = vcmp.gt.f32.partialorder %v2585_v15, 3.0  ;;  %s2301_s22 = smov [#allocation26]  }
  0xf2   :  { %1833 = vmatprep.subr.bf16.mxu1 %v1788_v7  ;;  %1864 = vset.pattern.permute.xlu0 %v2294_v16  ;;  %v453_v19 = vsub.f32 1.0, %v1608_v18  ;;  %v579_v2 = vsub.f32 1.0, %v1611_v57  ;;  %vm1491_vm9 = vcmask 7168   ;;  %vm1497_vm10 = vcmask 15368   ;;  %s1582_s9 = sshll.u32 %s2301_s22, 4  ;;  %s1583_s9 = int_to_ptr.vmem [resolvable:$true] %s1582_s9 }
  0xf3   :  { %444 = vperm.xlu1 %1863, %v1608_v18   ;;  %vm1503_vm11 = vcmask 23568   ;;  %vm1509_vm12 = vcmask 31768   ;;  %vm1527_vm14 = vcmask 31744   ;;  %s2214_s23 = scalar_lea.vmem %s1583_s9, 128  ;;  %p2219_p7 = scmp.lt.s32.totalorder %s1583_s9, %s1583_s9 }
  0xf4   :  { %1791 = vmatpush3.bf16.msra.mxu0 %v1788_v7  ;;  %p2215_p6 = scmp.ne.s32.totalorder %s1583_s9, %s2214_s23  ;;  %p2220_p8 = scmp.lt.s32.totalorder %s2214_s23, %s2214_s23 }
  0xf5   :  { %1835 = vmatpush3.bf16.msra.mxu1 %v1788_v7  ;;  %1801 = vmatprep.subr.bf16.mxu0 %v2291_v13 }
  0xf6   :  { %1792 = vmatprep.subr.bf16.mxu1 %v2291_v13  ;;  %p2221_p9 = por %p2220_p8, %p2219_p7 }
  0xf7   :  { %1695 = vmatmul.mubr.msk.f32.vlgmr.msra.gmra.mrb[0].mxu0 %vm226_vm0, %v2560_v10  ;;  %456 = vperm.xlu1 %1863, %v453_v19  }
  0xf8   :  { %1698 = vmatmul.mubr.msk.f32.vlgmr.msra.gmra.mrb[0].mxu1 %vm226_vm0, %v2562_v11  ;;  %1803 = vmatpush3.bf16.msra.mxu0 %v2564_v12  ;;  %p2222_p10 = pnand %p2221_p9, %p2215_p6 }
  0xf9   :  { %1794 = vmatpush3.bf16.msra.mxu1 %v2564_v12  ;;  %1704 = vmatprep.mubr.msk.f32.mxu1 %vm2292_vm1, %v2293_v14 }
  0xfa   :  { %1795 = vmatprep.subr.bf16.mxu1 %v2291_v13  ;;  %1725 = vmatprep.mubr.msk.f32.mxu0 %vm2292_vm1, %v2293_v14 }
  0xfb   :  { %1812 = vmatprep.subr.bf16.mxu0 %v2291_v13 }
  0xfc   :  { %1705 = vmatmul.mubr.f32.vlgmr.msra.gmra.mrb[2].mxu1 %v2293_v14 }
  0xfd   :  { %1797 = vmatpush3.bf16.msra.mxu1 %v2564_v12  ;;  %1711 = vmatprep.mubr.msk.f32.mxu1 %vm2292_vm1, %v2293_v14 }
  0xfe   :  { %1798 = vmatprep.subr.bf16.mxu1 %v2291_v13 }
 0x172   :  { %v2599_v43 = vpop.permute.xlu1 %444 }
 0x176   :  { %v457_v48 = vpop.permute.xlu1 %456 }
 0x177   :  { %v459_v51 = vmul.f32 0.0, %v457_v48  ;;  %v932_v48 = vld [vmem:[#allocation16 + $0x8] sm:$0xff] }
 0x1ca   :  { %v1696_v20 = vpop.f32.mrb[0].mxu0 }
 0x1cb   :  { %v1699_v21 = vpop.f32.mrb[0].mxu1  ;;  %v311_v22 = vadd.f32 %v1696_v20, %v1601_v17  ;;  %v305_v24 = vpop.f32.mrb[1].mxu0 }
 0x1cc   :  { %v321_v23 = vadd.f32 %v1699_v21, %v1601_v17  ;;  %v315_v25 = vpop.f32.mrb[1].mxu1  ;;  %v306_v26 = vadd.f32 %v1601_v17, %v305_v24 }
 0x1cd   :  { %v316_v27 = vadd.f32 %v1601_v17, %v315_v25  ;;  %326 = vst.msk [vmem:[#allocation2 + $0x8] sm:$0xff] %vm324_vm3, %v311_v22 }
 0x1ce   :  { %328 = vst.msk [vmem:[#allocation2 + $0x18] sm:$0xff] %vm324_vm3, %v321_v23  ;;  %325 = vst.msk [vmem:[#allocation2] sm:$0xff] %vm324_vm3, %v306_v26 }
 0x1cf   :  { %327 = vst.msk [vmem:[#allocation2 + $0x10] sm:$0xff] %vm324_vm3, %v316_v27  ;;  %v409_v29 = vpop.f32.mrb[2].mxu1  ;;  %v1614_v27 = vsel %vm690_vm6, 1.0, %v2293_v14 }
 0x1d0   :  { %v410_v30 = vadd.f32 %v2589_v28, %v409_v29  ;;  %v1706_v31 = vpop.f32.mrb[3].mxu1 }
 0x1d2   :  { %421 = vrot.lane.b32.xlu0 %v410_v30, %s2295_s12 }
 0x1d4   :  { %v462_v58 = vld [vmem:[#allocation2 + $0x8] sm:$0xff] }
 0x1d5   :  { %v338_v32 = vld [vmem:[#allocation2] sm:$0xff] }
 0x1d6   :  { %v413_v33 = vadd.f32 %v410_v30, %v338_v32  ;;  %v588_v29 = vld [vmem:[#allocation2 + $0x10] sm:$0xff] }
 0x1d8   :  { %v1607_v34 = vmul.f32 -1.442695, %v413_v33 }
 0x1da   :  { %1868 = vpow2.f32 %v1607_v34 }
 0x1e4   :  { %v1869_v35 = vpop.eup %1868 }
 0x1e5   :  { %v417_v36 = vadd.f32 1.0, %v1869_v35 }
 0x1e7   :  { %1870 = vrcp.f32 %v417_v36  ;;  %v705_v36 = vsub.f32 1.0, %v1614_v27 }
 0x1f1   :  { %v1871_v37 = vpop.eup %1870 }
 0x1f2   :  { %v431_v44 = vsub.f32 1.0, %v1871_v37  ;;  %v437_v46 = vmul.f32 0.0, %v1871_v37 }
 0x244   :  { %v422_v38 = vpop.permute.xlu0 %421 }
 0x245   :  { %v424_v39 = vmul.f32 %v1871_v37, %v422_v38 }
 0x247   :  { %426 = vrot.lane.b32.xlu0 %v424_v39, %s2296_s21  ;;  %v831_v39 = vld [vmem:[#allocation15] sm:$0xff] }
 0x2b9   :  { %v427_v40 = vpop.permute.xlu0 %426 }
 0x2ba   :  { %v429_v41 = vadd.f32 %v427_v40, %v338_v32  ;;  %v832_v40 = vld [vmem:[#allocation15 + $0x8] sm:$0xff] }
 0x2bc   :  { %1872 = vtanh.f32 %v429_v41  ;;  %v833_v41 = vld [vmem:[#allocation15 + $0x10] sm:$0xff] }
 0x2c6   :  { %v1873_v42 = vpop.eup %1872 }
 0x2c7   :  { %433 = vrot.lane.b32.xlu0 %v1873_v42, %s2297_s6  ;;  %v1804_v42 = vpack.c.bf16 %v832_v40, %v831_v39 }
 0x339   :  { %v434_v45 = vpop.permute.xlu0 %433 }
 0x33a   :  { %v436_v47 = vmul.f32 %v434_v45, %v431_v44  ;;  %v834_v44 = vld [vmem:[#allocation15 + $0x18] sm:$0xff] }
 0x33b   :  { %v1808_v45 = vpack.c.bf16 %v834_v44, %v833_v41 }
 0x33c   :  { %v438_v49 = vadd.f32 %v437_v46, %v436_v47  ;;  %v931_v47 = vld [vmem:[#allocation16] sm:$0xff] }
 0x33e   :  { %v2602_v50 = vmul.f32 %v2599_v43, %v438_v49  ;;  %v2644_v49 = vpack.c.bf16 %v932_v48, %v931_v47 }
 0x340   :  { %v460_v52 = vadd.f32 %v459_v51, %v2602_v50 }
 0x342   :  { %464 = vrot.lane.b32.xlu1 %v460_v52, %s2297_s6 }
 0x3b4   :  { %v465_v53 = vpop.permute.xlu1 %464 }
 0x3b5   :  { %1712 = vmatmul.mubr.msk.f32.vlgmr.msra.gmra.mrb[4].mxu1 %vm339_vm4, %v465_v53 }
 0x3b6   :  { %1800 = vmatpush3.bf16.msra.mxu1 %v2564_v12  ;;  %1718 = vmatprep.mubr.msk.f32.mxu1 %vm2292_vm1, %v2293_v14 }
 0x3b7   :  { %1805 = vmatprep.subr.bf16.mxu1 %v1804_v42 }
 0x488   :  { %v534_v54 = vpop.f32.mrb[4].mxu1 }
 0x489   :  { %v535_v55 = vadd.f32 %v2589_v28, %v534_v54  ;;  %v1713_v56 = vpop.f32.mrb[5].mxu1 }
 0x48b   :  { %546 = vrot.lane.b32.xlu0 %v535_v55, %s2295_s12  ;;  %v538_v59 = vadd.f32 %v535_v55, %v462_v58 }
 0x48d   :  { %v1610_v60 = vmul.f32 -1.442695, %v538_v59  ;;  %v1618_v59 = vld [vmem:[#allocation18] ss:$0 sm:$0xff] }
 0x48f   :  { %569 = vperm.xlu0 %1864, %v1611_v57   ;;  %1874 = vpow2.f32 %v1610_v60 }
 0x499   :  { %v1875_v61 = vpop.eup %1874 }
 0x49a   :  { %v542_v62 = vadd.f32 1.0, %v1875_v61 }
 0x49c   :  { %1876 = vrcp.f32 %v542_v62 }
 0x4a6   :  { %v1877_v63 = vpop.eup %1876 }
 0x4a7   :  { %v556_v9 = vsub.f32 1.0, %v1877_v63  ;;  %v562_v16 = vmul.f32 %v1877_v63, %v460_v52 }
 0x4fd   :  { %v547_v0 = vpop.permute.xlu0 %546 }
 0x4fe   :  { %v549_v1 = vmul.f32 %v1877_v63, %v547_v0 }
 0x500   :  { %551 = vrot.lane.b32.xlu1 %v549_v1, %s2296_s21  ;;  %v2662_v1 = vld [vmem:[#allocation2 + $0x18] sm:$0xff] }
 0x504   :  { %582 = vperm.xlu1 %1863, %v579_v2  }
 0x50e   :  { %v2618_v18 = vpop.permute.xlu0 %569 }
 0x572   :  { %v552_v3 = vpop.permute.xlu1 %551 }
 0x573   :  { %v554_v4 = vadd.f32 %v552_v3, %v462_v58 }
 0x575   :  { %1878 = vtanh.f32 %v554_v4 }
 0x57f   :  { %v1879_v7 = vpop.eup %1878 }
 0x580   :  { %558 = vrot.lane.b32.xlu1 %v1879_v7, %s2297_s6 }
 0x583   :  { %v2616_v8 = vpop.permute.xlu1 %582 }
 0x584   :  { %v585_v20 = vmul.f32 %v2616_v8, %v460_v52 }
 0x5f2   :  { %v559_v12 = vpop.permute.xlu1 %558 }
 0x5f3   :  { %v561_v17 = vmul.f32 %v559_v12, %v556_v9  ;;  %v2678_v12 = vld [vmem:[#allocation19] ss:$0 sm:$0xff] }
 0x5f5   :  { %v563_v19 = vadd.f32 %v562_v16, %v561_v17 }
 0x5f7   :  { %v2622_v21 = vmul.f32 %v2618_v18, %v563_v19 }
 0x5f9   :  { %v586_v22 = vadd.f32 %v585_v20, %v2622_v21  ;;  %v1617_v20 = vsel %vm816_vm7, 1.0, %v2293_v14 }
 0x5fb   :  { %590 = vrot.lane.b32.xlu0 %v586_v22, %s2297_s6 }
 0x66d   :  { %v591_v23 = vpop.permute.xlu0 %590 }
 0x66e   :  { %1719 = vmatmul.mubr.msk.f32.vlgmr.msra.gmra.mrb[6].mxu1 %vm339_vm4, %v591_v23 }
 0x66f   :  { %1736 = vmatprep.mubr.msk.f32.mxu1 %vm226_vm0, %v2552_v5  ;;  %1807 = vmatpush3.bf16.msra.mxu1 %v1804_v42 }
 0x670   :  { %1809 = vmatprep.subr.bf16.mxu1 %v1808_v45 }
 0x673   :  { %1811 = vmatpush3.bf16.msra.mxu1 %v1808_v45 }
 0x674   :  { %1821 = vmatprep.subr.bf16.mxu1 %v2291_v13 }
 0x676   :  { %1737 = vmatmul.mubr.msk.f32.vlgmr.msra.gmra.mrb[8].mxu1 %vm226_vm0, %v2560_v10 }
 0x677   :  { %1739 = vmatprep.mubr.msk.f32.mxu1 %vm226_vm0, %v2554_v6  ;;  %1823 = vmatpush3.bf16.msra.mxu1 %v2644_v49 }
 0x67a   :  { %1740 = vmatmul.mubr.msk.f32.gmra.mrb[10].mxu1 %vm226_vm0, %v2562_v11 }
 0x67b   :  { %1767 = vmatprep.mubr.msk.f32.mxu1 %vm2292_vm1, %v2293_v14 }
 0x741   :  { %v660_v24 = vpop.f32.mrb[6].mxu1 }
 0x742   :  { %v661_v25 = vadd.f32 %v2589_v28, %v660_v24  ;;  %v1720_v26 = vpop.f32.mrb[7].mxu1 }
 0x744   :  { %672 = vrot.lane.b32.xlu1 %v661_v25, %s2295_s12  ;;  %v664_v30 = vadd.f32 %v661_v25, %v588_v29 }
 0x746   :  { %v1613_v31 = vmul.f32 -1.442695, %v664_v30  ;;  %v1040_v30 = vsub.f32 1.0, %v1617_v20 }
 0x748   :  { %695 = vperm.xlu1 %1863, %v1614_v27   ;;  %1880 = vpow2.f32 %v1613_v31 }
 0x749   :  { %v1738_v58 = vpop.f32.mrb[8].mxu1 }
 0x74a   :  { %v914_v60 = vadd.f32 %v1738_v58, %v1618_v59  ;;  %v908_v61 = vpop.f32.mrb[9].mxu1 }
 0x74b   :  { %v909_v62 = vadd.f32 %v1618_v59, %v908_v61 }
 0x74c   :  { %928 = vst.msk [vmem:[#allocation2 + $0x8] sm:$0xff] %vm324_vm3, %v914_v60 }
 0x74d   :  { %927 = vst.msk [vmem:[#allocation2] sm:$0xff] %vm324_vm3, %v909_v62  ;;  %v1741_v63 = vpop.f32.mrb[10].mxu1 }
 0x74e   :  { %v924_v0 = vadd.f32 %v1741_v63, %v1618_v59  ;;  %v918_v3 = vpop.f32.mrb[11].mxu1 }
 0x74f   :  { %v919_v4 = vadd.f32 %v1618_v59, %v918_v3 }
 0x750   :  { %930 = vst.msk [vmem:[#allocation2 + $0x18] sm:$0xff] %vm324_vm3, %v924_v0 }
 0x751   :  { %929 = vst.msk [vmem:[#allocation2 + $0x10] sm:$0xff] %vm324_vm3, %v919_v4 }
 0x752   :  { %v1881_v32 = vpop.eup %1880 }
 0x753   :  { %v668_v33 = vadd.f32 1.0, %v1881_v32 }
 0x755   :  { %1882 = vrcp.f32 %v668_v33 }
 0x758   :  { %v1048_v48 = vld [vmem:[#allocation2 + $0x10] sm:$0xff] }
 0x75f   :  { %v1883_v34 = vpop.eup %1882 }
 0x760   :  { %v682_v52 = vsub.f32 1.0, %v1883_v34  ;;  %v688_v10 = vmul.f32 %v1883_v34, %v586_v22 }
 0x7b6   :  { %v673_v5 = vpop.permute.xlu1 %672 }
 0x7b7   :  { %v675_v35 = vmul.f32 %v1883_v34, %v673_v5 }
 0x7b9   :  { %677 = vrot.lane.b32.xlu0 %v675_v35, %s2296_s21 }
 0x7bd   :  { %708 = vperm.xlu0 %1864, %v705_v36  }
 0x7c7   :  { %v2646_v51 = vpop.permute.xlu1 %695 }
 0x82b   :  { %v678_v37 = vpop.permute.xlu0 %677 }
 0x82c   :  { %v680_v38 = vadd.f32 %v678_v37, %v588_v29 }
 0x82e   :  { %1884 = vtanh.f32 %v680_v38 }
 0x838   :  { %v1885_v46 = vpop.eup %1884 }
 0x839   :  { %684 = vrot.lane.b32.xlu1 %v1885_v46, %s2297_s6 }
 0x83c   :  { %v2649_v55 = vpop.permute.xlu0 %708 }
 0x83d   :  { %v711_v11 = vmul.f32 %v2649_v55, %v586_v22 }
 0x8ab   :  { %v685_v53 = vpop.permute.xlu1 %684 }
 0x8ac   :  { %v687_v54 = vmul.f32 %v685_v53, %v682_v52 }
 0x8ae   :  { %v689_v6 = vadd.f32 %v688_v10, %v687_v54 }
 0x8b0   :  { %v2653_v56 = vmul.f32 %v2646_v51, %v689_v6 }
 0x8b2   :  { %v2656_v57 = vadd.f32 %v711_v11, %v2653_v56 }
 0x8b4   :  { %716 = vrot.lane.b32.xlu0 %v2656_v57, %s2297_s6 }
 0x926   :  { %v717_v2 = vpop.permute.xlu0 %716 }
 0x927   :  { %1726 = vmatmul.mubr.msk.f32.vlgmr.msra.gmra.mrb[2].mxu0 %vm339_vm4, %v717_v2 }
 0x928   :  { %1814 = vmatpush3.bf16.msra.mxu0 %v2644_v49  ;;  %1746 = vmatprep.mubr.msk.f32.mxu0 %vm2292_vm1, %v2293_v14 }
 0x929   :  { %1815 = vmatprep.subr.bf16.mxu0 %v2291_v13 }
 0x92b   :  { %1747 = vmatmul.mubr.f32.vlgmr.msra.gmra.mrb[4].mxu0 %v2293_v14 }
 0x92c   :  { %1817 = vmatpush3.bf16.msra.mxu0 %v2644_v49  ;;  %1753 = vmatprep.mubr.msk.f32.mxu0 %vm2292_vm1, %v2293_v14 }
 0x92d   :  { %1818 = vmatprep.subr.bf16.mxu0 %v2291_v13  ;;  %v940_v13 = vld [vmem:[#allocation2 + $0x18] sm:$0xff] }
 0x9fa   :  { %v2676_v7 = vpop.f32.mrb[2].mxu0 }
 0x9fb   :  { %v1727_v9 = vpop.f32.mrb[3].mxu0 }
 0x9fe   :  { %v1007_v16 = vpop.f32.mrb[4].mxu0 }
 0x9ff   :  { %v1008_v17 = vadd.f32 %v2678_v12, %v1007_v16  ;;  %v1748_v19 = vpop.f32.mrb[5].mxu0 }
 0xa01   :  { %1019 = vrot.lane.b32.xlu1 %v1008_v17, %s2295_s12  ;;  %v1011_v22 = vadd.f32 %v1008_v17, %v940_v13 }
 0xa03   :  { %v1624_v23 = vmul.f32 -1.442695, %v1011_v22 }
 0xa05   :  { %821 = vperm.xlu1 %1863, %v1617_v20   ;;  %1886 = vpow2.f32 %v1624_v23 }
 0xa0f   :  { %v1887_v24 = vpop.eup %1886 }
 0xa10   :  { %v1015_v25 = vadd.f32 1.0, %v1887_v24 }
 0xa12   :  { %1888 = vrcp.f32 %v1015_v25 }
 0xa1c   :  { %v1889_v26 = vpop.eup %1888 }
 0xa1d   :  { %v1029_v5 = vsub.f32 1.0, %v1889_v26  ;;  %v1035_v36 = vmul.f32 0.0, %v1889_v26 }
 0xa73   :  { %v1020_v27 = vpop.permute.xlu1 %1019 }
 0xa74   :  { %v1022_v29 = vmul.f32 %v1889_v26, %v1020_v27 }
 0xa76   :  { %1024 = vrot.lane.b32.xlu0 %v1022_v29, %s2296_s21 }
 0xa7a   :  { %1043 = vperm.xlu0 %1864, %v1040_v30  }
 0xa84   :  { %v2686_v34 = vpop.permute.xlu1 %821 }
 0xae8   :  { %v1025_v31 = vpop.permute.xlu0 %1024 }
 0xae9   :  { %v1027_v32 = vadd.f32 %v1025_v31, %v940_v13  ;;  %v1154_v13 = vld [vmem:[#allocation2 + $0x8] sm:$0xff]  ;;  %v787_v31 = vadd.f32 %v2589_v28, %v2676_v7 }
 0xaeb   :  { %1890 = vtanh.f32 %v1027_v32  ;;  %v790_v32 = vadd.f32 %v787_v31, %v2662_v1 }
 0xaf5   :  { %v1891_v33 = vpop.eup %1890 }
 0xaf6   :  { %1031 = vrot.lane.b32.xlu1 %v1891_v33, %s2297_s6  ;;  %v1616_v33 = vmul.f32 -1.442695, %v790_v32 }
 0xaf9   :  { %v1044_v38 = vpop.permute.xlu0 %1043 }
 0xafa   :  { %v1046_v40 = vmul.f32 0.0, %v1044_v38 }
 0xb68   :  { %v1032_v35 = vpop.permute.xlu1 %1031 }
 0xb69   :  { %v1034_v37 = vmul.f32 %v1032_v35, %v1029_v5 }
 0xb6b   :  { %v1036_v39 = vadd.f32 %v1035_v36, %v1034_v37 }
 0xb6d   :  { %v2689_v41 = vmul.f32 %v1036_v39, %v2686_v34 }
 0xb6f   :  { %v1047_v42 = vadd.f32 %v1046_v40, %v2689_v41 }
 0xb71   :  { %1050 = vrot.lane.b32.xlu0 %v1047_v42, %s2297_s6  ;;  %v1152_v4 = vmul.f32 %v1047_v42, %v2649_v55 }
 0xbe3   :  { %v1051_v44 = vpop.permute.xlu0 %1050 }
 0xbe4   :  { %1754 = vmatmul.mubr.msk.f32.vlgmr.msra.gmra.mrb[6].mxu0 %vm339_vm4, %v1051_v44 }
 0xbe5   :  { %1820 = vmatpush3.bf16.msra.mxu0 %v2644_v49  ;;  %1760 = vmatprep.mubr.msk.f32.mxu0 %vm2292_vm1, %v2293_v14 }
 0xcb7   :  { %v1120_v45 = vpop.f32.mrb[6].mxu0 }
 0xcb8   :  { %v1121_v46 = vadd.f32 %v2678_v12, %v1120_v45  ;;  %v1755_v47 = vpop.f32.mrb[7].mxu0 }
 0xcba   :  { %1132 = vrot.lane.b32.xlu1 %v1121_v46, %s2295_s12  ;;  %v1124_v52 = vadd.f32 %v1121_v46, %v1048_v48 }
 0xcbc   :  { %v1626_v53 = vmul.f32 -1.442695, %v1124_v52 }
 0xcbe   :  { %1892 = vpow2.f32 %v1626_v53 }
 0xcc8   :  { %v1893_v10 = vpop.eup %1892 }
 0xcc9   :  { %v1128_v54 = vadd.f32 1.0, %v1893_v10 }
 0xccb   :  { %1894 = vrcp.f32 %v1128_v54 }
 0xcd5   :  { %v1895_v6 = vpop.eup %1894 }
 0xcd6   :  { %v1142_v61 = vsub.f32 1.0, %v1895_v6  ;;  %v1148_v63 = vmul.f32 %v1895_v6, %v1047_v42 }
 0xd2c   :  { %v1133_v11 = vpop.permute.xlu1 %1132 }
 0xd2d   :  { %v1135_v58 = vmul.f32 %v1895_v6, %v1133_v11 }
 0xd2f   :  { %1137 = vrot.lane.b32.xlu0 %v1135_v58, %s2296_s21 }
 0xda1   :  { %v1138_v49 = vpop.permute.xlu0 %1137 }
 0xda2   :  { %v1140_v59 = vadd.f32 %v1138_v49, %v1048_v48 }
 0xda4   :  { %1896 = vtanh.f32 %v1140_v59 }
 0xdae   :  { %v1897_v60 = vpop.eup %1896 }
 0xdaf   :  { %1144 = vrot.lane.b32.xlu1 %v1897_v60, %s2297_s6 }
 0xe21   :  { %v1145_v62 = vpop.permute.xlu1 %1144 }
 0xe22   :  { %v1147_v0 = vmul.f32 %v1145_v62, %v1142_v61 }
 0xe24   :  { %v1149_v2 = vadd.f32 %v1148_v63, %v1147_v0  ;;  %v1368_v0 = vld [vmem:[#allocation21] sm:$0xff] }
 0xe26   :  { %v1150_v3 = vmul.f32 %v1149_v2, %v2646_v51 }
 0xe28   :  { %v1153_v9 = vadd.f32 %v1152_v4, %v1150_v3  ;;  %v1371_v4 = vld [vmem:[#allocation21 + $0x18] sm:$0xff] }
 0xe2a   :  { %1156 = vrot.lane.b32.xlu0 %v1153_v9, %s2297_s6  ;;  %v1258_v7 = vmul.f32 %v1153_v9, %v2616_v8 }
 0xe9c   :  { %v1157_v16 = vpop.permute.xlu0 %1156 }
 0xe9d   :  { %1761 = vmatmul.mubr.msk.f32.vlgmr.msra.gmra.mrb[8].mxu0 %vm339_vm4, %v1157_v16 }
 0xf70   :  { %v1226_v17 = vpop.f32.mrb[8].mxu0 }
 0xf71   :  { %v1227_v19 = vadd.f32 %v2678_v12, %v1226_v17  ;;  %v1762_v20 = vpop.f32.mrb[9].mxu0 }
 0xf73   :  { %1238 = vrot.lane.b32.xlu1 %v1227_v19, %s2295_s12  ;;  %v1230_v22 = vadd.f32 %v1227_v19, %v1154_v13 }
 0xf75   :  { %v1628_v23 = vmul.f32 -1.442695, %v1230_v22 }
 0xf77   :  { %1898 = vpow2.f32 %v1628_v23 }
 0xf81   :  { %v1899_v24 = vpop.eup %1898 }
 0xf82   :  { %v1234_v51 = vadd.f32 1.0, %v1899_v24 }
 0xf84   :  { %1900 = vrcp.f32 %v1234_v51 }
 0xf8e   :  { %v1901_v55 = vpop.eup %1900 }
 0xf8f   :  { %v1248_v36 = vsub.f32 1.0, %v1901_v55  ;;  %v1254_v38 = vmul.f32 %v1901_v55, %v1153_v9 }
 0xfe5   :  { %v1239_v25 = vpop.permute.xlu1 %1238 }
 0xfe6   :  { %v1241_v26 = vmul.f32 %v1901_v55, %v1239_v25 }
 0xfe8   :  { %1243 = vrot.lane.b32.xlu0 %v1241_v26, %s2296_s21 }
0x105a   :  { %v1244_v27 = vpop.permute.xlu0 %1243 }
0x105b   :  { %v1246_v29 = vadd.f32 %v1244_v27, %v1154_v13 }
0x105d   :  { %1902 = vtanh.f32 %v1246_v29 }
0x105e   :  { %1904 = vpow2.f32 %v1616_v33 }
0x1067   :  { %v1903_v30 = vpop.eup %1902 }
0x1068   :  { %1250 = vrot.lane.b32.xlu1 %v1903_v30, %s2297_s6  ;;  %v1905_v5 = vpop.eup %1904 }
0x1069   :  { %v794_v35 = vadd.f32 1.0, %v1905_v5 }
0x106b   :  { %1906 = vrcp.f32 %v794_v35 }
0x106c   :  { %798 = vrot.lane.b32.xlu1 %v787_v31, %s2295_s12 }
0x1075   :  { %v1907_v42 = vpop.eup %1906 }
0x1076   :  { %v808_v9 = vsub.f32 1.0, %v1907_v42  ;;  %v814_v20 = vmul.f32 %v1907_v42, %v2656_v57 }
0x10da   :  { %v1251_v37 = vpop.permute.xlu1 %1250 }
0x10db   :  { %v1253_v39 = vmul.f32 %v1251_v37, %v1248_v36 }
0x10dd   :  { %v1255_v40 = vadd.f32 %v1254_v38, %v1253_v39  ;;  %v1636_v38 = vld [vmem:[#allocation24] ss:$0 sm:$0xff] }
0x10de   :  { %v799_v44 = vpop.permute.xlu1 %798 }
0x10df   :  { %v2714_v45 = vmul.f32 %v1255_v40, %v2618_v18  ;;  %v801_v28 = vmul.f32 %v1907_v42, %v799_v44 }
0x10e1   :  { %803 = vrot.lane.b32.xlu1 %v801_v28, %s2296_s21  ;;  %v1259_v46 = vadd.f32 %v1258_v7, %v2714_v45 }
0x10e3   :  { %1262 = vrot.lane.b32.xlu0 %v1259_v46, %s2297_s6 }
0x1153   :  { %v804_v47 = vpop.permute.xlu1 %803 }
0x1154   :  { %v806_v48 = vadd.f32 %v804_v47, %v2662_v1 }
0x1155   :  { %v1263_v52 = vpop.permute.xlu0 %1262 }
0x1156   :  { %1908 = vtanh.f32 %v806_v48  ;;  %1768 = vmatmul.mubr.msk.f32.vlgmr.msra.gmra.mrb[12].mxu1 %vm339_vm4, %v1263_v52 }
0x1160   :  { %v1909_v53 = vpop.eup %1908 }
0x1161   :  { %810 = vrot.lane.b32.xlu1 %v1909_v53, %s2297_s6 }
0x1165   :  { %449 = vrot.lane.b32.xlu1 %v2602_v50, %s2297_s6  ;;  %v1260_v50 = vld [vmem:[#allocation2] sm:$0xff] }
0x1169   :  { %700 = vrot.lane.b32.xlu1 %v2653_v56, %s2297_s6 }
0x11d3   :  { %v811_v8 = vpop.permute.xlu1 %810 }
0x11d4   :  { %v813_v17 = vmul.f32 %v811_v8, %v808_v9 }
0x11d6   :  { %v815_v13 = vadd.f32 %v814_v20, %v813_v17  ;;  %v2300_v17 = vmov 2  }
0x11d7   :  { %v450_v18 = vpop.permute.xlu1 %449 }
0x11d8   :  { %452 = vst.msk [vmem:[#allocation3] sm:$0xff] %vm339_vm4, %v450_v18  ;;  %v824_v22 = vmul.f32 %v2686_v34, %v815_v13 }
0x11db   :  { %v701_v10 = vpop.permute.xlu1 %700 }
0x11dc   :  { %704 = vst.msk [vmem:[#allocation3 + $0x10] sm:$0xff] %vm339_vm4, %v701_v10  ;;  %v1512_v10 = vlaneseq }
0x11dd   :  { %1151 = vst.msk [vmem:[#allocation3 + $0x10] sm:$0xff] %vm1038_vm8, %v1150_v3  ;;  %v1370_v3 = vld [vmem:[#allocation21 + $0x10] sm:$0xff] }
0x11de   :  { %v1828_v16 = vpack.c.bf16 %v1371_v4, %v1370_v3  ;;  %v2298_v3 = vmov 1  }
0x1229   :  { %v1332_v1 = vpop.f32.mrb[12].mxu1 }
0x122a   :  { %v1333_v54 = vadd.f32 %v2678_v12, %v1332_v1  ;;  %v1769_v6 = vpop.f32.mrb[13].mxu1  ;;  %v1369_v12 = vld [vmem:[#allocation21 + $0x8] sm:$0xff] }
0x122b   :  { %v1824_v2 = vpack.c.bf16 %v1369_v12, %v1368_v0  ;;  %v1513_v6 = vand.u32 127, %v1512_v10 }
0x122c   :  { %1344 = vrot.lane.b32.xlu0 %v1333_v54, %s2295_s12  ;;  %v1336_v11 = vadd.f32 %v1333_v54, %v1260_v50 }
0x122d   :  { %1825 = vmatprep.subr.bf16.mxu0 %v1824_v2 }
0x122e   :  { %v1630_v58 = vmul.f32 -1.442695, %v1336_v11  ;;  %1827 = vmatpush3.bf16.msra.mxu0 %v1824_v2 }
0x122f   :  { %1829 = vmatprep.subr.bf16.mxu0 %v1828_v16 }
0x1230   :  { %1910 = vpow2.f32 %v1630_v58 }
0x1232   :  { %1831 = vmatpush3.bf16.msra.mxu0 %v1828_v16  ;;  %v2299_v16 = vmov 3  }
0x123a   :  { %v1911_v56 = vpop.eup %1910 }
0x123b   :  { %v1340_v49 = vadd.f32 1.0, %v1911_v56 }
0x123d   :  { %1912 = vrcp.f32 %v1340_v49 }
0x1247   :  { %v1913_v59 = vpop.eup %1912 }
0x1248   :  { %v1354_v23 = vsub.f32 1.0, %v1913_v59  ;;  %v1360_v51 = vmul.f32 %v1913_v59, %v1259_v46 }
0x129e   :  { %v1345_v60 = vpop.permute.xlu0 %1344 }
0x129f   :  { %v1347_v61 = vmul.f32 %v1913_v59, %v1345_v60 }
0x12a1   :  { %1349 = vrot.lane.b32.xlu0 %v1347_v61, %s2296_s21 }
0x1313   :  { %v1350_v62 = vpop.permute.xlu0 %1349 }
0x1314   :  { %v1352_v63 = vadd.f32 %v1350_v62, %v1260_v50  ;;  %v1514_v50 = vcvt.s32.f32 %v1513_v6 }
0x1316   :  { %1914 = vtanh.f32 %v1352_v63 }
0x1320   :  { %v1915_v19 = vpop.eup %1914 }
0x1321   :  { %1356 = vrot.lane.b32.xlu0 %v1915_v19, %s2297_s6 }
0x1325   :  { %574 = vrot.lane.b32.xlu0 %v2622_v21, %s2297_s6 }
0x1329   :  { %826 = vrot.lane.b32.xlu0 %v824_v22, %s2297_s6 }
0x1393   :  { %v1357_v24 = vpop.permute.xlu0 %1356 }
0x1394   :  { %v1359_v55 = vmul.f32 %v1357_v24, %v1354_v23 }
0x1396   :  { %v1361_v25 = vadd.f32 %v1360_v51, %v1359_v55 }
0x1397   :  { %v575_v26 = vpop.permute.xlu0 %574 }
0x1398   :  { %v1362_v27 = vmul.f32 %v1361_v25, %v2599_v43  ;;  %578 = vst.msk [vmem:[#allocation3 + $0x8] sm:$0xff] %vm339_vm4, %v575_v26  ;;  %v2755_v43 = vld [vmem:[#allocation3 + $0x10] sm:$0xff] }
0x1399   :  { %1257 = vst.msk [vmem:[#allocation3 + $0x8] sm:$0xff] %vm1038_vm8, %v2714_v45 }
0x139a   :  { %1363 = vst.msk [vmem:[#allocation3] sm:$0xff] %vm1038_vm8, %v1362_v27 }
0x139b   :  { %v827_v21 = vpop.permute.xlu0 %826 }
0x139c   :  { %830 = vst.msk [vmem:[#allocation3 + $0x18] sm:$0xff] %vm339_vm4, %v827_v21 }
0x139d   :  { %1039 = vst.msk [vmem:[#allocation3 + $0x18] sm:$0xff] %vm1038_vm8, %v2689_v41  ;;  %v1631_v41 = vld [vmem:[#allocation22] ss:$0 sm:$0xff] }
0x13a0   :  { %v2751_v34 = vld [vmem:[#allocation3 + $0x8] sm:$0xff] }
0x13a1   :  { %v2747_v57 = vld [vmem:[#allocation3] sm:$0xff] }
0x13a2   :  { %1778 = vmatprep.mubr.msk.f32.mxu0 %vm226_vm0, %v2747_v57 }
0x13a3   :  { %1779 = vmatmul.mubr.msk.f32.vlgmr.msra.gmra.mrb[10].mxu0 %vm226_vm0, %v2751_v34 }
0x13a4   :  { %1781 = vmatprep.mubr.msk.f32.mxu0 %vm226_vm0, %v2755_v43  ;;  %v2759_v29 = vld [vmem:[#allocation3 + $0x18] sm:$0xff] }
0x13a7   :  { %1782 = vmatmul.mubr.msk.f32.gmra.mrb[12].mxu0 %vm226_vm0, %v2759_v29 }
0x1476   :  { %v1780_v30 = vpop.f32.mrb[10].mxu0 }
0x1477   :  { %v1463_v31 = vadd.f32 %v1780_v30, %v1631_v41  ;;  %v1457_v32 = vpop.f32.mrb[11].mxu0 }
0x1478   :  { %v1458_v33 = vadd.f32 %v1631_v41, %v1457_v32 }
0x1479   :  { %1916 = vtanh.f32 %v1463_v31 }
0x147a   :  { %1918 = vtanh.f32 %v1458_v33  ;;  %v1783_v5 = vpop.f32.mrb[12].mxu0 }
0x147b   :  { %v1473_v35 = vadd.f32 %v1783_v5, %v1631_v41  ;;  %v1467_v36 = vpop.f32.mrb[13].mxu0 }
0x147c   :  { %v1468_v37 = vadd.f32 %v1631_v41, %v1467_v36 }
0x147d   :  { %1920 = vtanh.f32 %v1473_v35 }
0x147e   :  { %1922 = vtanh.f32 %v1468_v37 }
0x1483   :  { %v1917_v39 = vpop.eup %1916 }
0x1484   :  { %v1919_v40 = vpop.eup %1918  ;;  %v1493_v42 = vmul.f32 %v1917_v39, %v1636_v38 }
0x1485   :  { %v1487_v44 = vmul.f32 %v1919_v40, %v1636_v38 }
0x1486   :  { %v1494_v45 = vsel %vm339_vm4, %v1493_v42, 0.0 }
0x1487   :  { %v1921_v28 = vpop.eup %1920  ;;  %1495 = vadd.xlane.f32.xlu0 %v1494_v45  ;;  %v1488_v7 = vsel %vm339_vm4, %v1487_v44, 0.0 }
0x1488   :  { %v1923_v46 = vpop.eup %1922  ;;  %1489 = vadd.xlane.f32.xlu1 %v1488_v7  ;;  %v1505_v47 = vmul.f32 %v1921_v28, %v1636_v38 }
0x1489   :  { %v1499_v48 = vmul.f32 %v1923_v46, %v1636_v38 }
0x148a   :  { %v1506_v52 = vsel %vm339_vm4, %v1505_v47, 0.0 }
0x148b   :  { %v1500_v53 = vsel %vm339_vm4, %v1499_v48, 0.0 }
0x148c   :  { %1507 = vadd.xlane.f32.xlu1 %v1506_v52  ;;  %1501 = vadd.xlane.f32.xlu0 %v1500_v53 }
0x14a2   :  { %1517 = vperm.xlu0 %1864, %v2585_v15  }
0x14a6   :  { %1865 = vset.pattern.permute.xlu0 %v2298_v3 }
0x1514   :  { %v1496_v8 = vpop.xlane.xlu0 %1495 }
0x1515   :  { %v1490_v18 = vpop.xlane.xlu1 %1489 }
0x1516   :  { %1492 = vst.msk [vmem:[#allocation26] sm:$0xff] %vm1491_vm9, %v1490_v18 }
0x1517   :  { %1498 = vst.msk [vmem:[#allocation26] sm:$0xff] %vm1497_vm10, %v1496_v8 }
0x1519   :  { %v1508_v1 = vpop.xlane.xlu1 %1507  ;;  %v1502_v54 = vpop.xlane.xlu0 %1501 }
0x151a   :  { %1504 = vst.msk [vmem:[#allocation26] sm:$0xff] %vm1503_vm11, %v1502_v54 }
0x151b   :  { %1510 = vst.msk [vmem:[#allocation26] sm:$0xff] %vm1509_vm12, %v1508_v1 }
0x1521   :  { %v1518_v11 = vpop.permute.xlu0 %1517 }
0x1522   :  { %vm1520_vm13 = vcmp.lt.f32.partialorder %v1514_v50, %v1518_v11  ;;  %v1511_v58 = vld [vmem:[#allocation26] sm:$0xff] }
0x1523   :  { %v1637_v15 = vsel %vm1520_vm13, 1.0, %v2293_v14 }
0x1524   :  { %v1524_v56 = vsub.f32 1.0, %v1637_v15  ;;  %v1523_v49 = vmul.f32 %v1637_v15, %v1511_v58 }
0x1526   :  { %v1525_v59 = vmul.f32 -1e+20, %v1524_v56 }
0x1528   :  { %v1526_v60 = vadd.f32 %v1525_v59, %v1523_v49 }
0x152a   :  { %v1528_v61 = vsel %vm1527_vm14, %v1526_v60, -inf }
0x152b   :  { %1529 = vmax.xlane.f32.xlu1 %v1528_v61 }
0x15b8   :  { %v1530_v62 = vpop.xlane.xlu1 %1529 }
0x15b9   :  { %v1531_v63 = vsub.f32 %v1526_v60, %v1530_v62 }
0x15bb   :  { %v1532_v0 = vmul.f32 1.442695, %v1531_v63 }
0x15bd   :  { %1924 = vpow2.f32 %v1532_v0 }
0x15c7   :  { %v1925_v12 = vpop.eup %1924 }
0x15c8   :  { %v1534_v2 = vsel %vm1527_vm14, %v1925_v12, 0.0 }
0x15c9   :  { %1535 = vadd.xlane.f32.xlu1 %v1534_v2 }
0x1656   :  { %v1536_v4 = vpop.xlane.xlu1 %1535 }
0x1657   :  { %1926 = vrcp.f32 %v1536_v4 }
0x1661   :  { %v1927_v14 = vpop.eup %1926 }
0x1662   :  { %v1538_v9 = vmul.f32 %v1927_v14, %v1925_v12 }
0x1664   :  { %1539 = vst.msk [vmem:[#allocation26] sm:$0xff] %vm1527_vm14, %v1538_v9  ;;  %1548 = vperm.xlu0 %1865, %v1538_v9   ;;  %1542 = vperm.xlu1 %1863, %v1538_v9  }
0x1668   :  { %1867 = vset.pattern.permute.xlu0 %v2299_v16  ;;  %1866 = vset.pattern.permute.xlu1 %v2300_v17 }
0x1669   :  { %1560 = vperm.xlu0 %1867, %v1538_v9   ;;  %1554 = vperm.xlu1 %1866, %v1538_v9  }
0x166a   :  { %2225 = shalt.err (!%p2222_p10)
}
0x166b   :  { %s2226_s29 = scalar_lea.hbm %s2815_s14, 128 }
0x166c   :  { %p2227_p11 = scmp.ne.s32.totalorder %s2815_s14, %s2226_s29  ;;  %p2230_p12 = scmp.lt.u32.totalorder %s2226_s29, %s2815_s14 }
0x166e   :  { %p2232_p13 = pnand %p2230_p12, %p2227_p11 }
0x1670   :  { %2235 = shalt.err (!%p2232_p13)
}
0x1671   :  { %1585 = dma.vmem_to_hbm [thread:$0]  %s1583_s9, 128, %s2815_s14, [#allocation27]  }
0x1672   :  { %s2302_s8 = smov [#allocation25]  }
0x1673   :  { %s1572_s24 = sshll.u32 %s2302_s8, 4  ;;  %s1573_s24 = int_to_ptr.vmem [resolvable:$true] %s1572_s24 }
0x1674   :  { %s2236_s14 = scalar_lea.vmem %s1573_s24, 128  ;;  %p2241_p1 = scmp.lt.s32.totalorder %s1573_s24, %s1573_s24 }
0x1675   :  { %p2237_p0 = scmp.ne.s32.totalorder %s1573_s24, %s2236_s14  ;;  %p2242_p2 = scmp.lt.s32.totalorder %s2236_s14, %s2236_s14 }
0x1677   :  { %p2243_p3 = por %p2242_p2, %p2241_p1 }
0x1679   :  { %p2244_p4 = pnand %p2243_p3, %p2237_p0 }
0x16e3   :  { %v1549_v19 = vpop.permute.xlu0 %1548  ;;  %v1543_v20 = vpop.permute.xlu1 %1542 }
0x16e4   :  { %v1551_v13 = vmul.f32 %v1549_v19, %v2751_v34  ;;  %v1545_v22 = vmul.f32 %v1543_v20, %v2747_v57 }
0x16e6   :  { %v1552_v51 = vadd.f32 %v1551_v13, %v1545_v22 }
0x16e8   :  { %v1561_v23 = vpop.permute.xlu0 %1560  ;;  %v1555_v24 = vpop.permute.xlu1 %1554 }
0x16e9   :  { %v1557_v55 = vmul.f32 %v1555_v24, %v2755_v43  ;;  %v1563_v25 = vmul.f32 %v1561_v23, %v2759_v29 }
0x16eb   :  { %v1558_v26 = vadd.f32 %v1557_v55, %v1552_v51 }
0x16ed   :  { %v1564_v27 = vadd.f32 %v1563_v25, %v1558_v26 }
0x16ef   :  { %1565 = vst.msk [vmem:[#allocation25] sm:$0xff] %vm226_vm0, %v1564_v27 }
0x16f0   :  { %2247 = shalt.err (!%p2244_p4)
}
0x16f1   :  { %s2248_s28 = scalar_lea.hbm %s2814_s13, 128 }
0x16f2   :  { %p2249_p5 = scmp.ne.s32.totalorder %s2814_s13, %s2248_s28  ;;  %p2252_p6 = scmp.lt.u32.totalorder %s2248_s28, %s2814_s13 }
0x16f4   :  { %p2254_p7 = pnand %p2252_p6, %p2249_p5 }
0x16f6   :  { %2257 = shalt.err (!%p2254_p7)
}
0x16f7   :  { %1575 = dma.vmem_to_hbm [thread:$0]  %s1573_s24, 128, %s2814_s13, [#allocation6]  }
0x16f8   :  { %2272 = dma.done.wait [#allocation6], 128  }
0x16f9   :  { %2273 = vsyncadd [#allocation6], 4294967168 }
0x16fa   :  { %2274 = dma.done.wait [#allocation27], 128  }
0x16fb   :  { %2275 = vsyncadd [#allocation27], 4294967168 }
0x16fc   :  { %1592 = vsyncpa [#allocation5], 1 }
0x16fd   :  { %1593 = vsyncpa [#allocation8], 1 }
0x16fe   :  { %1594 = vsyncpa [#allocation11], 1 }
0x16ff   :  { %1595 = vsyncpa [#allocation14], 1 }
0x1700   :  { %1596 = vsyncpa [#allocation17], 1 }
0x1701   :  { %1597 = vsyncpa [#allocation20], 1 }
0x1702   :  { %1598 = vsyncpa [#allocation23], 1 }
0x1703   :  { %1599 = vsyncpa [#allocation6], 1 }
0x1704   :  { %1600 = vsyncpa [#allocation27], 1 }

// kernel: han_forward.2
= control target key start
LH: loop header
LB: loop body
LE: loop exit
PB: predicated region body
PF: predicated region fallthrough
CT: control target
= control target key end

     0   :  { %20 = vsyncpa [#allocation5], 0  ;;  %s4359_s0 = inlined_call_operand.hbm [shape: f32[8,8,32], index: 0, kind: input, shape index: {}]   ;;  %s4360_s1 = inlined_call_operand.hbm [shape: f32[8,1], index: 1, kind: input, shape index: {}]   ;;  %s4361_s2 = inlined_call_operand.hbm [shape: f32[32,48], index: 2, kind: input, shape index: {}]   ;;  %s4362_s3 = inlined_call_operand.hbm [shape: f32[16,48], index: 3, kind: input, shape index: {}]   ;;  %s4363_s4 = inlined_call_operand.hbm [shape: f32[1,48], index: 4, kind: input, shape index: {}]   ;;  %s4364_s5 = inlined_call_operand.hbm [shape: f32[1,48], index: 5, kind: input, shape index: {}]   ;;  %s4365_s6 = inlined_call_operand.hbm [shape: f32[32,48], index: 6, kind: input, shape index: {}]   ;;  %s4366_s7 = inlined_call_operand.hbm [shape: f32[16,48], index: 7, kind: input, shape index: {}]   ;;  %s4367_s8 = inlined_call_operand.hbm [shape: f32[1,48], index: 8, kind: input, shape index: {}]   ;;  %s4368_s9 = inlined_call_operand.hbm [shape: f32[1,48], index: 9, kind: input, shape index: {}]   ;;  %s4369_s10 = inlined_call_operand.hbm [shape: f32[32,16], index: 10, kind: input, shape index: {}]   ;;  %s4370_s11 = inlined_call_operand.hbm [shape: f32[1,16], index: 11, kind: input, shape index: {}]   ;;  %s4371_s12 = inlined_call_operand.hbm [shape: f32[1,16], index: 12, kind: input, shape index: {}]   ;;  %s4372_s13 = inlined_call_operand.hbm [shape: f32[8,32], index: 13, kind: output, shape index: {0}]   ;;  %s4373_s14 = inlined_call_operand.hbm [shape: f32[8,8], index: 14, kind: output, shape index: {1}]  }
   0x1   :  { %21 = vsyncpa [#allocation8], 0 }
   0x2   :  { %22 = vsyncpa [#allocation11], 0 }
   0x3   :  { %23 = vsyncpa [#allocation14], 0 }
   0x4   :  { %24 = vsyncpa [#allocation17], 0 }
   0x5   :  { %25 = vsyncpa [#allocation20], 0 }
   0x6   :  { %26 = vsyncpa [#allocation23], 0 }
   0x7   :  { %27 = vsyncpa [#allocation6], 0 }
   0x8   :  { %28 = vsyncpa [#allocation27], 0  ;;  %s3589_s29 = smov [#allocation7]   ;;  %s3241_s17 = scalar_lea.hbm %s4360_s1, 128 }
   0x9   :  { %s47_s30 = sshll.u32 %s3589_s29, 4  ;;  %p3242_p0 = scmp.ne.s32.totalorder %s4360_s1, %s3241_s17  ;;  %s48_s30 = int_to_ptr.vmem [resolvable:$true] %s47_s30 }
   0xa   :  { %p3245_p1 = scmp.lt.u32.totalorder %s3241_s17, %s4360_s1 }
   0xc   :  { %p3247_p2 = pnand %p3245_p1, %p3242_p0 }
   0xe   :  { %3250 = shalt.err (!%p3247_p2)
}
   0xf   :  { %s3251_s22 = scalar_lea.vmem %s48_s30, 128  ;;  %p3256_p4 = scmp.lt.s32.totalorder %s48_s30, %s48_s30 }
  0x10   :  { %p3252_p3 = scmp.ne.s32.totalorder %s48_s30, %s3251_s22  ;;  %p3257_p5 = scmp.lt.s32.totalorder %s3251_s22, %s3251_s22 }
  0x12   :  { %p3258_p6 = por %p3257_p5, %p3256_p4 }
  0x14   :  { %p3259_p7 = pnand %p3258_p6, %p3252_p3 }
  0x16   :  { %3262 = shalt.err (!%p3259_p7)
}
  0x17   :  { %50 = dma.hbm_to_vmem [thread:$0]  %s4360_s1, 128, %s48_s30, [#allocation8]  }
  0x18   :  { %s3590_s25 = smov [#allocation10]   ;;  %s3591_s27 = smov [#allocation13]  }
  0x19   :  { %s68_s26 = sshll.u32 %s3590_s25, 4  ;;  %s91_s28 = sshll.u32 %s3591_s27, 4  ;;  %s69_s26 = int_to_ptr.vmem [resolvable:$true] %s68_s26  ;;  %s92_s28 = int_to_ptr.vmem [resolvable:$true] %s91_s28 }
  0x1a   :  { %s3263_s16 = scalar_lea.hbm %s4362_s3, 256 }
  0x1b   :  { %p3264_p8 = scmp.ne.s32.totalorder %s4362_s3, %s3263_s16  ;;  %p3267_p9 = scmp.lt.u32.totalorder %s3263_s16, %s4362_s3 }
  0x1d   :  { %p3269_p10 = pnand %p3267_p9, %p3264_p8 }
  0x1f   :  { %3272 = shalt.err (!%p3269_p10)
}
  0x20   :  { %s3273_s1 = scalar_lea.vmem %s69_s26, 256  ;;  %p3278_p12 = scmp.lt.s32.totalorder %s69_s26, %s69_s26 }
  0x21   :  { %p3274_p11 = scmp.ne.s32.totalorder %s69_s26, %s3273_s1  ;;  %p3279_p13 = scmp.lt.s32.totalorder %s3273_s1, %s3273_s1 }
  0x23   :  { %p3280_p0 = por %p3279_p13, %p3278_p12 }
  0x25   :  { %p3281_p1 = pnand %p3280_p0, %p3274_p11 }
  0x27   :  { %3284 = shalt.err (!%p3281_p1)
}
  0x28   :  { %s3592_s30 = smov 128   ;;  %s3593_s21 = smov 8  }
  0x29   :  { %74 = dma.hbm_to_vmem [thread:$0]  %s4362_s3, 256, %s69_s26, [#allocation11], %s3592_s30, %s3592_s30, %s3593_s21  }
  0x2a   :  { %s3285_s27 = scalar_lea.hbm %s4364_s5, 16 }
  0x2b   :  { %p3286_p2 = scmp.ne.s32.totalorder %s4364_s5, %s3285_s27  ;;  %p3289_p3 = scmp.lt.u32.totalorder %s3285_s27, %s4364_s5 }
  0x2d   :  { %p3291_p4 = pnand %p3289_p3, %p3286_p2 }
  0x2f   :  { %3294 = shalt.err (!%p3291_p4)
}
  0x30   :  { %s3295_s18 = scalar_lea.vmem %s92_s28, 16  ;;  %s3299_s19 = scalar_lea.vmem %s92_s28, 32 }
  0x31   :  { %p3296_p5 = scmp.ne.s32.totalorder %s92_s28, %s3295_s18  ;;  %p3300_p6 = scmp.lt.s32.totalorder %s92_s28, %s92_s28 }
  0x32   :  { %p3301_p7 = scmp.lt.s32.totalorder %s3299_s19, %s3295_s18 }
  0x34   :  { %p3302_p8 = por %p3301_p7, %p3300_p6 }
  0x36   :  { %p3303_p9 = pnand %p3302_p8, %p3296_p5 }
  0x38   :  { %3306 = shalt.err (!%p3303_p9)
}
  0x39   :  { %94 = dma.hbm_to_vmem [thread:$0]  %s4364_s5, 16, %s92_s28, [#allocation14]  }
  0x3a   :  { %s3594_s20 = smov [#allocation16]   ;;  %s3595_s22 = smov [#allocation19]  }
  0x3b   :  { %s112_s1 = sshll.u32 %s3594_s20, 4  ;;  %s135_s23 = sshll.u32 %s3595_s22, 4  ;;  %s113_s1 = int_to_ptr.vmem [resolvable:$true] %s112_s1  ;;  %s136_s23 = int_to_ptr.vmem [resolvable:$true] %s135_s23 }
  0x3c   :  { %s3307_s27 = scalar_lea.hbm %s4366_s7, 256 }
  0x3d   :  { %p3308_p10 = scmp.ne.s32.totalorder %s4366_s7, %s3307_s27  ;;  %p3311_p11 = scmp.lt.u32.totalorder %s3307_s27, %s4366_s7 }
  0x3f   :  { %p3313_p12 = pnand %p3311_p11, %p3308_p10 }
  0x41   :  { %3316 = shalt.err (!%p3313_p12)
}
  0x42   :  { %s3317_s5 = scalar_lea.vmem %s113_s1, 256  ;;  %p3322_p0 = scmp.lt.s32.totalorder %s113_s1, %s113_s1 }
  0x43   :  { %p3318_p13 = scmp.ne.s32.totalorder %s113_s1, %s3317_s5  ;;  %p3323_p1 = scmp.lt.s32.totalorder %s3317_s5, %s3317_s5 }
  0x45   :  { %p3324_p2 = por %p3323_p1, %p3322_p0 }
  0x47   :  { %p3325_p3 = pnand %p3324_p2, %p3318_p13 }
  0x49   :  { %3328 = shalt.err (!%p3325_p3)
}
  0x4a   :  { %118 = dma.hbm_to_vmem [thread:$0]  %s4366_s7, 256, %s113_s1, [#allocation17], %s3592_s30, %s3592_s30, %s3593_s21  }
  0x4b   :  { %s3329_s26 = scalar_lea.hbm %s4368_s9, 16 }
  0x4c   :  { %p3330_p4 = scmp.ne.s32.totalorder %s4368_s9, %s3329_s26  ;;  %p3333_p5 = scmp.lt.u32.totalorder %s3329_s26, %s4368_s9 }
  0x4e   :  { %p3335_p6 = pnand %p3333_p5, %p3330_p4 }
  0x50   :  { %3338 = shalt.err (!%p3335_p6)
}
  0x51   :  { %s3339_s27 = scalar_lea.vmem %s136_s23, 16  ;;  %s3343_s29 = scalar_lea.vmem %s136_s23, 32 }
  0x52   :  { %p3340_p7 = scmp.ne.s32.totalorder %s136_s23, %s3339_s27  ;;  %p3344_p8 = scmp.lt.s32.totalorder %s136_s23, %s136_s23 }
  0x53   :  { %p3345_p9 = scmp.lt.s32.totalorder %s3343_s29, %s3339_s27 }
  0x55   :  { %p3346_p10 = por %p3345_p9, %p3344_p8 }
  0x57   :  { %p3347_p11 = pnand %p3346_p10, %p3340_p7 }
  0x59   :  { %3350 = shalt.err (!%p3347_p11)
}
  0x5a   :  { %138 = dma.hbm_to_vmem [thread:$0]  %s4368_s9, 16, %s136_s23, [#allocation20]  }
  0x5b   :  { %s3596_s15 = smov [#allocation22]   ;;  %s3597_s17 = smov [#allocation4]  }
  0x5c   :  { %s157_s16 = sshll.u32 %s3596_s15, 4  ;;  %s34_s5 = sshll.u32 %s3597_s17, 4  ;;  %s158_s16 = int_to_ptr.vmem [resolvable:$true] %s157_s16  ;;  %s35_s5 = int_to_ptr.vmem [resolvable:$true] %s34_s5 }
  0x5d   :  { %s3351_s19 = scalar_lea.hbm %s4370_s11, 16 }
  0x5e   :  { %p3352_p12 = scmp.ne.s32.totalorder %s4370_s11, %s3351_s19  ;;  %p3355_p13 = scmp.lt.u32.totalorder %s3351_s19, %s4370_s11 }
  0x60   :  { %p3357_p0 = pnand %p3355_p13, %p3352_p12 }
  0x62   :  { %3360 = shalt.err (!%p3357_p0)
}
  0x63   :  { %s3361_s9 = scalar_lea.vmem %s158_s16, 16  ;;  %s3365_s23 = scalar_lea.vmem %s158_s16, 32 }
  0x64   :  { %p3362_p1 = scmp.ne.s32.totalorder %s158_s16, %s3361_s9  ;;  %p3366_p2 = scmp.lt.s32.totalorder %s158_s16, %s158_s16 }
  0x65   :  { %p3367_p3 = scmp.lt.s32.totalorder %s3365_s23, %s3361_s9 }
  0x67   :  { %p3368_p4 = por %p3367_p3, %p3366_p2 }
  0x69   :  { %p3369_p5 = pnand %p3368_p4, %p3362_p1 }
  0x6b   :  { %3372 = shalt.err (!%p3369_p5)
}
  0x6c   :  { %160 = dma.hbm_to_vmem [thread:$0]  %s4370_s11, 16, %s158_s16, [#allocation23]  }
  0x6d   :  { %s3373_s7 = scalar_lea.hbm %s4359_s0, 1024 }
  0x6e   :  { %p3374_p6 = scmp.ne.s32.totalorder %s4359_s0, %s3373_s7  ;;  %p3377_p7 = scmp.lt.u32.totalorder %s3373_s7, %s4359_s0 }
  0x70   :  { %p3379_p8 = pnand %p3377_p7, %p3374_p6 }
  0x72   :  { %3382 = shalt.err (!%p3379_p8)
}
  0x73   :  { %s3383_s18 = scalar_lea.vmem %s35_s5, 1024  ;;  %p3388_p10 = scmp.lt.s32.totalorder %s35_s5, %s35_s5 }
  0x74   :  { %p3384_p9 = scmp.ne.s32.totalorder %s35_s5, %s3383_s18  ;;  %p3389_p11 = scmp.lt.s32.totalorder %s3383_s18, %s3383_s18 }
  0x76   :  { %p3390_p12 = por %p3389_p11, %p3388_p10 }
  0x78   :  { %p3391_p13 = pnand %p3390_p12, %p3384_p9 }
  0x7a   :  { %3394 = shalt.err (!%p3391_p13)
}
  0x7b   :  { %40 = dma.hbm_to_vmem [thread:$0]  %s4359_s0, 1024, %s35_s5, [#allocation5], %s3592_s30, %s3592_s30, %s3593_s21  }
  0x7c   :  { %s3598_s19 = smov [#allocation9]   ;;  %s3599_s26 = smov [#allocation12]  }
  0x7d   :  { %s56_s3 = sshll.u32 %s3598_s19, 4  ;;  %s81_s20 = sshll.u32 %s3599_s26, 4  ;;  %s57_s3 = int_to_ptr.vmem [resolvable:$true] %s56_s3  ;;  %s82_s20 = int_to_ptr.vmem [resolvable:$true] %s81_s20 }
  0x7e   :  { %s3395_s23 = scalar_lea.hbm %s4361_s2, 512 }
  0x7f   :  { %p3396_p0 = scmp.ne.s32.totalorder %s4361_s2, %s3395_s23  ;;  %p3399_p1 = scmp.lt.u32.totalorder %s3395_s23, %s4361_s2 }
  0x81   :  { %p3401_p2 = pnand %p3399_p1, %p3396_p0 }
  0x83   :  { %3404 = shalt.err (!%p3401_p2)
}
  0x84   :  { %s3405_s0 = scalar_lea.vmem %s57_s3, 512  ;;  %p3410_p4 = scmp.lt.s32.totalorder %s57_s3, %s57_s3 }
  0x85   :  { %p3406_p3 = scmp.ne.s32.totalorder %s57_s3, %s3405_s0  ;;  %p3411_p5 = scmp.lt.s32.totalorder %s3405_s0, %s3405_s0 }
  0x87   :  { %p3412_p6 = por %p3411_p5, %p3410_p4 }
  0x89   :  { %p3413_p7 = pnand %p3412_p6, %p3406_p3 }
  0x8b   :  { %3416 = shalt.err (!%p3413_p7)
}
  0x8c   :  { %62 = dma.hbm_to_vmem [thread:$0]  %s4361_s2, 512, %s57_s3, [#allocation8], %s3592_s30, %s3592_s30, %s3593_s21  }
  0x8d   :  { %s3417_s17 = scalar_lea.hbm %s4363_s4, 16 }
  0x8e   :  { %p3418_p8 = scmp.ne.s32.totalorder %s4363_s4, %s3417_s17  ;;  %p3421_p9 = scmp.lt.u32.totalorder %s3417_s17, %s4363_s4 }
  0x90   :  { %p3423_p10 = pnand %p3421_p9, %p3418_p8 }
  0x92   :  { %3426 = shalt.err (!%p3423_p10)
}
  0x93   :  { %s3427_s19 = scalar_lea.vmem %s82_s20, 16  ;;  %s3431_s26 = scalar_lea.vmem %s82_s20, 32 }
  0x94   :  { %p3428_p11 = scmp.ne.s32.totalorder %s82_s20, %s3427_s19  ;;  %p3432_p12 = scmp.lt.s32.totalorder %s82_s20, %s82_s20 }
  0x95   :  { %p3433_p13 = scmp.lt.s32.totalorder %s3431_s26, %s3427_s19 }
  0x97   :  { %p3434_p0 = por %p3433_p13, %p3432_p12 }
  0x99   :  { %p3435_p1 = pnand %p3434_p0, %p3428_p11 }
  0x9b   :  { %3438 = shalt.err (!%p3435_p1)
}
  0x9c   :  { %84 = dma.hbm_to_vmem [thread:$0]  %s4363_s4, 16, %s82_s20, [#allocation11]  }
  0x9d   :  { %s3600_s22 = smov [#allocation15]   ;;  %s3601_s23 = smov [#allocation18]  }
  0x9e   :  { %s100_s9 = sshll.u32 %s3600_s22, 4  ;;  %s125_s24 = sshll.u32 %s3601_s23, 4  ;;  %s101_s9 = int_to_ptr.vmem [resolvable:$true] %s100_s9  ;;  %s126_s24 = int_to_ptr.vmem [resolvable:$true] %s125_s24 }
  0x9f   :  { %s3439_s29 = scalar_lea.hbm %s4365_s6, 512 }
  0xa0   :  { %p3440_p2 = scmp.ne.s32.totalorder %s4365_s6, %s3439_s29  ;;  %p3443_p3 = scmp.lt.u32.totalorder %s3439_s29, %s4365_s6 }
  0xa2   :  { %p3445_p4 = pnand %p3443_p3, %p3440_p2 }
  0xa4   :  { %3448 = shalt.err (!%p3445_p4)
}
  0xa5   :  { %s3449_s4 = scalar_lea.vmem %s101_s9, 512  ;;  %p3454_p6 = scmp.lt.s32.totalorder %s101_s9, %s101_s9 }
  0xa6   :  { %p3450_p5 = scmp.ne.s32.totalorder %s101_s9, %s3449_s4  ;;  %p3455_p7 = scmp.lt.s32.totalorder %s3449_s4, %s3449_s4 }
  0xa8   :  { %p3456_p8 = por %p3455_p7, %p3454_p6 }
  0xaa   :  { %p3457_p9 = pnand %p3456_p8, %p3450_p5 }
  0xac   :  { %3460 = shalt.err (!%p3457_p9)
}
  0xad   :  { %106 = dma.hbm_to_vmem [thread:$0]  %s4365_s6, 512, %s101_s9, [#allocation14], %s3592_s30, %s3592_s30, %s3593_s21  }
  0xae   :  { %s3461_s18 = scalar_lea.hbm %s4367_s8, 16 }
  0xaf   :  { %p3462_p10 = scmp.ne.s32.totalorder %s4367_s8, %s3461_s18  ;;  %p3465_p11 = scmp.lt.u32.totalorder %s3461_s18, %s4367_s8 }
  0xb1   :  { %p3467_p12 = pnand %p3465_p11, %p3462_p10 }
  0xb3   :  { %3470 = shalt.err (!%p3467_p12)
}
  0xb4   :  { %s3471_s2 = scalar_lea.vmem %s126_s24, 16  ;;  %s3475_s3 = scalar_lea.vmem %s126_s24, 32 }
  0xb5   :  { %p3472_p13 = scmp.ne.s32.totalorder %s126_s24, %s3471_s2  ;;  %p3476_p0 = scmp.lt.s32.totalorder %s126_s24, %s126_s24 }
  0xb6   :  { %p3477_p1 = scmp.lt.s32.totalorder %s3475_s3, %s3471_s2 }
  0xb8   :  { %p3478_p2 = por %p3477_p1, %p3476_p0 }
  0xba   :  { %p3479_p3 = pnand %p3478_p2, %p3472_p13 }
  0xbc   :  { %3482 = shalt.err (!%p3479_p3)
}
  0xbd   :  { %128 = dma.hbm_to_vmem [thread:$0]  %s4367_s8, 16, %s126_s24, [#allocation17]  }
  0xbe   :  { %s3602_s9 = smov [#allocation21]   ;;  %s3603_s25 = smov [#allocation24]  }
  0xbf   :  { %s144_s23 = sshll.u32 %s3602_s9, 4  ;;  %s167_s27 = sshll.u32 %s3603_s25, 4  ;;  %s145_s23 = int_to_ptr.vmem [resolvable:$true] %s144_s23  ;;  %s168_s27 = int_to_ptr.vmem [resolvable:$true] %s167_s27 }
  0xc0   :  { %s3483_s5 = scalar_lea.hbm %s4369_s10, 512 }
  0xc1   :  { %p3484_p4 = scmp.ne.s32.totalorder %s4369_s10, %s3483_s5  ;;  %p3487_p5 = scmp.lt.u32.totalorder %s3483_s5, %s4369_s10 }
  0xc3   :  { %p3489_p6 = pnand %p3487_p5, %p3484_p4 }
  0xc5   :  { %3492 = shalt.err (!%p3489_p6)
}
  0xc6   :  { %s3493_s8 = scalar_lea.vmem %s145_s23, 512  ;;  %p3498_p8 = scmp.lt.s32.totalorder %s145_s23, %s145_s23 }
  0xc7   :  { %p3494_p7 = scmp.ne.s32.totalorder %s145_s23, %s3493_s8  ;;  %p3499_p9 = scmp.lt.s32.totalorder %s3493_s8, %s3493_s8 }
  0xc9   :  { %p3500_p10 = por %p3499_p9, %p3498_p8 }
  0xcb   :  { %p3501_p11 = pnand %p3500_p10, %p3494_p7 }
  0xcd   :  { %3504 = shalt.err (!%p3501_p11)
}
  0xce   :  { %150 = dma.hbm_to_vmem [thread:$0]  %s4369_s10, 512, %s145_s23, [#allocation20], %s3592_s30, %s3592_s30, %s3593_s21  }
  0xcf   :  { %s3505_s18 = scalar_lea.hbm %s4371_s12, 16 }
  0xd0   :  { %p3506_p12 = scmp.ne.s32.totalorder %s4371_s12, %s3505_s18  ;;  %p3509_p13 = scmp.lt.u32.totalorder %s3505_s18, %s4371_s12 }
  0xd2   :  { %p3511_p0 = pnand %p3509_p13, %p3506_p12 }
  0xd4   :  { %3514 = shalt.err (!%p3511_p0)
}
  0xd5   :  { %s3515_s2 = scalar_lea.vmem %s168_s27, 16  ;;  %s3519_s3 = scalar_lea.vmem %s168_s27, 32 }
  0xd6   :  { %p3516_p1 = scmp.ne.s32.totalorder %s168_s27, %s3515_s2  ;;  %p3520_p2 = scmp.lt.s32.totalorder %s168_s27, %s168_s27 }
  0xd7   :  { %p3521_p3 = scmp.lt.s32.totalorder %s3519_s3, %s3515_s2 }
  0xd9   :  { %p3522_p4 = por %p3521_p3, %p3520_p2 }
  0xdb   :  { %p3523_p5 = pnand %p3522_p4, %p3516_p1 }
  0xdd   :  { %3526 = shalt.err (!%p3523_p5)
}
  0xde   :  { %170 = dma.hbm_to_vmem [thread:$0]  %s4371_s12, 16, %s168_s27, [#allocation23]  }
  0xdf   :  { %3571 = dma.done.wait [#allocation5], 1024  }
  0xe0   :  { %3572 = vsyncadd [#allocation5], 4294966272 }
  0xe1   :  { %3573 = dma.done.wait [#allocation8], 640  }
  0xe2   :  { %3574 = vsyncadd [#allocation8], 4294966656 }
  0xe3   :  { %3575 = dma.done.wait [#allocation11], 272  }
  0xe4   :  { %3576 = vsyncadd [#allocation11], 4294967024 }
  0xe5   :  { %3577 = dma.done.wait [#allocation14], 528  }
  0xe6   :  { %3578 = vsyncadd [#allocation14], 4294966768 }
  0xe7   :  { %3579 = dma.done.wait [#allocation17], 272  }
  0xe8   :  { %3580 = vsyncadd [#allocation17], 4294967024 }
  0xe9   :  { %3581 = dma.done.wait [#allocation20], 528  }
  0xea   :  { %3582 = vsyncadd [#allocation20], 4294966768 }
  0xeb   :  { %3583 = dma.done.wait [#allocation23], 32  }
  0xec   :  { %3584 = vsyncadd [#allocation23], 4294967264  ;;  %vm230_vm0 = vcmask 261120   ;;  %v219_v0 = vld [vmem:[#allocation9] sm:$0xff]  ;;  %v220_v1 = vld [vmem:[#allocation9 + $0x8] sm:$0xff]  ;;  %v3604_v13 = vmov 0.0|0.0  }
  0xed   :  { %v221_v2 = vld [vmem:[#allocation9 + $0x10] sm:$0xff]  ;;  %v3006_v3 = vpack.c.bf16 %v220_v1, %v219_v0  ;;  %v222_v4 = vld [vmem:[#allocation9 + $0x18] sm:$0xff]  ;;  %v369_v8 = vld [vmem:[#allocation10] sm:$0xff]  ;;  %vm3605_vm1 = vmmov 0   ;;  %v3606_v16 = vmov 0.0   ;;  %vm360_vm2 = vcmask 392192  }
  0xee   :  { %v3869_v5 = vld [vmem:[#allocation4] sm:$0xff]  ;;  %v3010_v7 = vpack.c.bf16 %v222_v4, %v221_v2  ;;  %v370_v9 = vld [vmem:[#allocation10 + $0x8] sm:$0xff]  ;;  %v3877_v10 = vld [vmem:[#allocation4 + $0x8] sm:$0xff]  ;;  %v3607_v25 = vmov 0   ;;  %s3608_s12 = smov 96   ;;  %s3609_s21 = smov 32  }
  0xef   :  { %v3871_v6 = vld [vmem:[#allocation4 + $0x20] sm:$0xff]  ;;  %2842 = vmatprep.mubr.msk.f32.mxu0 %vm230_vm0, %v3869_v5  ;;  %3007 = vmatprep.subr.bf16.mxu0 %v3006_v3  ;;  %v3879_v11 = vld [vmem:[#allocation4 + $0x28] sm:$0xff]  ;;  %v3881_v12 = vpack.c.bf16 %v370_v9, %v369_v8  ;;  %v3884_v14 = vld [vmem:[#allocation4 + $0x30] sm:$0xff]  ;;  %s3610_s6 = smov 112   ;;  %vm379_vm4 = vcmask 130048   ;;  %vm1606_vm12 = vcmask 261248  }
  0xf0   :  { %2848 = vmatprep.mubr.msk.f32.mxu1 %vm230_vm0, %v3871_v6  ;;  %3078 = vmatprep.subr.bf16.mxu1 %v3006_v3  ;;  %v3894_v15 = vld [vmem:[#allocation4 + $0x38] sm:$0xff]  ;;  %v3910_v20 = vld [vmem:[#allocation7] sm:$0xff]  ;;  %vm2523_vm13 = vcmask 7168   ;;  %vm2529_vm14 = vcmask 15368   ;;  %vm2535_vm15 = vcmask 23568   ;;  %s3618_s22 = smov [#allocation26]  }
  0xf1   :  { %3009 = vmatpush3.bf16.msra.mxu0 %v3006_v3  ;;  %3080 = vmatpush3.bf16.msra.mxu1 %v3006_v3  ;;  %v3908_v17 = vld [vmem:[#allocation12] ss:$0 sm:$0xff]  ;;  %vm479_vm3 = vcmp.gt.f32.partialorder %v3910_v20, 0.0  ;;  %v3924_v34 = vld [vmem:[#allocation13] ss:$0 sm:$0xff]  ;;  %vm604_vm5 = vcmp.gt.f32.partialorder %v3910_v20, 1.0 }
  0xf2   :  { %3011 = vmatprep.subr.bf16.mxu0 %v3010_v7  ;;  %3079 = vmatprep.subr.bf16.mxu1 %v3010_v7  ;;  %v2692_v28 = vsel %vm479_vm3, 1.0, %v3606_v16  ;;  %v2695_v63 = vsel %vm604_vm5, 1.0, %v3606_v16  ;;  %vm730_vm6 = vcmp.gt.f32.partialorder %v3910_v20, 2.0  ;;  %vm856_vm7 = vcmp.gt.f32.partialorder %v3910_v20, 3.0  ;;  %s2662_s9 = sshll.u32 %s3618_s22, 4  ;;  %s2663_s9 = int_to_ptr.vmem [resolvable:$true] %s2662_s9 }
  0xf3   :  { %3113 = vset.pattern.permute.xlu1 %v3607_v25  ;;  %3114 = vset.pattern.permute.xlu0 %v3607_v25  ;;  %v493_v29 = vsub.f32 1.0, %v2692_v28  ;;  %vm982_vm8 = vcmp.gt.f32.partialorder %v3910_v20, 4.0  ;;  %vm1108_vm9 = vcmp.gt.f32.partialorder %v3910_v20, 5.0  ;;  %vm1234_vm10 = vcmp.gt.f32.partialorder %v3910_v20, 6.0  ;;  %s3527_s23 = scalar_lea.vmem %s2663_s9, 128  ;;  %p3532_p7 = scmp.lt.s32.totalorder %s2663_s9, %s2663_s9 }
  0xf4   :  { %484 = vperm.xlu1 %3113, %v2692_v28   ;;  %vm1360_vm11 = vcmp.gt.f32.partialorder %v3910_v20, 7.0  ;;  %vm2553_vm3 = vcmask 48168   ;;  %vm2565_vm5 = vcmask 64568   ;;  %p3528_p6 = scmp.ne.s32.totalorder %s2663_s9, %s3527_s23  ;;  %p3533_p8 = scmp.lt.s32.totalorder %s3527_s23, %s3527_s23 }
  0xf5   :  { %3013 = vmatpush3.bf16.msra.mxu0 %v3010_v7  ;;  %3081 = vmatpush3.bf16.msra.mxu1 %v3010_v7 }
  0xf6   :  { %3014 = vmatprep.subr.bf16.mxu1 %v3604_v13  ;;  %3029 = vmatprep.subr.bf16.mxu0 %v3604_v13  ;;  %p3534_p9 = por %p3533_p8, %p3532_p7 }
  0xf8   :  { %2843 = vmatmul.mubr.msk.f32.vlgmr.msra.gmra.mrb[0].mxu0 %vm230_vm0, %v3877_v10  ;;  %2849 = vmatmul.mubr.msk.f32.vlgmr.msra.gmra.mrb[0].mxu1 %vm230_vm0, %v3879_v11  ;;  %p3535_p10 = pnand %p3534_p9, %p3528_p6 }
  0xf9   :  { %3016 = vmatpush3.bf16.msra.mxu1 %v3881_v12  ;;  %2851 = vmatprep.mubr.msk.f32.mxu1 %vm230_vm0, %v3884_v14 }
  0xfa   :  { %3017 = vmatprep.subr.bf16.mxu1 %v3604_v13  ;;  %3031 = vmatpush3.bf16.msra.mxu0 %v3881_v12 }
  0xfb   :  { %3035 = vmatprep.subr.bf16.mxu0 %v3604_v13  ;;  %496 = vperm.xlu1 %3113, %v493_v29  }
  0xfc   :  { %2852 = vmatmul.mubr.msk.f32.gmra.mrb[2].mxu1 %vm230_vm0, %v3894_v15 }
  0xfd   :  { %2858 = vmatprep.mubr.msk.f32.mxu1 %vm3605_vm1, %v3606_v16 }
 0x100   :  { %2859 = vmatmul.mubr.f32.vlgmr.msra.gmra.mrb[4].mxu1 %v3606_v16 }
 0x101   :  { %3019 = vmatpush3.bf16.msra.mxu1 %v3881_v12  ;;  %2865 = vmatprep.mubr.msk.f32.mxu1 %vm3605_vm1, %v3606_v16 }
 0x102   :  { %3020 = vmatprep.subr.bf16.mxu1 %v3604_v13 }
 0x173   :  { %v3932_v49 = vpop.permute.xlu1 %484 }
 0x17a   :  { %v497_v54 = vpop.permute.xlu1 %496 }
 0x17b   :  { %v499_v57 = vmul.f32 0.0, %v497_v54 }
 0x1cb   :  { %v2844_v18 = vpop.f32.mrb[0].mxu0  ;;  %v2850_v19 = vpop.f32.mrb[0].mxu1 }
 0x1cc   :  { %v327_v21 = vadd.f32 %v2844_v18, %v3908_v17  ;;  %v347_v22 = vadd.f32 %v2850_v19, %v3908_v17  ;;  %v321_v23 = vpop.f32.mrb[1].mxu0  ;;  %v341_v24 = vpop.f32.mrb[1].mxu1  ;;  %v619_v18 = vsub.f32 1.0, %v2695_v63 }
 0x1cd   :  { %v322_v26 = vadd.f32 %v3908_v17, %v321_v23  ;;  %v342_v27 = vadd.f32 %v3908_v17, %v341_v24  ;;  %v3951_v23 = vld [vmem:[#allocation4 + $0x18] sm:$0xff] }
 0x1ce   :  { %362 = vst.msk [vmem:[#allocation2 + $0x8] sm:$0xff] %vm360_vm2, %v327_v21  ;;  %366 = vst.msk [vmem:[#allocation2 + $0x28] sm:$0xff] %vm360_vm2, %v347_v22  ;;  %v3949_v22 = vld [vmem:[#allocation4 + $0x10] sm:$0xff] }
 0x1cf   :  { %361 = vst.msk [vmem:[#allocation2] sm:$0xff] %vm360_vm2, %v322_v26  ;;  %365 = vst.msk [vmem:[#allocation2 + $0x20] sm:$0xff] %vm360_vm2, %v342_v27  ;;  %v2853_v30 = vpop.f32.mrb[2].mxu1  ;;  %2845 = vmatprep.mubr.msk.f32.mxu0 %vm230_vm0, %v3949_v22 }
 0x1d0   :  { %v357_v31 = vadd.f32 %v2853_v30, %v3908_v17  ;;  %v351_v32 = vpop.f32.mrb[3].mxu1  ;;  %2846 = vmatmul.mubr.msk.f32.gmra.mrb[2].mxu0 %vm230_vm0, %v3951_v23 }
 0x1d1   :  { %v352_v33 = vadd.f32 %v3908_v17, %v351_v32  ;;  %2893 = vmatprep.mubr.msk.f32.mxu0 %vm3605_vm1, %v3606_v16 }
 0x1d2   :  { %368 = vst.msk [vmem:[#allocation2 + $0x38] sm:$0xff] %vm360_vm2, %v357_v31 }
 0x1d3   :  { %367 = vst.msk [vmem:[#allocation2 + $0x30] sm:$0xff] %vm360_vm2, %v352_v33  ;;  %v449_v35 = vpop.f32.mrb[4].mxu1 }
 0x1d4   :  { %v450_v36 = vadd.f32 %v3924_v34, %v449_v35  ;;  %v2860_v37 = vpop.f32.mrb[5].mxu1 }
 0x1d5   :  { %v502_v0 = vld [vmem:[#allocation2 + $0x8] sm:$0xff] }
 0x1d6   :  { %461 = vrot.lane.b32.xlu0 %v450_v36, %s3608_s12  ;;  %v378_v38 = vld [vmem:[#allocation2] sm:$0xff] }
 0x1d7   :  { %v453_v39 = vadd.f32 %v450_v36, %v378_v38 }
 0x1d9   :  { %v2691_v40 = vmul.f32 -1.442695, %v453_v39 }
 0x1db   :  { %3123 = vpow2.f32 %v2691_v40 }
 0x1e5   :  { %v3124_v41 = vpop.eup %3123 }
 0x1e6   :  { %v457_v42 = vadd.f32 1.0, %v3124_v41 }
 0x1e8   :  { %3125 = vrcp.f32 %v457_v42 }
 0x1f2   :  { %v3126_v43 = vpop.eup %3125 }
 0x1f3   :  { %v471_v50 = vsub.f32 1.0, %v3126_v43  ;;  %v477_v52 = vmul.f32 0.0, %v3126_v43 }
 0x248   :  { %v462_v44 = vpop.permute.xlu0 %461 }
 0x249   :  { %v464_v45 = vmul.f32 %v3126_v43, %v462_v44 }
 0x24b   :  { %466 = vrot.lane.b32.xlu0 %v464_v45, %s3609_s21 }
 0x2a3   :  { %v2847_v36 = vpop.f32.mrb[2].mxu0 }
 0x2a4   :  { %v337_v37 = vadd.f32 %v2847_v36, %v3908_v17 }
 0x2a6   :  { %364 = vst.msk [vmem:[#allocation2 + $0x18] sm:$0xff] %vm360_vm2, %v337_v37 }
 0x2bd   :  { %v467_v46 = vpop.permute.xlu0 %466 }
 0x2be   :  { %v469_v47 = vadd.f32 %v467_v46, %v378_v38  ;;  %v331_v38 = vpop.f32.mrb[3].mxu0 }
 0x2bf   :  { %v332_v39 = vadd.f32 %v3908_v17, %v331_v38  ;;  %v2698_v17 = vsel %vm730_vm6, 1.0, %v3606_v16 }
 0x2c0   :  { %3127 = vtanh.f32 %v469_v47 }
 0x2c1   :  { %363 = vst.msk [vmem:[#allocation2 + $0x10] sm:$0xff] %vm360_vm2, %v332_v39 }
 0x2c8   :  { %v628_v44 = vld [vmem:[#allocation2 + $0x10] sm:$0xff] }
 0x2ca   :  { %v3128_v48 = vpop.eup %3127 }
 0x2cb   :  { %473 = vrot.lane.b32.xlu0 %v3128_v48, %s3610_s6 }
 0x33d   :  { %v474_v51 = vpop.permute.xlu0 %473 }
 0x33e   :  { %v476_v53 = vmul.f32 %v474_v51, %v471_v50 }
 0x340   :  { %v478_v55 = vadd.f32 %v477_v52, %v476_v53  ;;  %v745_v53 = vsub.f32 1.0, %v2698_v17 }
 0x342   :  { %v3935_v56 = vmul.f32 %v3932_v49, %v478_v55 }
 0x344   :  { %v500_v58 = vadd.f32 %v499_v57, %v3935_v56 }
 0x346   :  { %504 = vrot.lane.b32.xlu1 %v500_v58, %s3610_s6 }
 0x3b8   :  { %v505_v59 = vpop.permute.xlu1 %504 }
 0x3b9   :  { %2866 = vmatmul.mubr.msk.f32.vlgmr.msra.gmra.mrb[6].mxu1 %vm379_vm4, %v505_v59 }
 0x3ba   :  { %3022 = vmatpush3.bf16.msra.mxu1 %v3881_v12  ;;  %2872 = vmatprep.mubr.msk.f32.mxu1 %vm3605_vm1, %v3606_v16 }
 0x3bb   :  { %3023 = vmatprep.subr.bf16.mxu1 %v3604_v13 }
 0x48c   :  { %v574_v60 = vpop.f32.mrb[6].mxu1 }
 0x48d   :  { %v575_v61 = vadd.f32 %v3924_v34, %v574_v60  ;;  %v2867_v62 = vpop.f32.mrb[7].mxu1 }
 0x48f   :  { %586 = vrot.lane.b32.xlu0 %v575_v61, %s3608_s12  ;;  %v578_v1 = vadd.f32 %v575_v61, %v502_v0 }
 0x491   :  { %v2694_v2 = vmul.f32 -1.442695, %v578_v1 }
 0x493   :  { %609 = vperm.xlu0 %3114, %v2695_v63   ;;  %3129 = vpow2.f32 %v2694_v2 }
 0x49d   :  { %v3130_v3 = vpop.eup %3129 }
 0x49e   :  { %v582_v4 = vadd.f32 1.0, %v3130_v3 }
 0x4a0   :  { %3131 = vrcp.f32 %v582_v4 }
 0x4aa   :  { %v3132_v7 = vpop.eup %3131 }
 0x4ab   :  { %v596_v26 = vsub.f32 1.0, %v3132_v7  ;;  %v602_v28 = vmul.f32 %v3132_v7, %v500_v58 }
 0x501   :  { %v587_v8 = vpop.permute.xlu0 %586 }
 0x502   :  { %v589_v9 = vmul.f32 %v3132_v7, %v587_v8 }
 0x504   :  { %591 = vrot.lane.b32.xlu1 %v589_v9, %s3609_s21 }
 0x508   :  { %622 = vperm.xlu1 %3113, %v619_v18   ;;  %v2701_v18 = vsel %vm856_vm7, 1.0, %v3606_v16  ;;  %vm2583_vm7 = vcmask 64512  }
 0x512   :  { %v3962_v30 = vpop.permute.xlu0 %609 }
 0x576   :  { %v592_v19 = vpop.permute.xlu1 %591 }
 0x577   :  { %v594_v21 = vadd.f32 %v592_v19, %v502_v0  ;;  %v754_v19 = vld [vmem:[#allocation2 + $0x18] sm:$0xff] }
 0x579   :  { %3133 = vtanh.f32 %v594_v21 }
 0x583   :  { %v3134_v24 = vpop.eup %3133 }
 0x584   :  { %598 = vrot.lane.b32.xlu1 %v3134_v24, %s3610_s6 }
 0x587   :  { %v3960_v25 = vpop.permute.xlu1 %622 }
 0x588   :  { %v625_v32 = vmul.f32 %v3960_v25, %v500_v58 }
 0x5f6   :  { %v599_v27 = vpop.permute.xlu1 %598 }
 0x5f7   :  { %v601_v29 = vmul.f32 %v599_v27, %v596_v26 }
 0x5f9   :  { %v603_v31 = vadd.f32 %v602_v28, %v601_v29 }
 0x5fb   :  { %v3966_v33 = vmul.f32 %v3962_v30, %v603_v31 }
 0x5fd   :  { %v626_v35 = vadd.f32 %v625_v32, %v3966_v33  ;;  %v871_v32 = vsub.f32 1.0, %v2701_v18 }
 0x5ff   :  { %630 = vrot.lane.b32.xlu0 %v626_v35, %s3610_s6 }
 0x671   :  { %v631_v40 = vpop.permute.xlu0 %630 }
 0x672   :  { %2873 = vmatmul.mubr.msk.f32.vlgmr.msra.gmra.mrb[8].mxu1 %vm379_vm4, %v631_v40 }
 0x673   :  { %3025 = vmatpush3.bf16.msra.mxu1 %v3881_v12  ;;  %2879 = vmatprep.mubr.msk.f32.mxu1 %vm3605_vm1, %v3606_v16 }
 0x674   :  { %3026 = vmatprep.subr.bf16.mxu1 %v3604_v13 }
 0x745   :  { %v700_v41 = vpop.f32.mrb[8].mxu1 }
 0x746   :  { %v701_v42 = vadd.f32 %v3924_v34, %v700_v41  ;;  %v2874_v43 = vpop.f32.mrb[9].mxu1 }
 0x748   :  { %712 = vrot.lane.b32.xlu1 %v701_v42, %s3608_s12  ;;  %v704_v45 = vadd.f32 %v701_v42, %v628_v44 }
 0x74a   :  { %v2697_v46 = vmul.f32 -1.442695, %v704_v45 }
 0x74c   :  { %735 = vperm.xlu1 %3113, %v2698_v17   ;;  %3135 = vpow2.f32 %v2697_v46 }
 0x756   :  { %v3136_v47 = vpop.eup %3135 }
 0x757   :  { %v708_v48 = vadd.f32 1.0, %v3136_v47 }
 0x759   :  { %3137 = vrcp.f32 %v708_v48 }
 0x763   :  { %v3138_v50 = vpop.eup %3137 }
 0x764   :  { %v722_v59 = vsub.f32 1.0, %v3138_v50  ;;  %v728_v61 = vmul.f32 %v3138_v50, %v626_v35 }
 0x7ba   :  { %v713_v51 = vpop.permute.xlu1 %712 }
 0x7bb   :  { %v715_v52 = vmul.f32 %v3138_v50, %v713_v51 }
 0x7bd   :  { %717 = vrot.lane.b32.xlu0 %v715_v52, %s3609_s21  ;;  %v2704_v52 = vsel %vm982_vm8, 1.0, %v3606_v16 }
 0x7c1   :  { %748 = vperm.xlu0 %3114, %v745_v53   ;;  %v880_v53 = vld [vmem:[#allocation2 + $0x20] sm:$0xff] }
 0x7cb   :  { %v3985_v58 = vpop.permute.xlu1 %735 }
 0x82f   :  { %v718_v54 = vpop.permute.xlu0 %717 }
 0x830   :  { %v720_v55 = vadd.f32 %v718_v54, %v628_v44 }
 0x832   :  { %3139 = vtanh.f32 %v720_v55 }
 0x83c   :  { %v3140_v57 = vpop.eup %3139 }
 0x83d   :  { %724 = vrot.lane.b32.xlu1 %v3140_v57, %s3610_s6 }
 0x840   :  { %v3987_v63 = vpop.permute.xlu0 %748 }
 0x841   :  { %v751_v1 = vmul.f32 %v3987_v63, %v626_v35 }
 0x8af   :  { %v725_v60 = vpop.permute.xlu1 %724 }
 0x8b0   :  { %v727_v62 = vmul.f32 %v725_v60, %v722_v59 }
 0x8b2   :  { %v729_v0 = vadd.f32 %v728_v61, %v727_v62 }
 0x8b4   :  { %v3991_v2 = vmul.f32 %v3985_v58, %v729_v0  ;;  %v997_v0 = vsub.f32 1.0, %v2704_v52 }
 0x8b6   :  { %v752_v3 = vadd.f32 %v751_v1, %v3991_v2 }
 0x8b8   :  { %756 = vrot.lane.b32.xlu0 %v752_v3, %s3610_s6 }
 0x92a   :  { %v757_v4 = vpop.permute.xlu0 %756 }
 0x92b   :  { %2880 = vmatmul.mubr.msk.f32.vlgmr.msra.gmra.mrb[10].mxu1 %vm379_vm4, %v757_v4 }
 0x92c   :  { %3028 = vmatpush3.bf16.msra.mxu1 %v3881_v12  ;;  %2886 = vmatprep.mubr.msk.f32.mxu1 %vm3605_vm1, %v3606_v16 }
 0x92d   :  { %3032 = vmatprep.subr.bf16.mxu1 %v3604_v13 }
 0x9fe   :  { %v826_v7 = vpop.f32.mrb[10].mxu1 }
 0x9ff   :  { %v827_v8 = vadd.f32 %v3924_v34, %v826_v7  ;;  %v2881_v9 = vpop.f32.mrb[11].mxu1 }
 0xa01   :  { %838 = vrot.lane.b32.xlu1 %v827_v8, %s3608_s12  ;;  %v830_v21 = vadd.f32 %v827_v8, %v754_v19 }
 0xa03   :  { %v2700_v24 = vmul.f32 -1.442695, %v830_v21 }
 0xa05   :  { %861 = vperm.xlu1 %3113, %v2701_v18   ;;  %3141 = vpow2.f32 %v2700_v24 }
 0xa0f   :  { %v3142_v26 = vpop.eup %3141 }
 0xa10   :  { %v834_v27 = vadd.f32 1.0, %v3142_v26 }
 0xa12   :  { %3143 = vrcp.f32 %v834_v27 }
 0xa1c   :  { %v3144_v28 = vpop.eup %3143 }
 0xa1d   :  { %v848_v39 = vsub.f32 1.0, %v3144_v28  ;;  %v854_v41 = vmul.f32 %v3144_v28, %v752_v3 }
 0xa73   :  { %v839_v29 = vpop.permute.xlu1 %838 }
 0xa74   :  { %v841_v31 = vmul.f32 %v3144_v28, %v839_v29 }
 0xa76   :  { %843 = vrot.lane.b32.xlu0 %v841_v31, %s3609_s21 }
 0xa7a   :  { %874 = vperm.xlu0 %3114, %v871_v32  }
 0xa84   :  { %v4006_v38 = vpop.permute.xlu1 %861 }
 0xae8   :  { %v844_v35 = vpop.permute.xlu0 %843 }
 0xae9   :  { %v846_v36 = vadd.f32 %v844_v35, %v754_v19 }
 0xaeb   :  { %3145 = vtanh.f32 %v846_v36  ;;  %v2707_v36 = vsel %vm1108_vm9, 1.0, %v3606_v16 }
 0xaf5   :  { %v3146_v37 = vpop.eup %3145 }
 0xaf6   :  { %850 = vrot.lane.b32.xlu1 %v3146_v37, %s3610_s6  ;;  %v1006_v37 = vld [vmem:[#allocation2 + $0x28] sm:$0xff] }
 0xaf9   :  { %v4008_v43 = vpop.permute.xlu0 %874 }
 0xafa   :  { %v877_v44 = vmul.f32 %v4008_v43, %v752_v3 }
 0xb68   :  { %v851_v40 = vpop.permute.xlu1 %850 }
 0xb69   :  { %v853_v42 = vmul.f32 %v851_v40, %v848_v39 }
 0xb6b   :  { %v855_v17 = vadd.f32 %v854_v41, %v853_v42 }
 0xb6d   :  { %v4012_v45 = vmul.f32 %v4006_v38, %v855_v17 }
 0xb6f   :  { %v878_v46 = vadd.f32 %v877_v44, %v4012_v45 }
 0xb71   :  { %882 = vrot.lane.b32.xlu0 %v878_v46, %s3610_s6 }
 0xbe3   :  { %v883_v47 = vpop.permute.xlu0 %882 }
 0xbe4   :  { %2887 = vmatmul.mubr.msk.f32.vlgmr.msra.gmra.mrb[12].mxu1 %vm379_vm4, %v883_v47 }
 0xbe5   :  { %3034 = vmatpush3.bf16.msra.mxu1 %v3881_v12  ;;  %2900 = vmatprep.mubr.msk.f32.mxu1 %vm3605_vm1, %v3606_v16 }
 0xcb7   :  { %v952_v48 = vpop.f32.mrb[12].mxu1 }
 0xcb8   :  { %v953_v50 = vadd.f32 %v3924_v34, %v952_v48  ;;  %v2888_v51 = vpop.f32.mrb[13].mxu1 }
 0xcba   :  { %964 = vrot.lane.b32.xlu1 %v953_v50, %s3608_s12  ;;  %v956_v54 = vadd.f32 %v953_v50, %v880_v53 }
 0xcbc   :  { %v2703_v55 = vmul.f32 -1.442695, %v956_v54 }
 0xcbe   :  { %987 = vperm.xlu1 %3113, %v2704_v52   ;;  %3147 = vpow2.f32 %v2703_v55 }
 0xcc8   :  { %v3148_v57 = vpop.eup %3147 }
 0xcc9   :  { %v960_v59 = vadd.f32 1.0, %v3148_v57 }
 0xccb   :  { %3149 = vrcp.f32 %v960_v59 }
 0xcd5   :  { %v3150_v60 = vpop.eup %3149 }
 0xcd6   :  { %v974_v8 = vsub.f32 1.0, %v3150_v60  ;;  %v980_v18 = vmul.f32 %v3150_v60, %v878_v46 }
 0xd2c   :  { %v965_v61 = vpop.permute.xlu1 %964 }
 0xd2d   :  { %v967_v62 = vmul.f32 %v3150_v60, %v965_v61 }
 0xd2f   :  { %969 = vrot.lane.b32.xlu0 %v967_v62, %s3609_s21 }
 0xd33   :  { %1000 = vperm.xlu0 %3114, %v997_v0  }
 0xd3d   :  { %v4026_v7 = vpop.permute.xlu1 %987 }
 0xda1   :  { %v970_v1 = vpop.permute.xlu0 %969 }
 0xda2   :  { %v972_v3 = vadd.f32 %v970_v1, %v880_v53 }
 0xda4   :  { %3151 = vtanh.f32 %v972_v3 }
 0xdae   :  { %v3152_v4 = vpop.eup %3151 }
 0xdaf   :  { %976 = vrot.lane.b32.xlu1 %v3152_v4, %s3610_s6 }
 0xdb2   :  { %v4028_v21 = vpop.permute.xlu0 %1000 }
 0xdb3   :  { %v1003_v26 = vmul.f32 %v4028_v21, %v878_v46  ;;  %v1123_v46 = vsub.f32 1.0, %v2707_v36 }
 0xe21   :  { %v977_v9 = vpop.permute.xlu1 %976 }
 0xe22   :  { %v979_v19 = vmul.f32 %v977_v9, %v974_v8  ;;  %v2710_v8 = vsel %vm1234_vm10, 1.0, %v3606_v16  ;;  %v1132_v9 = vld [vmem:[#allocation2 + $0x30] sm:$0xff] }
 0xe24   :  { %v981_v24 = vadd.f32 %v980_v18, %v979_v19 }
 0xe26   :  { %v4032_v27 = vmul.f32 %v4026_v7, %v981_v24 }
 0xe28   :  { %v1004_v28 = vadd.f32 %v1003_v26, %v4032_v27 }
 0xe2a   :  { %1008 = vrot.lane.b32.xlu0 %v1004_v28, %s3610_s6 }
 0xe9c   :  { %v1009_v29 = vpop.permute.xlu0 %1008 }
 0xe9d   :  { %2894 = vmatmul.mubr.msk.f32.vlgmr.msra.gmra.mrb[4].mxu0 %vm379_vm4, %v1009_v29 }
 0xe9e   :  { %3037 = vmatpush3.bf16.msra.mxu0 %v3881_v12  ;;  %2907 = vmatprep.mubr.msk.f32.mxu0 %vm3605_vm1, %v3606_v16 }
 0xe9f   :  { %3046 = vmatprep.subr.bf16.mxu0 %v3604_v13 }
 0xf70   :  { %v1078_v31 = vpop.f32.mrb[4].mxu0 }
 0xf71   :  { %v1079_v32 = vadd.f32 %v3924_v34, %v1078_v31  ;;  %v2895_v35 = vpop.f32.mrb[5].mxu0  ;;  %v1249_v31 = vsub.f32 1.0, %v2710_v8 }
 0xf72   :  { %v1375_v35 = vld [vmem:[#allocation15] sm:$0xff] }
 0xf73   :  { %1090 = vrot.lane.b32.xlu1 %v1079_v32, %s3608_s12  ;;  %v1082_v39 = vadd.f32 %v1079_v32, %v1006_v37 }
 0xf75   :  { %v2706_v40 = vmul.f32 -1.442695, %v1082_v39 }
 0xf77   :  { %1113 = vperm.xlu1 %3113, %v2707_v36   ;;  %3153 = vpow2.f32 %v2706_v40  ;;  %v1376_v36 = vld [vmem:[#allocation15 + $0x8] sm:$0xff]  ;;  %v1378_v40 = vld [vmem:[#allocation15 + $0x18] sm:$0xff] }
 0xf78   :  { %v3038_v39 = vpack.c.bf16 %v1376_v36, %v1375_v35  ;;  %v2713_v36 = vsel %vm1360_vm11, 1.0, %v3606_v16 }
 0xf7a   :  { %3039 = vmatprep.subr.bf16.mxu1 %v3038_v39 }
 0xf81   :  { %v3154_v12 = vpop.eup %3153 }
 0xf82   :  { %v1086_v41 = vadd.f32 1.0, %v3154_v12 }
 0xf84   :  { %3155 = vrcp.f32 %v1086_v41 }
 0xf8e   :  { %v3156_v42 = vpop.eup %3155 }
 0xf8f   :  { %v1100_v52 = vsub.f32 1.0, %v3156_v42  ;;  %v1106_v54 = vmul.f32 %v3156_v42, %v1004_v28 }
 0xfe5   :  { %v1091_v17 = vpop.permute.xlu1 %1090 }
 0xfe6   :  { %v1093_v44 = vmul.f32 %v3156_v42, %v1091_v17 }
 0xfe8   :  { %1095 = vrot.lane.b32.xlu0 %v1093_v44, %s3609_s21 }
 0xfec   :  { %1126 = vperm.xlu0 %3114, %v1123_v46  }
 0xff6   :  { %v4047_v51 = vpop.permute.xlu1 %1113 }
0x105a   :  { %v1096_v47 = vpop.permute.xlu0 %1095 }
0x105b   :  { %v1098_v48 = vadd.f32 %v1096_v47, %v1006_v37  ;;  %v1377_v37 = vld [vmem:[#allocation15 + $0x10] sm:$0xff] }
0x105c   :  { %v3042_v12 = vpack.c.bf16 %v1378_v40, %v1377_v37 }
0x105d   :  { %3157 = vtanh.f32 %v1098_v48 }
0x1067   :  { %v3158_v50 = vpop.eup %3157 }
0x1068   :  { %1102 = vrot.lane.b32.xlu1 %v3158_v50, %s3610_s6 }
0x106b   :  { %v4049_v57 = vpop.permute.xlu0 %1126 }
0x106c   :  { %v1129_v60 = vmul.f32 %v4049_v57, %v1004_v28 }
0x10da   :  { %v1103_v53 = vpop.permute.xlu1 %1102 }
0x10db   :  { %v1105_v55 = vmul.f32 %v1103_v53, %v1100_v52  ;;  %v2714_v52 = vld [vmem:[#allocation18] ss:$0 sm:$0xff] }
0x10dd   :  { %v1107_v59 = vadd.f32 %v1106_v54, %v1105_v55 }
0x10df   :  { %v4053_v61 = vmul.f32 %v4047_v51, %v1107_v59 }
0x10e1   :  { %v1130_v62 = vadd.f32 %v1129_v60, %v4053_v61 }
0x10e3   :  { %1134 = vrot.lane.b32.xlu0 %v1130_v62, %s3610_s6 }
0x1155   :  { %v1135_v0 = vpop.permute.xlu0 %1134 }
0x1156   :  { %2901 = vmatmul.mubr.msk.f32.vlgmr.msra.gmra.mrb[14].mxu1 %vm379_vm4, %v1135_v0 }
0x1157   :  { %2918 = vmatprep.mubr.msk.f32.mxu1 %vm230_vm0, %v3869_v5  ;;  %3041 = vmatpush3.bf16.msra.mxu1 %v3038_v39 }
0x1158   :  { %3043 = vmatprep.subr.bf16.mxu1 %v3042_v12 }
0x115b   :  { %3045 = vmatpush3.bf16.msra.mxu1 %v3042_v12 }
0x115c   :  { %3061 = vmatprep.subr.bf16.mxu1 %v3604_v13 }
0x115e   :  { %2919 = vmatmul.mubr.msk.f32.vlgmr.msra.gmra.mrb[16].mxu1 %vm230_vm0, %v3877_v10  ;;  %v1499_v10 = vld [vmem:[#allocation16] sm:$0xff] }
0x115f   :  { %2921 = vmatprep.mubr.msk.f32.mxu1 %vm230_vm0, %v3949_v22  ;;  %v1500_v22 = vld [vmem:[#allocation16 + $0x8] sm:$0xff] }
0x1160   :  { %v4083_v42 = vpack.c.bf16 %v1500_v22, %v1499_v10 }
0x1162   :  { %2922 = vmatmul.mubr.msk.f32.gmra.mrb[18].mxu1 %vm230_vm0, %v3951_v23 }
0x1163   :  { %2924 = vmatprep.mubr.msk.f32.mxu1 %vm230_vm0, %v3871_v6  ;;  %3063 = vmatpush3.bf16.msra.mxu1 %v4083_v42 }
0x1164   :  { %3067 = vmatprep.subr.bf16.mxu1 %v3604_v13 }
0x1166   :  { %2925 = vmatmul.mubr.msk.f32.gmra.mrb[20].mxu1 %vm230_vm0, %v3879_v11 }
0x1167   :  { %2927 = vmatprep.mubr.msk.f32.mxu1 %vm230_vm0, %v3884_v14 }
0x116a   :  { %2928 = vmatmul.mubr.msk.f32.gmra.mrb[22].mxu1 %vm230_vm0, %v3894_v15 }
0x116b   :  { %2969 = vmatprep.mubr.msk.f32.mxu1 %vm3605_vm1, %v3606_v16 }
0x1229   :  { %v1204_v1 = vpop.f32.mrb[14].mxu1 }
0x122a   :  { %v1205_v3 = vadd.f32 %v3924_v34, %v1204_v1  ;;  %v2902_v4 = vpop.f32.mrb[15].mxu1 }
0x122c   :  { %1216 = vrot.lane.b32.xlu1 %v1205_v3, %s3608_s12  ;;  %v1208_v18 = vadd.f32 %v1205_v3, %v1132_v9 }
0x122e   :  { %v2709_v19 = vmul.f32 -1.442695, %v1208_v18 }
0x1230   :  { %1239 = vperm.xlu1 %3113, %v2710_v8   ;;  %3159 = vpow2.f32 %v2709_v19  ;;  %v4106_v19 = vld [vmem:[#allocation2 + $0x38] sm:$0xff] }
0x1231   :  { %v2920_v50 = vpop.f32.mrb[16].mxu1 }
0x1232   :  { %v1458_v53 = vadd.f32 %v2920_v50, %v2714_v52  ;;  %v1452_v54 = vpop.f32.mrb[17].mxu1 }
0x1233   :  { %v1453_v55 = vadd.f32 %v2714_v52, %v1452_v54 }
0x1234   :  { %1492 = vst.msk [vmem:[#allocation2 + $0x8] sm:$0xff] %vm360_vm2, %v1458_v53 }
0x1235   :  { %1491 = vst.msk [vmem:[#allocation2] sm:$0xff] %vm360_vm2, %v1453_v55  ;;  %v2923_v59 = vpop.f32.mrb[18].mxu1 }
0x1236   :  { %v1468_v60 = vadd.f32 %v2923_v59, %v2714_v52 }
0x1238   :  { %1494 = vst.msk [vmem:[#allocation2 + $0x18] sm:$0xff] %vm360_vm2, %v1468_v60 }
0x123a   :  { %v3160_v24 = vpop.eup %3159 }
0x123b   :  { %v1212_v26 = vadd.f32 1.0, %v3160_v24 }
0x123d   :  { %3161 = vrcp.f32 %v1212_v26 }
0x1247   :  { %v3162_v28 = vpop.eup %3161 }
0x1248   :  { %v1226_v6 = vsub.f32 1.0, %v3162_v28  ;;  %v1232_v17 = vmul.f32 %v3162_v28, %v1130_v62 }
0x129e   :  { %v1217_v5 = vpop.permute.xlu1 %1216 }
0x129f   :  { %v1219_v29 = vmul.f32 %v3162_v28, %v1217_v5 }
0x12a1   :  { %1221 = vrot.lane.b32.xlu0 %v1219_v29, %s3609_s21 }
0x12a5   :  { %1252 = vperm.xlu0 %3114, %v1249_v31   ;;  %v4122_v31 = vld [vmem:[#allocation19] ss:$0 sm:$0xff] }
0x12af   :  { %v4085_v23 = vpop.permute.xlu1 %1239 }
0x1313   :  { %v1222_v34 = vpop.permute.xlu0 %1221 }
0x1314   :  { %v1224_v32 = vadd.f32 %v1222_v34, %v1132_v9 }
0x1316   :  { %3163 = vtanh.f32 %v1224_v32 }
0x1320   :  { %v3164_v41 = vpop.eup %3163 }
0x1321   :  { %1228 = vrot.lane.b32.xlu1 %v3164_v41, %s3610_s6 }
0x1324   :  { %v4089_v44 = vpop.permute.xlu0 %1252 }
0x1325   :  { %v1255_v46 = vmul.f32 %v4089_v44, %v1130_v62  ;;  %v1462_v62 = vpop.f32.mrb[19].mxu1 }
0x1326   :  { %v1463_v0 = vadd.f32 %v2714_v52, %v1462_v62  ;;  %v2926_v1 = vpop.f32.mrb[20].mxu1 }
0x1327   :  { %v1478_v3 = vadd.f32 %v2926_v1, %v2714_v52  ;;  %v1472_v4 = vpop.f32.mrb[21].mxu1 }
0x1328   :  { %1493 = vst.msk [vmem:[#allocation2 + $0x10] sm:$0xff] %vm360_vm2, %v1463_v0  ;;  %v1473_v8 = vadd.f32 %v2714_v52, %v1472_v4  ;;  %v2929_v9 = vpop.f32.mrb[22].mxu1 }
0x1329   :  { %1496 = vst.msk [vmem:[#allocation2 + $0x28] sm:$0xff] %vm360_vm2, %v1478_v3  ;;  %v1488_v18 = vadd.f32 %v2929_v9, %v2714_v52  ;;  %v1482_v26 = vpop.f32.mrb[23].mxu1 }
0x132a   :  { %1495 = vst.msk [vmem:[#allocation2 + $0x20] sm:$0xff] %vm360_vm2, %v1473_v8  ;;  %v1483_v28 = vadd.f32 %v2714_v52, %v1482_v26 }
0x132b   :  { %1498 = vst.msk [vmem:[#allocation2 + $0x38] sm:$0xff] %vm360_vm2, %v1488_v18 }
0x132c   :  { %1497 = vst.msk [vmem:[#allocation2 + $0x30] sm:$0xff] %vm360_vm2, %v1483_v28  ;;  %vm2547_vm2 = vcmask 39968  }
0x1332   :  { %v1508_v37 = vld [vmem:[#allocation2 + $0x38] sm:$0xff] }
0x1333   :  { %v1616_v8 = vld [vmem:[#allocation2 + $0x30] sm:$0xff] }
0x1393   :  { %v1229_v11 = vpop.permute.xlu1 %1228 }
0x1394   :  { %v1231_v14 = vmul.f32 %v1229_v11, %v1226_v6  ;;  %v1608_v11 = vsub.f32 1.0, %v2713_v36 }
0x1396   :  { %v1233_v15 = vadd.f32 %v1232_v17, %v1231_v14 }
0x1398   :  { %v4093_v47 = vmul.f32 %v4085_v23, %v1233_v15 }
0x139a   :  { %v4096_v48 = vadd.f32 %v1255_v46, %v4093_v47 }
0x139c   :  { %1260 = vrot.lane.b32.xlu0 %v4096_v48, %s3610_s6 }
0x140e   :  { %v1261_v24 = vpop.permute.xlu0 %1260 }
0x140f   :  { %2908 = vmatmul.mubr.msk.f32.vlgmr.msra.gmra.mrb[6].mxu0 %vm379_vm4, %v1261_v24 }
0x1410   :  { %3048 = vmatpush3.bf16.msra.mxu0 %v4083_v42  ;;  %2934 = vmatprep.mubr.msk.f32.mxu0 %vm3605_vm1, %v3606_v16 }
0x1411   :  { %3049 = vmatprep.subr.bf16.mxu0 %v3604_v13 }
0x1413   :  { %2935 = vmatmul.mubr.f32.vlgmr.msra.gmra.mrb[8].mxu0 %v3606_v16 }
0x1414   :  { %3051 = vmatpush3.bf16.msra.mxu0 %v4083_v42  ;;  %2941 = vmatprep.mubr.msk.f32.mxu0 %vm3605_vm1, %v3606_v16 }
0x1415   :  { %3052 = vmatprep.subr.bf16.mxu0 %v3604_v13 }
0x14e2   :  { %v4120_v5 = vpop.f32.mrb[6].mxu0 }
0x14e3   :  { %v2909_v29 = vpop.f32.mrb[7].mxu0 }
0x14e6   :  { %v1575_v34 = vpop.f32.mrb[8].mxu0 }
0x14e7   :  { %v1576_v32 = vadd.f32 %v4122_v31, %v1575_v34  ;;  %v2936_v35 = vpop.f32.mrb[9].mxu0 }
0x14e9   :  { %1587 = vrot.lane.b32.xlu1 %v1576_v32, %s3608_s12  ;;  %v1579_v39 = vadd.f32 %v1576_v32, %v1508_v37 }
0x14eb   :  { %v2724_v40 = vmul.f32 -1.442695, %v1579_v39 }
0x14ed   :  { %1365 = vperm.xlu1 %3113, %v2713_v36   ;;  %3165 = vpow2.f32 %v2724_v40 }
0x14f7   :  { %v3166_v12 = vpop.eup %3165 }
0x14f8   :  { %v1583_v41 = vadd.f32 1.0, %v3166_v12 }
0x14fa   :  { %3167 = vrcp.f32 %v1583_v41 }
0x1504   :  { %v3168_v10 = vpop.eup %3167 }
0x1505   :  { %v1597_v46 = vsub.f32 1.0, %v3168_v10  ;;  %v1603_v52 = vmul.f32 0.0, %v3168_v10 }
0x155b   :  { %v1588_v22 = vpop.permute.xlu1 %1587 }
0x155c   :  { %v1590_v6 = vmul.f32 %v3168_v10, %v1588_v22 }
0x155e   :  { %1592 = vrot.lane.b32.xlu0 %v1590_v6, %s3609_s21 }
0x1562   :  { %1611 = vperm.xlu0 %3114, %v1608_v11  }
0x156c   :  { %v4130_v15 = vpop.permute.xlu1 %1365 }
0x15d0   :  { %v1593_v20 = vpop.permute.xlu0 %1592 }
0x15d1   :  { %v1595_v17 = vadd.f32 %v1593_v20, %v1508_v37 }
0x15d3   :  { %3169 = vtanh.f32 %v1595_v17 }
0x15dd   :  { %v3170_v14 = vpop.eup %3169 }
0x15de   :  { %1599 = vrot.lane.b32.xlu1 %v3170_v14, %s3610_s6 }
0x15e1   :  { %v1612_v54 = vpop.permute.xlu0 %1611 }
0x15e2   :  { %v1614_v59 = vmul.f32 0.0, %v1612_v54 }
0x1650   :  { %v1600_v50 = vpop.permute.xlu1 %1599 }
0x1651   :  { %v1602_v53 = vmul.f32 %v1600_v50, %v1597_v46 }
0x1653   :  { %v1604_v55 = vadd.f32 %v1603_v52, %v1602_v53 }
0x1655   :  { %v4133_v60 = vmul.f32 %v1604_v55, %v4130_v15 }
0x1657   :  { %v1615_v62 = vadd.f32 %v1614_v59, %v4133_v60 }
0x1659   :  { %1618 = vrot.lane.b32.xlu0 %v1615_v62, %s3610_s6  ;;  %v1720_v22 = vmul.f32 %v1615_v62, %v4089_v44  ;;  %v1722_v44 = vld [vmem:[#allocation2 + $0x28] sm:$0xff] }
0x16cb   :  { %v1619_v0 = vpop.permute.xlu0 %1618 }
0x16cc   :  { %2942 = vmatmul.mubr.msk.f32.vlgmr.msra.gmra.mrb[10].mxu0 %vm379_vm4, %v1619_v0 }
0x16cd   :  { %3054 = vmatpush3.bf16.msra.mxu0 %v4083_v42  ;;  %2948 = vmatprep.mubr.msk.f32.mxu0 %vm3605_vm1, %v3606_v16 }
0x16ce   :  { %3055 = vmatprep.subr.bf16.mxu0 %v3604_v13 }
0x179f   :  { %v1688_v1 = vpop.f32.mrb[10].mxu0 }
0x17a0   :  { %v1689_v3 = vadd.f32 %v4122_v31, %v1688_v1  ;;  %v2943_v4 = vpop.f32.mrb[11].mxu0 }
0x17a2   :  { %1700 = vrot.lane.b32.xlu1 %v1689_v3, %s3608_s12  ;;  %v1692_v9 = vadd.f32 %v1689_v3, %v1616_v8 }
0x17a4   :  { %v2726_v18 = vmul.f32 -1.442695, %v1692_v9 }
0x17a6   :  { %3171 = vpow2.f32 %v2726_v18 }
0x17b0   :  { %v3172_v24 = vpop.eup %3171 }
0x17b1   :  { %v1696_v26 = vadd.f32 1.0, %v3172_v24 }
0x17b3   :  { %3173 = vrcp.f32 %v1696_v26 }
0x17bd   :  { %v3174_v28 = vpop.eup %3173 }
0x17be   :  { %v1710_v37 = vsub.f32 1.0, %v3174_v28  ;;  %v1716_v40 = vmul.f32 %v3174_v28, %v1615_v62 }
0x1814   :  { %v1701_v29 = vpop.permute.xlu1 %1700 }
0x1815   :  { %v1703_v34 = vmul.f32 %v3174_v28, %v1701_v29 }
0x1817   :  { %1705 = vrot.lane.b32.xlu0 %v1703_v34, %s3609_s21 }
0x1889   :  { %v1706_v32 = vpop.permute.xlu0 %1705 }
0x188a   :  { %v1708_v35 = vadd.f32 %v1706_v32, %v1616_v8 }
0x188c   :  { %3175 = vtanh.f32 %v1708_v35 }
0x1896   :  { %v3176_v36 = vpop.eup %3175 }
0x1897   :  { %1712 = vrot.lane.b32.xlu1 %v3176_v36, %s3610_s6 }
0x1909   :  { %v1713_v39 = vpop.permute.xlu1 %1712 }
0x190a   :  { %v1715_v12 = vmul.f32 %v1713_v39, %v1710_v37 }
0x190c   :  { %v1717_v41 = vadd.f32 %v1716_v40, %v1715_v12 }
0x190e   :  { %v4147_v10 = vmul.f32 %v1717_v41, %v4085_v23 }
0x1910   :  { %v1721_v6 = vadd.f32 %v1720_v22, %v4147_v10 }
0x1912   :  { %1724 = vrot.lane.b32.xlu0 %v1721_v6, %s3610_s6  ;;  %v1826_v24 = vmul.f32 %v1721_v6, %v4049_v57  ;;  %v1828_v57 = vld [vmem:[#allocation2 + $0x20] sm:$0xff] }
0x1984   :  { %v1725_v11 = vpop.permute.xlu0 %1724 }
0x1985   :  { %2949 = vmatmul.mubr.msk.f32.vlgmr.msra.gmra.mrb[12].mxu0 %vm379_vm4, %v1725_v11 }
0x1986   :  { %3057 = vmatpush3.bf16.msra.mxu0 %v4083_v42  ;;  %2955 = vmatprep.mubr.msk.f32.mxu0 %vm3605_vm1, %v3606_v16 }
0x1987   :  { %3058 = vmatprep.subr.bf16.mxu0 %v3604_v13 }
0x1a58   :  { %v1794_v20 = vpop.f32.mrb[12].mxu0 }
0x1a59   :  { %v1795_v23 = vadd.f32 %v4122_v31, %v1794_v20  ;;  %v2950_v17 = vpop.f32.mrb[13].mxu0 }
0x1a5b   :  { %1806 = vrot.lane.b32.xlu1 %v1795_v23, %s3608_s12  ;;  %v1798_v14 = vadd.f32 %v1795_v23, %v1722_v44 }
0x1a5d   :  { %v2728_v46 = vmul.f32 -1.442695, %v1798_v14 }
0x1a5f   :  { %3177 = vpow2.f32 %v2728_v46 }
0x1a69   :  { %v3178_v50 = vpop.eup %3177 }
0x1a6a   :  { %v1802_v52 = vadd.f32 1.0, %v3178_v50 }
0x1a6c   :  { %3179 = vrcp.f32 %v1802_v52 }
0x1a76   :  { %v3180_v53 = vpop.eup %3179 }
0x1a77   :  { %v1816_v1 = vsub.f32 1.0, %v3180_v53  ;;  %v1822_v4 = vmul.f32 %v3180_v53, %v1721_v6 }
0x1acd   :  { %v1807_v54 = vpop.permute.xlu1 %1806 }
0x1ace   :  { %v1809_v55 = vmul.f32 %v3180_v53, %v1807_v54 }
0x1ad0   :  { %1811 = vrot.lane.b32.xlu0 %v1809_v55, %s3609_s21 }
0x1b42   :  { %v1812_v59 = vpop.permute.xlu0 %1811 }
0x1b43   :  { %v1814_v62 = vadd.f32 %v1812_v59, %v1722_v44 }
0x1b45   :  { %3181 = vtanh.f32 %v1814_v62 }
0x1b4f   :  { %v3182_v0 = vpop.eup %3181 }
0x1b50   :  { %1818 = vrot.lane.b32.xlu1 %v3182_v0, %s3610_s6 }
0x1bc2   :  { %v1819_v3 = vpop.permute.xlu1 %1818 }
0x1bc3   :  { %v1821_v8 = vmul.f32 %v1819_v3, %v1816_v1 }
0x1bc5   :  { %v1823_v9 = vadd.f32 %v1822_v4, %v1821_v8 }
0x1bc7   :  { %v4162_v18 = vmul.f32 %v1823_v9, %v4047_v51 }
0x1bc9   :  { %v1827_v26 = vadd.f32 %v1826_v24, %v4162_v18 }
0x1bcb   :  { %1830 = vrot.lane.b32.xlu0 %v1827_v26, %s3610_s6  ;;  %v1932_v14 = vmul.f32 %v1827_v26, %v4028_v21 }
0x1c3d   :  { %v1831_v28 = vpop.permute.xlu0 %1830 }
0x1c3e   :  { %2956 = vmatmul.mubr.msk.f32.vlgmr.msra.gmra.mrb[14].mxu0 %vm379_vm4, %v1831_v28 }
0x1c3f   :  { %3060 = vmatpush3.bf16.msra.mxu0 %v4083_v42  ;;  %2962 = vmatprep.mubr.msk.f32.mxu0 %vm3605_vm1, %v3606_v16 }
0x1c40   :  { %3064 = vmatprep.subr.bf16.mxu0 %v3604_v13 }
0x1d11   :  { %v1900_v29 = vpop.f32.mrb[14].mxu0 }
0x1d12   :  { %v1901_v51 = vadd.f32 %v4122_v31, %v1900_v29  ;;  %v2957_v34 = vpop.f32.mrb[15].mxu0 }
0x1d14   :  { %1912 = vrot.lane.b32.xlu1 %v1901_v51, %s3608_s12  ;;  %v1904_v32 = vadd.f32 %v1901_v51, %v1828_v57 }
0x1d16   :  { %v2730_v35 = vmul.f32 -1.442695, %v1904_v32 }
0x1d18   :  { %3183 = vpow2.f32 %v2730_v35 }
0x1d22   :  { %v3184_v36 = vpop.eup %3183 }
0x1d23   :  { %v1908_v37 = vadd.f32 1.0, %v3184_v36 }
0x1d25   :  { %3185 = vrcp.f32 %v1908_v37 }
0x1d2f   :  { %v3186_v39 = vpop.eup %3185 }
0x1d30   :  { %v1922_v6 = vsub.f32 1.0, %v3186_v39  ;;  %v1928_v20 = vmul.f32 %v3186_v39, %v1827_v26 }
0x1d86   :  { %v1913_v40 = vpop.permute.xlu1 %1912 }
0x1d87   :  { %v1915_v12 = vmul.f32 %v3186_v39, %v1913_v40 }
0x1d89   :  { %1917 = vrot.lane.b32.xlu0 %v1915_v12, %s3609_s21 }
0x1dfb   :  { %v1918_v41 = vpop.permute.xlu0 %1917 }
0x1dfc   :  { %v1920_v13 = vadd.f32 %v1918_v41, %v1828_v57 }
0x1dfe   :  { %3187 = vtanh.f32 %v1920_v13 }
0x1e08   :  { %v3188_v22 = vpop.eup %3187 }
0x1e09   :  { %1924 = vrot.lane.b32.xlu1 %v3188_v22, %s3610_s6 }
0x1e7b   :  { %v1925_v11 = vpop.permute.xlu1 %1924 }
0x1e7c   :  { %v1927_v23 = vmul.f32 %v1925_v11, %v1922_v6 }
0x1e7e   :  { %v1929_v17 = vadd.f32 %v1928_v20, %v1927_v23 }
0x1e80   :  { %v4177_v44 = vmul.f32 %v1929_v17, %v4026_v7  ;;  %v1934_v7 = vld [vmem:[#allocation2 + $0x18] sm:$0xff] }
0x1e82   :  { %v1933_v46 = vadd.f32 %v1932_v14, %v4177_v44 }
0x1e84   :  { %1936 = vrot.lane.b32.xlu0 %v1933_v46, %s3610_s6  ;;  %v2038_v57 = vmul.f32 %v1933_v46, %v4008_v43 }
0x1ef6   :  { %v1937_v50 = vpop.permute.xlu0 %1936 }
0x1ef7   :  { %2963 = vmatmul.mubr.msk.f32.vlgmr.msra.gmra.mrb[16].mxu0 %vm379_vm4, %v1937_v50 }
0x1ef8   :  { %3066 = vmatpush3.bf16.msra.mxu0 %v4083_v42  ;;  %2976 = vmatprep.mubr.msk.f32.mxu0 %vm3605_vm1, %v3606_v16 }
0x1fca   :  { %v2006_v52 = vpop.f32.mrb[16].mxu0 }
0x1fcb   :  { %v2007_v53 = vadd.f32 %v4122_v31, %v2006_v52  ;;  %v2964_v54 = vpop.f32.mrb[17].mxu0 }
0x1fcd   :  { %2018 = vrot.lane.b32.xlu1 %v2007_v53, %s3608_s12  ;;  %v2010_v21 = vadd.f32 %v2007_v53, %v1934_v7 }
0x1fcf   :  { %v2732_v55 = vmul.f32 -1.442695, %v2010_v21 }
0x1fd1   :  { %3189 = vpow2.f32 %v2732_v55 }
0x1fdb   :  { %v3190_v59 = vpop.eup %3189 }
0x1fdc   :  { %v2014_v62 = vadd.f32 1.0, %v3190_v59 }
0x1fde   :  { %3191 = vrcp.f32 %v2014_v62  ;;  %v2146_v62 = vld [vmem:[#allocation2 + $0x8] sm:$0xff] }
0x1fe8   :  { %v3192_v0 = vpop.eup %3191 }
0x1fe9   :  { %v2028_v24 = vsub.f32 1.0, %v3192_v0  ;;  %v2034_v28 = vmul.f32 %v3192_v0, %v1933_v46 }
0x203f   :  { %v2019_v1 = vpop.permute.xlu1 %2018 }
0x2040   :  { %v2021_v3 = vmul.f32 %v3192_v0, %v2019_v1 }
0x2042   :  { %2023 = vrot.lane.b32.xlu0 %v2021_v3, %s3609_s21 }
0x20b4   :  { %v2024_v4 = vpop.permute.xlu0 %2023 }
0x20b5   :  { %v2026_v8 = vadd.f32 %v2024_v4, %v1934_v7 }
0x20b7   :  { %3193 = vtanh.f32 %v2026_v8 }
0x20c1   :  { %v3194_v9 = vpop.eup %3193 }
0x20c2   :  { %2030 = vrot.lane.b32.xlu1 %v3194_v9, %s3610_s6 }
0x2134   :  { %v2031_v26 = vpop.permute.xlu1 %2030 }
0x2135   :  { %v2033_v29 = vmul.f32 %v2031_v26, %v2028_v24 }
0x2137   :  { %v2035_v51 = vadd.f32 %v2034_v28, %v2033_v29  ;;  %v3239_v28 = vld [vmem:[#allocation13] ss:$0 sm:$0xff] }
0x2138   :  { %v1331_v29 = vadd.f32 %v3239_v28, %v4120_v5 }
0x2139   :  { %v4191_v34 = vmul.f32 %v2035_v51, %v4006_v38  ;;  %v2040_v38 = vld [vmem:[#allocation2 + $0x10] sm:$0xff] }
0x213a   :  { %v1334_v51 = vadd.f32 %v1331_v29, %v4106_v19 }
0x213b   :  { %v2039_v32 = vadd.f32 %v2038_v57, %v4191_v34 }
0x213c   :  { %v2712_v57 = vmul.f32 -1.442695, %v1334_v51 }
0x213d   :  { %2042 = vrot.lane.b32.xlu0 %v2039_v32, %s3610_s6  ;;  %v2144_v53 = vmul.f32 %v2039_v32, %v3987_v63 }
0x21af   :  { %v2043_v35 = vpop.permute.xlu0 %2042 }
0x21b0   :  { %2970 = vmatmul.mubr.msk.f32.vlgmr.msra.gmra.mrb[24].mxu1 %vm379_vm4, %v2043_v35 }
0x21b1   :  { %3069 = vmatpush3.bf16.msra.mxu1 %v4083_v42  ;;  %2983 = vmatprep.mubr.msk.f32.mxu1 %vm3605_vm1, %v3606_v16  ;;  %vm2541_vm1 = vcmask 31768  }
0x2283   :  { %v2112_v36 = vpop.f32.mrb[24].mxu1 }
0x2284   :  { %v2113_v37 = vadd.f32 %v4122_v31, %v2112_v36  ;;  %v2971_v39 = vpop.f32.mrb[25].mxu1 }
0x2286   :  { %2124 = vrot.lane.b32.xlu1 %v2113_v37, %s3608_s12  ;;  %v2116_v43 = vadd.f32 %v2113_v37, %v2040_v38 }
0x2288   :  { %v2734_v40 = vmul.f32 -1.442695, %v2116_v43 }
0x228a   :  { %3195 = vpow2.f32 %v2734_v40 }
0x2294   :  { %v3196_v12 = vpop.eup %3195 }
0x2295   :  { %v2120_v41 = vadd.f32 1.0, %v3196_v12 }
0x2297   :  { %3197 = vrcp.f32 %v2120_v41 }
0x22a1   :  { %v3198_v13 = vpop.eup %3197 }
0x22a2   :  { %v2134_v23 = vsub.f32 1.0, %v3198_v13  ;;  %v2140_v14 = vmul.f32 %v3198_v13, %v2039_v32 }
0x22f8   :  { %v2125_v22 = vpop.permute.xlu1 %2124 }
0x22f9   :  { %v2127_v6 = vmul.f32 %v3198_v13, %v2125_v22 }
0x22fb   :  { %2129 = vrot.lane.b32.xlu0 %v2127_v6, %s3609_s21 }
0x236d   :  { %v2130_v42 = vpop.permute.xlu0 %2129 }
0x236e   :  { %v2132_v11 = vadd.f32 %v2130_v42, %v2040_v38 }
0x2370   :  { %3199 = vtanh.f32 %v2132_v11 }
0x237a   :  { %v3200_v20 = vpop.eup %3199 }
0x237b   :  { %2136 = vrot.lane.b32.xlu1 %v3200_v20, %s3610_s6 }
0x23ed   :  { %v2137_v17 = vpop.permute.xlu1 %2136 }
0x23ee   :  { %v2139_v46 = vmul.f32 %v2137_v17, %v2134_v23  ;;  %v2252_v17 = vld [vmem:[#allocation2] sm:$0xff] }
0x23f0   :  { %v2141_v50 = vadd.f32 %v2140_v14, %v2139_v46 }
0x23f2   :  { %v4205_v52 = vmul.f32 %v2141_v50, %v3985_v58 }
0x23f4   :  { %v2145_v54 = vadd.f32 %v2144_v53, %v4205_v52 }
0x23f6   :  { %2148 = vrot.lane.b32.xlu0 %v2145_v54, %s3610_s6  ;;  %v2250_v13 = vmul.f32 %v2145_v54, %v3960_v25 }
0x2468   :  { %v2149_v7 = vpop.permute.xlu0 %2148 }
0x2469   :  { %2977 = vmatmul.mubr.msk.f32.vlgmr.msra.gmra.mrb[18].mxu0 %vm379_vm4, %v2149_v7 }
0x253c   :  { %v2218_v21 = vpop.f32.mrb[18].mxu0 }
0x253d   :  { %v2219_v55 = vadd.f32 %v4122_v31, %v2218_v21  ;;  %v2978_v59 = vpop.f32.mrb[19].mxu0  ;;  %v2364_v21 = vld [vmem:[#allocation21] sm:$0xff] }
0x253e   :  { %v2366_v59 = vld [vmem:[#allocation21 + $0x10] sm:$0xff] }
0x253f   :  { %2230 = vrot.lane.b32.xlu1 %v2219_v55, %s3608_s12  ;;  %v2222_v0 = vadd.f32 %v2219_v55, %v2146_v62 }
0x2541   :  { %v2736_v1 = vmul.f32 -1.442695, %v2222_v0 }
0x2543   :  { %3201 = vpow2.f32 %v2736_v1 }
0x254d   :  { %v3202_v58 = vpop.eup %3201 }
0x254e   :  { %v2226_v3 = vadd.f32 1.0, %v3202_v58 }
0x2550   :  { %3203 = vrcp.f32 %v2226_v3 }
0x255a   :  { %v3204_v63 = vpop.eup %3203 }
0x255b   :  { %v2240_v36 = vsub.f32 1.0, %v3204_v63  ;;  %v2246_v39 = vmul.f32 %v3204_v63, %v2145_v54 }
0x25b1   :  { %v2231_v4 = vpop.permute.xlu1 %2230 }
0x25b2   :  { %v2233_v8 = vmul.f32 %v3204_v63, %v2231_v4 }
0x25b4   :  { %2235 = vrot.lane.b32.xlu0 %v2233_v8, %s3609_s21 }
0x2626   :  { %v2236_v9 = vpop.permute.xlu0 %2235 }
0x2627   :  { %v2238_v24 = vadd.f32 %v2236_v9, %v2146_v62  ;;  %v2367_v62 = vld [vmem:[#allocation21 + $0x18] sm:$0xff] }
0x2628   :  { %v3074_v0 = vpack.c.bf16 %v2367_v62, %v2366_v59 }
0x2629   :  { %3205 = vtanh.f32 %v2238_v24 }
0x262a   :  { %3207 = vpow2.f32 %v2712_v57 }
0x2633   :  { %v3206_v26 = vpop.eup %3205 }
0x2634   :  { %2242 = vrot.lane.b32.xlu1 %v3206_v26, %s3610_s6  ;;  %v3208_v32 = vpop.eup %3207 }
0x2635   :  { %v1338_v35 = vadd.f32 1.0, %v3208_v32 }
0x2637   :  { %3209 = vrcp.f32 %v1338_v35 }
0x2638   :  { %1342 = vrot.lane.b32.xlu1 %v1331_v29, %s3608_s12 }
0x2641   :  { %v4218_v40 = vpop.eup %3209 }
0x2642   :  { %v1352_v58 = vsub.f32 1.0, %v4218_v40  ;;  %v1358_v63 = vmul.f32 %v4218_v40, %v4096_v48 }
0x26a6   :  { %v2243_v37 = vpop.permute.xlu1 %2242 }
0x26a7   :  { %v2245_v38 = vmul.f32 %v2243_v37, %v2240_v36  ;;  %v2739_v36 = vld [vmem:[#allocation22] ss:$0 sm:$0xff] }
0x26a9   :  { %v2247_v43 = vadd.f32 %v2246_v39, %v2245_v38 }
0x26aa   :  { %v1343_v12 = vpop.permute.xlu1 %1342 }
0x26ab   :  { %v4221_v41 = vmul.f32 %v2247_v43, %v3962_v30  ;;  %v1345_v5 = vmul.f32 %v4218_v40, %v1343_v12 }
0x26ad   :  { %1347 = vrot.lane.b32.xlu1 %v1345_v5, %s3609_s21  ;;  %v4227_v22 = vadd.f32 %v2250_v13, %v4221_v41 }
0x26af   :  { %2254 = vrot.lane.b32.xlu0 %v4227_v22, %s3610_s6 }
0x271f   :  { %v1348_v6 = vpop.permute.xlu1 %1347 }
0x2720   :  { %v1350_v42 = vadd.f32 %v1348_v6, %v4106_v19 }
0x2721   :  { %v2255_v11 = vpop.permute.xlu0 %2254 }
0x2722   :  { %3211 = vtanh.f32 %v1350_v42  ;;  %2984 = vmatmul.mubr.msk.f32.vlgmr.msra.gmra.mrb[26].mxu1 %vm379_vm4, %v2255_v11  ;;  %v2748_v11 = vld [vmem:[#allocation24] ss:$0 sm:$0xff] }
0x272c   :  { %v3212_v30 = vpop.eup %3211 }
0x272d   :  { %1354 = vrot.lane.b32.xlu1 %v3212_v30, %s3610_s6 }
0x2731   :  { %489 = vrot.lane.b32.xlu1 %v3935_v56, %s3610_s6 }
0x2735   :  { %740 = vrot.lane.b32.xlu1 %v3991_v2, %s3610_s6 }
0x2739   :  { %992 = vrot.lane.b32.xlu1 %v4032_v27, %s3610_s6 }
0x273d   :  { %1244 = vrot.lane.b32.xlu1 %v4093_v47, %s3610_s6 }
0x279f   :  { %v1355_v25 = vpop.permute.xlu1 %1354 }
0x27a0   :  { %v1357_v3 = vmul.f32 %v1355_v25, %v1352_v58 }
0x27a2   :  { %v1359_v4 = vadd.f32 %v1358_v63, %v1357_v3  ;;  %v3240_v63 = vld [vmem:[#allocation7] sm:$0xff] }
0x27a3   :  { %v490_v19 = vpop.permute.xlu1 %489 }
0x27a4   :  { %492 = vst.msk [vmem:[#allocation3] sm:$0xff] %vm379_vm4, %v490_v19  ;;  %v1368_v8 = vmul.f32 %v4130_v15, %v1359_v4 }
0x27a7   :  { %v741_v20 = vpop.permute.xlu1 %740 }
0x27a8   :  { %744 = vst.msk [vmem:[#allocation3 + $0x10] sm:$0xff] %vm379_vm4, %v741_v20 }
0x27a9   :  { %2143 = vst.msk [vmem:[#allocation3 + $0x10] sm:$0xff] %vm1606_vm12, %v4205_v52 }
0x27ab   :  { %v993_v56 = vpop.permute.xlu1 %992 }
0x27ac   :  { %996 = vst.msk [vmem:[#allocation3 + $0x20] sm:$0xff] %vm379_vm4, %v993_v56 }
0x27ad   :  { %1931 = vst.msk [vmem:[#allocation3 + $0x20] sm:$0xff] %vm1606_vm12, %v4177_v44 }
0x27af   :  { %v1245_v2 = vpop.permute.xlu1 %1244 }
0x27b0   :  { %1248 = vst.msk [vmem:[#allocation3 + $0x30] sm:$0xff] %vm379_vm4, %v1245_v2  ;;  %v4287_v57 = vld [vmem:[#allocation3 + $0x10] sm:$0xff] }
0x27b1   :  { %1719 = vst.msk [vmem:[#allocation3 + $0x30] sm:$0xff] %vm1606_vm12, %v4147_v10 }
0x27b8   :  { %v4306_v35 = vld [vmem:[#allocation3 + $0x30] sm:$0xff] }
0x27f5   :  { %v2324_v27 = vpop.f32.mrb[26].mxu1 }
0x27f6   :  { %v2325_v47 = vadd.f32 %v4122_v31, %v2324_v27  ;;  %v2985_v23 = vpop.f32.mrb[27].mxu1  ;;  %v2365_v31 = vld [vmem:[#allocation21 + $0x8] sm:$0xff] }
0x27f7   :  { %v3070_v55 = vpack.c.bf16 %v2365_v31, %v2364_v21 }
0x27f8   :  { %2336 = vrot.lane.b32.xlu0 %v2325_v47, %s3608_s12  ;;  %v2328_v14 = vadd.f32 %v2325_v47, %v2252_v17 }
0x27f9   :  { %3071 = vmatprep.subr.bf16.mxu0 %v3070_v55 }
0x27fa   :  { %v2738_v46 = vmul.f32 -1.442695, %v2328_v14  ;;  %3073 = vmatpush3.bf16.msra.mxu0 %v3070_v55 }
0x27fb   :  { %3075 = vmatprep.subr.bf16.mxu0 %v3074_v0 }
0x27fc   :  { %3213 = vpow2.f32 %v2738_v46 }
0x27fe   :  { %3077 = vmatpush3.bf16.msra.mxu0 %v3074_v0 }
0x2806   :  { %v3214_v50 = vpop.eup %3213 }
0x2807   :  { %v2332_v52 = vadd.f32 1.0, %v3214_v50 }
0x2809   :  { %3215 = vrcp.f32 %v2332_v52 }
0x2813   :  { %v3216_v44 = vpop.eup %3215 }
0x2814   :  { %v2346_v9 = vsub.f32 1.0, %v3216_v44  ;;  %v2352_v26 = vmul.f32 %v3216_v44, %v4227_v22 }
0x286a   :  { %v2337_v53 = vpop.permute.xlu0 %2336 }
0x286b   :  { %v2339_v54 = vmul.f32 %v3216_v44, %v2337_v53 }
0x286d   :  { %2341 = vrot.lane.b32.xlu0 %v2339_v54, %s3609_s21 }
0x28df   :  { %v2342_v7 = vpop.permute.xlu0 %2341 }
0x28e0   :  { %v2344_v10 = vadd.f32 %v2342_v7, %v2252_v17 }
0x28e2   :  { %3217 = vtanh.f32 %v2344_v10 }
0x28ec   :  { %v3218_v1 = vpop.eup %3217 }
0x28ed   :  { %2348 = vrot.lane.b32.xlu0 %v3218_v1, %s3610_s6 }
0x28f1   :  { %614 = vrot.lane.b32.xlu0 %v3966_v33, %s3610_s6 }
0x28f5   :  { %866 = vrot.lane.b32.xlu0 %v4012_v45, %s3610_s6 }
0x28f9   :  { %1118 = vrot.lane.b32.xlu0 %v4053_v61, %s3610_s6 }
0x28fd   :  { %1370 = vrot.lane.b32.xlu0 %v1368_v8, %s3610_s6 }
0x295f   :  { %v2349_v24 = vpop.permute.xlu0 %2348 }
0x2960   :  { %v2351_v33 = vmul.f32 %v2349_v24, %v2346_v9 }
0x2962   :  { %v2353_v28 = vadd.f32 %v2352_v26, %v2351_v33 }
0x2963   :  { %v615_v29 = vpop.permute.xlu0 %614 }
0x2964   :  { %v2354_v48 = vmul.f32 %v2353_v28, %v3932_v49  ;;  %618 = vst.msk [vmem:[#allocation3 + $0x8] sm:$0xff] %vm379_vm4, %v615_v29  ;;  %v2568_v28 = vlaneseq }
0x2965   :  { %2249 = vst.msk [vmem:[#allocation3 + $0x8] sm:$0xff] %vm1606_vm12, %v4221_v41 }
0x2966   :  { %2355 = vst.msk [vmem:[#allocation3] sm:$0xff] %vm1606_vm12, %v2354_v48 }
0x2967   :  { %v867_v45 = vpop.permute.xlu0 %866 }
0x2968   :  { %870 = vst.msk [vmem:[#allocation3 + $0x18] sm:$0xff] %vm379_vm4, %v867_v45  ;;  %v2569_v45 = vand.u32 127, %v2568_v28 }
0x2969   :  { %2037 = vst.msk [vmem:[#allocation3 + $0x18] sm:$0xff] %vm1606_vm12, %v4191_v34  ;;  %v4298_v34 = vld [vmem:[#allocation3 + $0x20] sm:$0xff] }
0x296b   :  { %v1119_v61 = vpop.permute.xlu0 %1118 }
0x296c   :  { %1122 = vst.msk [vmem:[#allocation3 + $0x28] sm:$0xff] %vm379_vm4, %v1119_v61  ;;  %v4283_v15 = vld [vmem:[#allocation3 + $0x8] sm:$0xff]  ;;  %v2570_v61 = vcvt.s32.f32 %v2569_v45 }
0x296d   :  { %1825 = vst.msk [vmem:[#allocation3 + $0x28] sm:$0xff] %vm1606_vm12, %v4162_v18  ;;  %v4279_v49 = vld [vmem:[#allocation3] sm:$0xff] }
0x296e   :  { %2994 = vmatprep.mubr.msk.f32.mxu0 %vm230_vm0, %v4279_v49 }
0x296f   :  { %2995 = vmatmul.mubr.msk.f32.vlgmr.msra.gmra.mrb[20].mxu0 %vm230_vm0, %v4283_v15  ;;  %v1371_v51 = vpop.permute.xlu0 %1370 }
0x2970   :  { %1374 = vst.msk [vmem:[#allocation3 + $0x38] sm:$0xff] %vm379_vm4, %v1371_v51  ;;  %2997 = vmatprep.mubr.msk.f32.mxu0 %vm230_vm0, %v4287_v57  ;;  %v4294_v18 = vld [vmem:[#allocation3 + $0x18] sm:$0xff] }
0x2971   :  { %1607 = vst.msk [vmem:[#allocation3 + $0x38] sm:$0xff] %vm1606_vm12, %v4133_v60 }
0x2973   :  { %2998 = vmatmul.mubr.msk.f32.gmra.mrb[22].mxu0 %vm230_vm0, %v4294_v18 }
0x2974   :  { %3000 = vmatprep.mubr.msk.f32.mxu0 %vm230_vm0, %v4298_v34  ;;  %v4302_v32 = vld [vmem:[#allocation3 + $0x28] sm:$0xff] }
0x2977   :  { %3001 = vmatmul.mubr.msk.f32.gmra.mrb[24].mxu0 %vm230_vm0, %v4302_v32 }
0x2978   :  { %3003 = vmatprep.mubr.msk.f32.mxu0 %vm230_vm0, %v4306_v35  ;;  %v4310_v60 = vld [vmem:[#allocation3 + $0x38] sm:$0xff] }
0x297b   :  { %3004 = vmatmul.mubr.msk.f32.gmra.mrb[26].mxu0 %vm230_vm0, %v4310_v60 }
0x2a42   :  { %v2996_v37 = vpop.f32.mrb[20].mxu0 }
0x2a43   :  { %v2471_v39 = vadd.f32 %v2996_v37, %v2739_v36  ;;  %v2465_v38 = vpop.f32.mrb[21].mxu0 }
0x2a44   :  { %v2466_v43 = vadd.f32 %v2739_v36, %v2465_v38 }
0x2a45   :  { %3219 = vtanh.f32 %v2471_v39 }
0x2a46   :  { %3221 = vtanh.f32 %v2466_v43  ;;  %v2999_v40 = vpop.f32.mrb[22].mxu0 }
0x2a47   :  { %v2481_v12 = vadd.f32 %v2999_v40, %v2739_v36  ;;  %v2475_v41 = vpop.f32.mrb[23].mxu0 }
0x2a48   :  { %v2476_v5 = vadd.f32 %v2739_v36, %v2475_v41 }
0x2a49   :  { %3223 = vtanh.f32 %v2481_v12 }
0x2a4a   :  { %3225 = vtanh.f32 %v2476_v5  ;;  %v3002_v13 = vpop.f32.mrb[24].mxu0 }
0x2a4b   :  { %v2491_v22 = vadd.f32 %v3002_v13, %v2739_v36  ;;  %v2485_v6 = vpop.f32.mrb[25].mxu0 }
0x2a4c   :  { %v2486_v42 = vadd.f32 %v2739_v36, %v2485_v6 }
0x2a4d   :  { %3227 = vtanh.f32 %v2491_v22 }
0x2a4e   :  { %3229 = vtanh.f32 %v2486_v42  ;;  %v3005_v30 = vpop.f32.mrb[26].mxu0  ;;  %v3611_v42 = vmov 1  }
0x2a4f   :  { %v3220_v25 = vpop.eup %3219  ;;  %v2501_v19 = vadd.f32 %v3005_v30, %v2739_v36  ;;  %v2495_v20 = vpop.f32.mrb[27].mxu0 }
0x2a50   :  { %v3222_v56 = vpop.eup %3221  ;;  %v2496_v2 = vadd.f32 %v2739_v36, %v2495_v20  ;;  %v2525_v27 = vmul.f32 %v3220_v25, %v2748_v11  ;;  %v3612_v25 = vmov 3   ;;  %v3614_v20 = vmov 6  }
0x2a51   :  { %3231 = vtanh.f32 %v2501_v19  ;;  %v2519_v47 = vmul.f32 %v3222_v56, %v2748_v11  ;;  %v3613_v19 = vmov 2   ;;  %v3615_v56 = vmov 4  }
0x2a52   :  { %3233 = vtanh.f32 %v2496_v2  ;;  %v2526_v23 = vsel %vm379_vm4, %v2525_v27, 0.0  ;;  %v3616_v2 = vmov 5   ;;  %v3617_v27 = vmov 7  }
0x2a53   :  { %v3224_v17 = vpop.eup %3223  ;;  %2527 = vadd.xlane.f32.xlu0 %v2526_v23  ;;  %v2520_v14 = vsel %vm379_vm4, %v2519_v47, 0.0 }
0x2a54   :  { %v3226_v46 = vpop.eup %3225  ;;  %2521 = vadd.xlane.f32.xlu1 %v2520_v14  ;;  %v2537_v50 = vmul.f32 %v3224_v17, %v2748_v11 }
0x2a55   :  { %v2531_v52 = vmul.f32 %v3226_v46, %v2748_v11 }
0x2a56   :  { %v2538_v44 = vsel %vm379_vm4, %v2537_v50, 0.0 }
0x2a57   :  { %v3228_v53 = vpop.eup %3227  ;;  %v2532_v54 = vsel %vm379_vm4, %v2531_v52, 0.0 }
0x2a58   :  { %v3230_v7 = vpop.eup %3229  ;;  %2539 = vadd.xlane.f32.xlu1 %v2538_v44  ;;  %2533 = vadd.xlane.f32.xlu0 %v2532_v54  ;;  %v2549_v10 = vmul.f32 %v3228_v53, %v2748_v11 }
0x2a59   :  { %v2543_v21 = vmul.f32 %v3230_v7, %v2748_v11 }
0x2a5a   :  { %v2550_v31 = vsel %vm379_vm4, %v2549_v10, 0.0 }
0x2a5b   :  { %v3232_v55 = vpop.eup %3231  ;;  %v2544_v59 = vsel %vm379_vm4, %v2543_v21, 0.0 }
0x2a5c   :  { %v3234_v62 = vpop.eup %3233  ;;  %2551 = vadd.xlane.f32.xlu1 %v2550_v31  ;;  %2545 = vadd.xlane.f32.xlu0 %v2544_v59  ;;  %v2561_v0 = vmul.f32 %v3232_v55, %v2748_v11 }
0x2a5d   :  { %v2555_v1 = vmul.f32 %v3234_v62, %v2748_v11 }
0x2a5e   :  { %v2562_v58 = vsel %vm379_vm4, %v2561_v0, 0.0 }
0x2a5f   :  { %v2556_v3 = vsel %vm379_vm4, %v2555_v1, 0.0  ;;  %vm2559_vm4 = vcmask 56368  }
0x2a60   :  { %2563 = vadd.xlane.f32.xlu1 %v2562_v58  ;;  %2557 = vadd.xlane.f32.xlu0 %v2556_v3 }
0x2a76   :  { %2573 = vperm.xlu0 %3114, %v3240_v63  }
0x2a7a   :  { %3115 = vset.pattern.permute.xlu0 %v3611_v42 }
0x2ae0   :  { %v2528_v4 = vpop.xlane.xlu0 %2527 }
0x2ae1   :  { %v2522_v8 = vpop.xlane.xlu1 %2521 }
0x2ae2   :  { %2524 = vst.msk [vmem:[#allocation26] sm:$0xff] %vm2523_vm13, %v2522_v8 }
0x2ae3   :  { %2530 = vst.msk [vmem:[#allocation26] sm:$0xff] %vm2529_vm14, %v2528_v4 }
0x2ae5   :  { %v2540_v9 = vpop.xlane.xlu1 %2539  ;;  %v2534_v24 = vpop.xlane.xlu0 %2533 }
0x2ae6   :  { %2536 = vst.msk [vmem:[#allocation26] sm:$0xff] %vm2535_vm15, %v2534_v24 }
0x2ae7   :  { %2542 = vst.msk [vmem:[#allocation26] sm:$0xff] %vm2541_vm1, %v2540_v9 }
0x2ae9   :  { %v2552_v26 = vpop.xlane.xlu1 %2551  ;;  %v2546_v33 = vpop.xlane.xlu0 %2545 }
0x2aea   :  { %2548 = vst.msk [vmem:[#allocation26] sm:$0xff] %vm2547_vm2, %v2546_v33 }
0x2aeb   :  { %2554 = vst.msk [vmem:[#allocation26] sm:$0xff] %vm2553_vm3, %v2552_v26 }
0x2aed   :  { %v2564_v29 = vpop.xlane.xlu1 %2563  ;;  %v2558_v48 = vpop.xlane.xlu0 %2557 }
0x2aee   :  { %2560 = vst.msk [vmem:[#allocation26] sm:$0xff] %vm2559_vm4, %v2558_v48 }
0x2aef   :  { %2566 = vst.msk [vmem:[#allocation26] sm:$0xff] %vm2565_vm5, %v2564_v29 }
0x2af5   :  { %v2574_v51 = vpop.permute.xlu0 %2573 }
0x2af6   :  { %vm2576_vm6 = vcmp.lt.f32.partialorder %v2570_v61, %v2574_v51  ;;  %v2567_v36 = vld [vmem:[#allocation26] sm:$0xff] }
0x2af7   :  { %v2749_v37 = vsel %vm2576_vm6, 1.0, %v3606_v16 }
0x2af8   :  { %v2580_v39 = vsub.f32 1.0, %v2749_v37  ;;  %v2579_v38 = vmul.f32 %v2749_v37, %v2567_v36 }
0x2afa   :  { %v2581_v43 = vmul.f32 -1e+20, %v2580_v39 }
0x2afc   :  { %v2582_v40 = vadd.f32 %v2581_v43, %v2579_v38 }
0x2afe   :  { %v2584_v12 = vsel %vm2583_vm7, %v2582_v40, -inf }
0x2aff   :  { %2585 = vmax.xlane.f32.xlu1 %v2584_v12 }
0x2b8c   :  { %v2586_v41 = vpop.xlane.xlu1 %2585 }
0x2b8d   :  { %v2587_v5 = vsub.f32 %v2582_v40, %v2586_v41 }
0x2b8f   :  { %v2588_v13 = vmul.f32 1.442695, %v2587_v5 }
0x2b91   :  { %3235 = vpow2.f32 %v2588_v13 }
0x2b9b   :  { %v3236_v22 = vpop.eup %3235 }
0x2b9c   :  { %v2590_v6 = vsel %vm2583_vm7, %v3236_v22, 0.0 }
0x2b9d   :  { %2591 = vadd.xlane.f32.xlu1 %v2590_v6 }
0x2c2a   :  { %v2592_v11 = vpop.xlane.xlu1 %2591 }
0x2c2b   :  { %3237 = vrcp.f32 %v2592_v11 }
0x2c35   :  { %v3238_v16 = vpop.eup %3237 }
0x2c36   :  { %v2594_v30 = vmul.f32 %v3238_v16, %v3236_v22 }
0x2c38   :  { %2595 = vst.msk [vmem:[#allocation26] sm:$0xff] %vm2583_vm7, %v2594_v30  ;;  %2604 = vperm.xlu0 %3115, %v2594_v30   ;;  %2598 = vperm.xlu1 %3113, %v2594_v30  }
0x2c3c   :  { %3117 = vset.pattern.permute.xlu0 %v3612_v25  ;;  %3116 = vset.pattern.permute.xlu1 %v3613_v19 }
0x2c3d   :  { %2616 = vperm.xlu0 %3117, %v2594_v30   ;;  %2610 = vperm.xlu1 %3116, %v2594_v30  }
0x2c41   :  { %3120 = vset.pattern.permute.xlu0 %v3614_v20  ;;  %3118 = vset.pattern.permute.xlu1 %v3615_v56 }
0x2c42   :  { %2634 = vperm.xlu0 %3120, %v2594_v30   ;;  %2622 = vperm.xlu1 %3118, %v2594_v30  }
0x2c46   :  { %3119 = vset.pattern.permute.xlu1 %v3616_v2  ;;  %3122 = vset.pattern.permute.xlu0 %v3617_v27 }
0x2c47   :  { %2628 = vperm.xlu1 %3119, %v2594_v30  }
0x2c4b   :  { %3121 = vset.pattern.permute.xlu1 %v3617_v27 }
0x2c4c   :  { %2640 = vperm.xlu1 %3121, %v2594_v30  }
0x2c4d   :  { %3538 = shalt.err (!%p3535_p10)
}
0x2c4e   :  { %s3539_s29 = scalar_lea.hbm %s4373_s14, 128 }
0x2c4f   :  { %p3540_p11 = scmp.ne.s32.totalorder %s4373_s14, %s3539_s29  ;;  %p3543_p12 = scmp.lt.u32.totalorder %s3539_s29, %s4373_s14 }
0x2c51   :  { %p3545_p13 = pnand %p3543_p12, %p3540_p11 }
0x2c53   :  { %3548 = shalt.err (!%p3545_p13)
}
0x2c54   :  { %2665 = dma.vmem_to_hbm [thread:$0]  %s2663_s9, 128, %s4373_s14, [#allocation27]  }
0x2c55   :  { %s3619_s14 = smov [#allocation25]  }
0x2c56   :  { %s2652_s8 = sshll.u32 %s3619_s14, 4  ;;  %s2653_s8 = int_to_ptr.vmem [resolvable:$true] %s2652_s8 }
0x2c57   :  { %s3549_s24 = scalar_lea.vmem %s2653_s8, 128  ;;  %p3554_p1 = scmp.lt.s32.totalorder %s2653_s8, %s2653_s8 }
0x2c58   :  { %p3550_p0 = scmp.ne.s32.totalorder %s2653_s8, %s3549_s24  ;;  %p3555_p2 = scmp.lt.s32.totalorder %s3549_s24, %s3549_s24 }
0x2c5a   :  { %p3556_p3 = por %p3555_p2, %p3554_p1 }
0x2c5c   :  { %p3557_p4 = pnand %p3556_p3, %p3550_p0 }
0x2cb7   :  { %v2605_v47 = vpop.permute.xlu0 %2604  ;;  %v2599_v23 = vpop.permute.xlu1 %2598 }
0x2cb8   :  { %v2607_v17 = vmul.f32 %v2605_v47, %v4283_v15  ;;  %v2601_v14 = vmul.f32 %v2599_v23, %v4279_v49 }
0x2cba   :  { %v2608_v50 = vadd.f32 %v2607_v17, %v2601_v14 }
0x2cbc   :  { %v2611_v46 = vpop.permute.xlu1 %2610  ;;  %v2617_v44 = vpop.permute.xlu0 %2616 }
0x2cbd   :  { %v2613_v52 = vmul.f32 %v2611_v46, %v4287_v57  ;;  %v2619_v54 = vmul.f32 %v2617_v44, %v4294_v18 }
0x2cbf   :  { %v2614_v53 = vadd.f32 %v2613_v52, %v2608_v50 }
0x2cc1   :  { %v2623_v7 = vpop.permute.xlu1 %2622  ;;  %v2620_v10 = vadd.f32 %v2619_v54, %v2614_v53  ;;  %v2635_v31 = vpop.permute.xlu0 %2634 }
0x2cc2   :  { %v2625_v21 = vmul.f32 %v2623_v7, %v4298_v34  ;;  %v2637_v15 = vmul.f32 %v2635_v31, %v4306_v35 }
0x2cc4   :  { %v2626_v59 = vadd.f32 %v2625_v21, %v2620_v10 }
0x2cc6   :  { %v2629_v55 = vpop.permute.xlu1 %2628 }
0x2cc7   :  { %v2631_v62 = vmul.f32 %v2629_v55, %v4302_v32 }
0x2cc9   :  { %v2632_v49 = vadd.f32 %v2631_v62, %v2626_v59 }
0x2ccb   :  { %v2638_v0 = vadd.f32 %v2637_v15, %v2632_v49  ;;  %v2641_v1 = vpop.permute.xlu1 %2640 }
0x2ccc   :  { %v2643_v57 = vmul.f32 %v2641_v1, %v4310_v60 }
0x2cce   :  { %v2644_v58 = vadd.f32 %v2643_v57, %v2638_v0 }
0x2cd0   :  { %2645 = vst.msk [vmem:[#allocation25] sm:$0xff] %vm230_vm0, %v2644_v58 }
0x2cd1   :  { %3560 = shalt.err (!%p3557_p4)
}
0x2cd2   :  { %s3561_s28 = scalar_lea.hbm %s4372_s13, 128 }
0x2cd3   :  { %p3562_p5 = scmp.ne.s32.totalorder %s4372_s13, %s3561_s28  ;;  %p3565_p6 = scmp.lt.u32.totalorder %s3561_s28, %s4372_s13 }
0x2cd5   :  { %p3567_p7 = pnand %p3565_p6, %p3562_p5 }
0x2cd7   :  { %3570 = shalt.err (!%p3567_p7)
}
0x2cd8   :  { %2655 = dma.vmem_to_hbm [thread:$0]  %s2653_s8, 128, %s4372_s13, [#allocation6]  }
0x2cd9   :  { %3585 = dma.done.wait [#allocation6], 128  }
0x2cda   :  { %3586 = vsyncadd [#allocation6], 4294967168 }
0x2cdb   :  { %3587 = dma.done.wait [#allocation27], 128  }
0x2cdc   :  { %3588 = vsyncadd [#allocation27], 4294967168 }
0x2cdd   :  { %2672 = vsyncpa [#allocation5], 1 }
0x2cde   :  { %2673 = vsyncpa [#allocation8], 1 }
0x2cdf   :  { %2674 = vsyncpa [#allocation11], 1 }
0x2ce0   :  { %2675 = vsyncpa [#allocation14], 1 }
0x2ce1   :  { %2676 = vsyncpa [#allocation17], 1 }
0x2ce2   :  { %2677 = vsyncpa [#allocation20], 1 }
0x2ce3   :  { %2678 = vsyncpa [#allocation23], 1 }
0x2ce4   :  { %2679 = vsyncpa [#allocation6], 1 }
0x2ce5   :  { %2680 = vsyncpa [#allocation27], 1 }

</bundles_post_ra>
